<compile_context>
chip_gen: v5e
topology: v5e:2x2
jax: 0.10.0
libtpu: 0.0.40
codegen_flags: <defaults>
</compile_context>

<pallas_src>
import functools

import jax
import jax.numpy as jnp
from jax.experimental import pallas as pl
from jax.experimental.pallas import tpu as pltpu


def _merged_kernel(x1_ref, x2_ref, wa_ref, wb_ref, b_ref, o_ref, *, exp_dtype):
    # Two sub-model matmuls in bf16 with f32 accumulation.  The activation
    # cast happens in-register here instead of as a wrapper-side HBM pass.
    a = jnp.dot(x1_ref[...].astype(jnp.bfloat16), wa_ref[...],
                preferred_element_type=jnp.float32)
    b = jnp.dot(x2_ref[...].astype(jnp.bfloat16), wb_ref[...],
                preferred_element_type=jnp.float32)

    # Lane-axis concat: outA is a multiple of 128, so this is just placing the
    # two partial results in adjacent lane groups.  Then fused bias + relu.
    z = jnp.concatenate([a, b], axis=1) + b_ref[...]
    z = jnp.maximum(z, 0.0)

    # softmax #1 (row-max kept for safety; denominator inverted on the EUP).
    m = jnp.max(z, axis=1, keepdims=True)
    e = jnp.exp((z - m).astype(exp_dtype)).astype(jnp.float32)
    p = e * pl.reciprocal(jnp.sum(e, axis=1, keepdims=True), approx=True)

    # softmax #2: inputs are first-stage softmax outputs in [0, 1] -> exp
    # cannot overflow, so the row-max subtraction is safely skipped.
    e2 = jnp.exp(p.astype(exp_dtype)).astype(jnp.float32)
    o_ref[...] = (e2 * pl.reciprocal(jnp.sum(e2, axis=1, keepdims=True),
                                     approx=True)).astype(o_ref.dtype)


def prepare_merged_params(wa, ba, wb, bb):
    """One-time parameter prep (call at init, NOT per forward).

    Returns bf16 weights for the MXU and the fused (1, F) f32 bias.
    """
    wa_bf = wa.astype(jnp.bfloat16)
    wb_bf = wb.astype(jnp.bfloat16)
    bias = jnp.concatenate(
        [jnp.reshape(ba, (1, -1)), jnp.reshape(bb, (1, -1))],
        axis=1).astype(jnp.float32)
    return wa_bf, wb_bf, bias


def _target_grid_steps():
    """1 step on single-TC parts (v5e/v6e); >= 2 steps per core on v7x."""
    try:
        kind = jax.devices()[0].device_kind.lower()
    except Exception:
        kind = ""
    return 4 if "v7" in kind else 1


def _pick_bm(batch, steps):
    """Largest batch tile (multiple of 8, dividing batch) giving >= steps."""
    if steps <= 1 or batch <= 8:
        return batch
    assert batch % 8 == 0, "batch must be a multiple of 8 to tile (f32 sublanes)"
    bm = max(8, batch // steps)
    bm -= bm % 8
    bm = max(8, bm)
    while batch % bm != 0:
        bm -= 8
    return bm


def merged_model(x1, x2, wa_bf, wb_bf, bias, *, grid_steps=None,
                 out_dtype=jnp.float32, exp_bf16=False):
    """Forward pass.  wa_bf / wb_bf / bias come from prepare_merged_params().

    out_dtype=jnp.bfloat16 halves the dominant output HBM stream (worth
    considering on v5e) if downstream consumers tolerate bf16 probabilities.
    """
    B, in1 = x1.shape
    B2, in2 = x2.shape
    assert B == B2, "x1 and x2 must share the batch dimension"
    outA = wa_bf.shape[1]
    outB = wb_bf.shape[1]
    F = outA + outB

    if grid_steps is None:
        grid_steps = _target_grid_steps()
    bm = _pick_bm(B, grid_steps)
    n_steps = B // bm

    # VMEM budget: double-buffered x / out tiles + resident weights & bias.
    # Set the scoped limit explicitly (with headroom) so the kernel stays an
    # honest citizen of v7x's 64 MiB VMEM as shapes grow.
    osize = jnp.dtype(out_dtype).itemsize
    vmem_bytes = (2 * bm * (in1 + in2) * x1.dtype.itemsize   # x1/x2 tiles
                  + 2 * bm * F * osize                       # out tiles
                  + 2 * (in1 * outA + in2 * outB) * 2        # bf16 weights
                  + 2 * F * 4)                               # fused bias
    vmem_limit = int(min(32 * 1024 * 1024, max(4 * vmem_bytes, 16 * 1024 * 1024)))

    kernel = functools.partial(
        _merged_kernel,
        exp_dtype=jnp.bfloat16 if exp_bf16 else jnp.float32)

    return pl.pallas_call(
        kernel,
        out_shape=jax.ShapeDtypeStruct((B, F), out_dtype),
        grid=(n_steps,),
        in_specs=[
            pl.BlockSpec((bm, in1), lambda i: (i, 0)),        # x1 tile
            pl.BlockSpec((bm, in2), lambda i: (i, 0)),        # x2 tile
            pl.BlockSpec((in1, outA), lambda i: (0, 0)),      # Wa (grid-invariant)
            pl.BlockSpec((in2, outB), lambda i: (0, 0)),      # Wb (grid-invariant)
            pl.BlockSpec((1, F), lambda i: (0, 0)),           # fused bias
        ],
        out_specs=pl.BlockSpec((bm, F), lambda i: (i, 0)),
        compiler_params=pltpu.CompilerParams(
            dimension_semantics=("parallel",),
            vmem_limit_bytes=vmem_limit),
    )(x1, x2, wa_bf, wb_bf, bias)


def merged_model_ref(x1, x2, wa, ba, wb, bb):
    a = x1 @ wa + ba
    b = x2 @ wb + bb
    x = jnp.concatenate([a, b], axis=1)
    x = jax.nn.relu(x)
    x = jax.nn.softmax(x, axis=1)
    return jax.nn.softmax(x, axis=1)


if __name__ == "__main__":
    key = jax.random.PRNGKey(0)
    kx1, kx2, kwa, kba, kwb, kbb = jax.random.split(key, 6)

    B = 512                    # 1 grid step on v5e/v6e, 4 (2/core) on v7x
    IN1, IN2 = 32, 32
    OUT_A, OUT_B = 128, 128    # lane-aligned per-model feature widths

    x1 = jax.random.normal(kx1, (B, IN1), dtype=jnp.float32)
    x2 = jax.random.normal(kx2, (B, IN2), dtype=jnp.float32)

    # Deterministic synthetic Linear parameters, stored as (in, out).
    wa = jax.random.normal(kwa, (IN1, OUT_A), dtype=jnp.float32) * 0.05
    ba = jax.random.normal(kba, (OUT_A,), dtype=jnp.float32) * 0.05
    wb = jax.random.normal(kwb, (IN2, OUT_B), dtype=jnp.float32) * 0.05
    bb = jax.random.normal(kbb, (OUT_B,), dtype=jnp.float32) * 0.05

    # One-time parameter prep, hoisted out of the per-forward path.
    wa_bf, wb_bf, bias = jax.block_until_ready(
        prepare_merged_params(wa, ba, wb, bb))

    out = merged_model(x1, x2, wa_bf, wb_bf, bias)
    out = jax.block_until_ready(out)

    ref = merged_model_ref(x1, x2, wa, ba, wb, bb)
    assert out.shape == (B, OUT_A + OUT_B)
    # Tolerance accounts for bf16 matmul operands + approx reciprocal.
    assert jnp.allclose(out, ref, atol=1e-4, rtol=1e-3)

    print("KERNEL_OK")
</pallas_src>

<mosaic_0001>
module attributes {stable_mosaic.version = 11 : i64} {
  func.func @_merged_kernel(%arg0: i32, %arg1: memref<512x32xf32, #tpu.memory_space<vmem>>, %arg2: memref<512x32xf32, #tpu.memory_space<vmem>>, %arg3: memref<32x128xbf16, #tpu.memory_space<vmem>>, %arg4: memref<32x128xbf16, #tpu.memory_space<vmem>>, %arg5: memref<1x256xf32, #tpu.memory_space<vmem>>, %arg6: memref<512x256xf32, #tpu.memory_space<vmem>>) attributes {dimension_semantics = [#tpu.dimension_semantics<parallel>], iteration_bounds = array<i64: 1>, scalar_prefetch = 0 : i64, scratch_operands = 0 : i64, tpu.core_type = #tpu.core_type<tc>, window_params = [{transform_indices = @transform_0, window_bounds = array<i64: 512, 32>}, {transform_indices = @transform_1, window_bounds = array<i64: 512, 32>}, {pipeline_mode = #tpu.pipeline_mode<synchronous>, transform_indices = @transform_2, window_bounds = array<i64: 32, 128>}, {pipeline_mode = #tpu.pipeline_mode<synchronous>, transform_indices = @transform_3, window_bounds = array<i64: 32, 128>}, {pipeline_mode = #tpu.pipeline_mode<synchronous>, transform_indices = @transform_4, window_bounds = array<i64: 1, 256>}, {transform_indices = @transform_5, window_bounds = array<i64: 512, 256>}]} {
    %c0 = arith.constant 0 : index
    %c0_0 = arith.constant 0 : index
    %0 = vector.load %arg1[%c0, %c0_0] : memref<512x32xf32, #tpu.memory_space<vmem>>, vector<512x32xf32>
    %1 = arith.truncf %0 : vector<512x32xf32> to vector<512x32xbf16>
    %c0_1 = arith.constant 0 : index
    %c0_2 = arith.constant 0 : index
    %2 = vector.load %arg3[%c0_1, %c0_2] : memref<32x128xbf16, #tpu.memory_space<vmem>>, vector<32x128xbf16>
    %cst = arith.constant dense<0.000000e+00> : vector<512x128xf32>
    %3 = tpu.matmul %1, %2, %cst {dimension_numbers = #tpu.dot_dimension_numbers<[1], [0], [0], [1], [0, 0, 1, 1], [], []>} : vector<512x32xbf16>, vector<32x128xbf16>, vector<512x128xf32> -> vector<512x128xf32>
    %c0_3 = arith.constant 0 : index
    %c0_4 = arith.constant 0 : index
    %4 = vector.load %arg2[%c0_3, %c0_4] : memref<512x32xf32, #tpu.memory_space<vmem>>, vector<512x32xf32>
    %5 = arith.truncf %4 : vector<512x32xf32> to vector<512x32xbf16>
    %c0_5 = arith.constant 0 : index
    %c0_6 = arith.constant 0 : index
    %6 = vector.load %arg4[%c0_5, %c0_6] : memref<32x128xbf16, #tpu.memory_space<vmem>>, vector<32x128xbf16>
    %cst_7 = arith.constant dense<0.000000e+00> : vector<512x128xf32>
    %7 = tpu.matmul %5, %6, %cst_7 {dimension_numbers = #tpu.dot_dimension_numbers<[1], [0], [0], [1], [0, 0, 1, 1], [], []>} : vector<512x32xbf16>, vector<32x128xbf16>, vector<512x128xf32> -> vector<512x128xf32>
    %8 = tpu.concatenate %3, %7 in 1 : vector<512x128xf32>, vector<512x128xf32> -> vector<512x256xf32>
    %c0_8 = arith.constant 0 : index
    %c0_9 = arith.constant 0 : index
    %9 = vector.load %arg5[%c0_8, %c0_9] : memref<1x256xf32, #tpu.memory_space<vmem>>, vector<1x256xf32>
    %10 = vector.broadcast %9 : vector<1x256xf32> to vector<512x256xf32>
    %11 = arith.addf %8, %10 : vector<512x256xf32>
    %cst_10 = arith.constant 0.000000e+00 : f32
    %12 = vector.broadcast %cst_10 : f32 to vector<512x256xf32>
    %13 = arith.maximumf %11, %12 : vector<512x256xf32>
    %cst_11 = arith.constant dense<0xFF800000> : vector<512xf32>
    %14 = vector.multi_reduction <maximumf>, %13, %cst_11 [1] : vector<512x256xf32> to vector<512xf32>
    %15 = vector.shape_cast %14 : vector<512xf32> to vector<512x1xf32>
    %16 = vector.broadcast %15 : vector<512x1xf32> to vector<512x256xf32>
    %17 = arith.subf %13, %16 : vector<512x256xf32>
    %18 = math.exp %17 : vector<512x256xf32>
    %cst_12 = arith.constant dense<0.000000e+00> : vector<512xf32>
    %19 = vector.multi_reduction <add>, %18, %cst_12 [1] : vector<512x256xf32> to vector<512xf32>
    %20 = vector.shape_cast %19 : vector<512xf32> to vector<512x1xf32>
    %21 = tpu.reciprocal %20 {approx = true} : vector<512x1xf32> -> vector<512x1xf32>
    %22 = vector.broadcast %21 : vector<512x1xf32> to vector<512x256xf32>
    %23 = arith.mulf %18, %22 : vector<512x256xf32>
    %24 = math.exp %23 : vector<512x256xf32>
    %cst_13 = arith.constant dense<0.000000e+00> : vector<512xf32>
    %25 = vector.multi_reduction <add>, %24, %cst_13 [1] : vector<512x256xf32> to vector<512xf32>
    %26 = vector.shape_cast %25 : vector<512xf32> to vector<512x1xf32>
    %27 = tpu.reciprocal %26 {approx = true} : vector<512x1xf32> -> vector<512x1xf32>
    %28 = vector.broadcast %27 : vector<512x1xf32> to vector<512x256xf32>
    %29 = arith.mulf %24, %28 : vector<512x256xf32>
    %c0_14 = arith.constant 0 : index
    %c0_15 = arith.constant 0 : index
    %30 = vector.load %arg6[%c0_14, %c0_15] : memref<512x256xf32, #tpu.memory_space<vmem>>, vector<512x256xf32>
    tpu.vector_store %arg6[%c0_14, %c0_15], %29 {strides = array<i32>} : memref<512x256xf32, #tpu.memory_space<vmem>>, vector<512x256xf32>,
    return
  }
  func.func @transform_0(%arg0: i32) -> (i32, i32) {
    %c0_i32 = arith.constant 0 : i32
    %c0_i32_0 = arith.constant 0 : i32
    return %arg0, %c0_i32 : i32, i32
  }
  func.func @transform_1(%arg0: i32) -> (i32, i32) {
    %c0_i32 = arith.constant 0 : i32
    %c0_i32_0 = arith.constant 0 : i32
    return %arg0, %c0_i32 : i32, i32
  }
  func.func @transform_2(%arg0: i32) -> (i32, i32) {
    %c0_i32 = arith.constant 0 : i32
    %c0_i32_0 = arith.constant 0 : i32
    %c0_i32_1 = arith.constant 0 : i32
    return %c0_i32, %c0_i32_0 : i32, i32
  }
  func.func @transform_3(%arg0: i32) -> (i32, i32) {
    %c0_i32 = arith.constant 0 : i32
    %c0_i32_0 = arith.constant 0 : i32
    %c0_i32_1 = arith.constant 0 : i32
    return %c0_i32, %c0_i32_0 : i32, i32
  }
  func.func @transform_4(%arg0: i32) -> (i32, i32) {
    %c0_i32 = arith.constant 0 : i32
    %c0_i32_0 = arith.constant 0 : i32
    %c0_i32_1 = arith.constant 0 : i32
    return %c0_i32, %c0_i32_0 : i32, i32
  }
  func.func @transform_5(%arg0: i32) -> (i32, i32) {
    %c0_i32 = arith.constant 0 : i32
    %c0_i32_0 = arith.constant 0 : i32
    return %arg0, %c0_i32 : i32, i32
  }
}

</mosaic_0001>

<bundles_post_ra>
// kernel: tpu_custom_call.1
= control target key start
LH: loop header
LB: loop body
LE: loop exit
PB: predicated region body
PF: predicated region fallthrough
CT: control target
= control target key end

     0   :  { %vm134_vm0 = vcmask 261120   ;;  %s6541_s0 = inlined_call_operand.vmem [shape: f32[512,32], index: 0, kind: input, shape index: {}]   ;;  %s6542_s1 = inlined_call_operand.vmem [shape: f32[512,32], index: 1, kind: input, shape index: {}]   ;;  %s6543_s2 = inlined_call_operand.vmem [shape: bf16[32,128], index: 2, kind: input, shape index: {}]   ;;  %s6544_s3 = inlined_call_operand.vmem [shape: bf16[32,128], index: 3, kind: input, shape index: {}]   ;;  %s6545_s4 = inlined_call_operand.vmem [shape: f32[1,256], index: 4, kind: input, shape index: {}]   ;;  %s6546_s5 = inlined_call_operand.hbm [shape: f32[512,256], index: 5, kind: output, shape index: {}]  }
   0x1   :  { %v2866_v0 = vld [vmem:[%s6543_s2 + $0x8] sm:$0xff]  ;;  %v2865_v2 = vld [vmem:[%s6543_s2] sm:$0xff] }
   0x2   :  { %v2868_v1 = vld [vmem:[%s6544_s3 + $0x8] sm:$0xff]  ;;  %v2867_v3 = vld [vmem:[%s6544_s3] sm:$0xff]  ;;  %237 = vmatpush.bf16.msra.mxu0 %v2866_v0  ;;  %2869 = vmatpush.bf16.msra.mxu2 %v2866_v0 }
   0x3   :  { %v22_v4 = vld [vmem:[%s6541_s0] sm:$0xff]  ;;  %v23_v5 = vld [vmem:[%s6541_s0 + $0x8] sm:$0xff]  ;;  %614 = vmatpush.bf16.msra.mxu1 %v2868_v1  ;;  %2871 = vmatpush.bf16.msra.mxu3 %v2868_v1 }
   0x4   :  { %v54_v6 = vld [vmem:[%s6541_s0 + $0x100] sm:$0xff]  ;;  %v55_v7 = vld [vmem:[%s6541_s0 + $0x108] sm:$0xff]  ;;  %v86_v12 = vpack.c.bf16 %v23_v5, %v22_v4 }
   0x5   :  { %v400_v8 = vld [vmem:[%s6542_s1] sm:$0xff]  ;;  %v401_v9 = vld [vmem:[%s6542_s1 + $0x8] sm:$0xff]  ;;  %v102_v13 = vpack.c.bf16 %v55_v7, %v54_v6 }
   0x6   :  { %v432_v10 = vld [vmem:[%s6542_s1 + $0x100] sm:$0xff]  ;;  %v433_v11 = vld [vmem:[%s6542_s1 + $0x108] sm:$0xff]  ;;  %238 = vmatpush.bf16.msra.mxu0 %v2865_v2  ;;  %2870 = vmatpush.bf16.msra.mxu2 %v2865_v2  ;;  %v464_v14 = vpack.c.bf16 %v401_v9, %v400_v8 }
   0x7   :  { %v480_v15 = vpack.c.bf16 %v433_v11, %v432_v10  ;;  %615 = vmatpush.bf16.msra.mxu1 %v2867_v3  ;;  %2872 = vmatpush.bf16.msra.mxu3 %v2867_v3 }
   0x9   :  { %2793 = vmatmul.msk.bf16.vlgmr.msra.gmra.mxu0 %vm134_vm0, %v86_v12  ;;  %2809 = vmatmul.msk.bf16.vlgmr.msra.gmra.mxu2 %vm134_vm0, %v102_v13 }
   0xa   :  { %10 = vsyncpa [#allocation3], 0  ;;  %2833 = vmatmul.msk.bf16.vlgmr.msra.gmra.mxu1 %vm134_vm0, %v464_v14  ;;  %2849 = vmatmul.msk.bf16.vlgmr.msra.gmra.mxu3 %vm134_vm0, %v480_v15  ;;  %v24_v16 = vld [vmem:[%s6541_s0 + $0x10] sm:$0xff]  ;;  %v25_v17 = vld [vmem:[%s6541_s0 + $0x18] sm:$0xff]  ;;  %s2773_s11 = sshll.u32 %s6546_s5, 4  ;;  %s3671_s12 = smov 256   ;;  %s2774_s11 = int_to_ptr.hbm [resolvable:$true] %s2773_s11 }
   0xb   :  { %v56_v18 = vld [vmem:[%s6541_s0 + $0x110] sm:$0xff]  ;;  %v57_v19 = vld [vmem:[%s6541_s0 + $0x118] sm:$0xff]  ;;  %v87_v24 = vpack.c.bf16 %v25_v17, %v24_v16  ;;  %v26_v28 = vld [vmem:[%s6541_s0 + $0x20] sm:$0xff]  ;;  %s3672_s13 = smov 16  }
   0xc   :  { %v402_v20 = vld [vmem:[%s6542_s1 + $0x10] sm:$0xff]  ;;  %v403_v21 = vld [vmem:[%s6542_s1 + $0x18] sm:$0xff]  ;;  %v103_v25 = vpack.c.bf16 %v57_v19, %v56_v18  ;;  %v27_v29 = vld [vmem:[%s6541_s0 + $0x28] sm:$0xff] }
   0xd   :  { %v434_v22 = vld [vmem:[%s6542_s1 + $0x110] sm:$0xff]  ;;  %v435_v23 = vld [vmem:[%s6542_s1 + $0x118] sm:$0xff]  ;;  %v465_v26 = vpack.c.bf16 %v403_v21, %v402_v20  ;;  %v58_v30 = vld [vmem:[%s6541_s0 + $0x120] sm:$0xff]  ;;  %v88_v36 = vpack.c.bf16 %v27_v29, %v26_v28 }
   0xe   :  { %v481_v27 = vpack.c.bf16 %v435_v23, %v434_v22  ;;  %v59_v31 = vld [vmem:[%s6541_s0 + $0x128] sm:$0xff]  ;;  %v404_v32 = vld [vmem:[%s6542_s1 + $0x20] sm:$0xff]  ;;  %v28_v40 = vld [vmem:[%s6541_s0 + $0x30] sm:$0xff] }
   0xf   :  { %v405_v33 = vld [vmem:[%s6542_s1 + $0x28] sm:$0xff]  ;;  %v436_v34 = vld [vmem:[%s6542_s1 + $0x120] sm:$0xff]  ;;  %v104_v37 = vpack.c.bf16 %v59_v31, %v58_v30  ;;  %v29_v41 = vld [vmem:[%s6541_s0 + $0x38] sm:$0xff] }
  0x10   :  { %v437_v35 = vld [vmem:[%s6542_s1 + $0x128] sm:$0xff]  ;;  %v466_v38 = vpack.c.bf16 %v405_v33, %v404_v32  ;;  %v60_v42 = vld [vmem:[%s6541_s0 + $0x130] sm:$0xff]  ;;  %v61_v43 = vld [vmem:[%s6541_s0 + $0x138] sm:$0xff]  ;;  %v89_v48 = vpack.c.bf16 %v29_v41, %v28_v40 }
  0x11   :  { %v482_v39 = vpack.c.bf16 %v437_v35, %v436_v34  ;;  %v406_v44 = vld [vmem:[%s6542_s1 + $0x30] sm:$0xff]  ;;  %v407_v45 = vld [vmem:[%s6542_s1 + $0x38] sm:$0xff]  ;;  %v105_v49 = vpack.c.bf16 %v61_v43, %v60_v42  ;;  %v30_v52 = vld [vmem:[%s6541_s0 + $0x40] sm:$0xff] }
  0x12   :  { %v438_v46 = vld [vmem:[%s6542_s1 + $0x130] sm:$0xff]  ;;  %v439_v47 = vld [vmem:[%s6542_s1 + $0x138] sm:$0xff]  ;;  %v467_v50 = vpack.c.bf16 %v407_v45, %v406_v44  ;;  %v31_v53 = vld [vmem:[%s6541_s0 + $0x48] sm:$0xff] }
  0x13   :  { %v483_v51 = vpack.c.bf16 %v439_v47, %v438_v46  ;;  %v62_v54 = vld [vmem:[%s6541_s0 + $0x140] sm:$0xff]  ;;  %v63_v55 = vld [vmem:[%s6541_s0 + $0x148] sm:$0xff]  ;;  %v90_v60 = vpack.c.bf16 %v31_v53, %v30_v52  ;;  %v32_v0 = vld [vmem:[%s6541_s0 + $0x50] sm:$0xff] }
  0x14   :  { %v408_v56 = vld [vmem:[%s6542_s1 + $0x40] sm:$0xff]  ;;  %v409_v57 = vld [vmem:[%s6542_s1 + $0x48] sm:$0xff]  ;;  %v106_v61 = vpack.c.bf16 %v63_v55, %v62_v54  ;;  %v33_v1 = vld [vmem:[%s6541_s0 + $0x58] sm:$0xff] }
  0x15   :  { %v440_v58 = vld [vmem:[%s6542_s1 + $0x140] sm:$0xff]  ;;  %v441_v59 = vld [vmem:[%s6542_s1 + $0x148] sm:$0xff]  ;;  %v468_v62 = vpack.c.bf16 %v409_v57, %v408_v56  ;;  %v64_v2 = vld [vmem:[%s6541_s0 + $0x150] sm:$0xff]  ;;  %v91_v8 = vpack.c.bf16 %v33_v1, %v32_v0 }
  0x16   :  { %v484_v63 = vpack.c.bf16 %v441_v59, %v440_v58  ;;  %v65_v3 = vld [vmem:[%s6541_s0 + $0x158] sm:$0xff]  ;;  %v410_v4 = vld [vmem:[%s6542_s1 + $0x50] sm:$0xff]  ;;  %v34_v12 = vld [vmem:[%s6541_s0 + $0x60] sm:$0xff] }
  0x17   :  { %v411_v5 = vld [vmem:[%s6542_s1 + $0x58] sm:$0xff]  ;;  %v442_v6 = vld [vmem:[%s6542_s1 + $0x150] sm:$0xff]  ;;  %v107_v9 = vpack.c.bf16 %v65_v3, %v64_v2  ;;  %v35_v13 = vld [vmem:[%s6541_s0 + $0x68] sm:$0xff] }
  0x18   :  { %v443_v7 = vld [vmem:[%s6542_s1 + $0x158] sm:$0xff]  ;;  %v469_v10 = vpack.c.bf16 %v411_v5, %v410_v4  ;;  %v66_v14 = vld [vmem:[%s6541_s0 + $0x160] sm:$0xff]  ;;  %v67_v15 = vld [vmem:[%s6541_s0 + $0x168] sm:$0xff]  ;;  %v92_v20 = vpack.c.bf16 %v35_v13, %v34_v12 }
  0x19   :  { %2794 = vmatmul.msk.bf16.gmra.mxu0 %vm134_vm0, %v87_v24  ;;  %2810 = vmatmul.msk.bf16.gmra.mxu2 %vm134_vm0, %v103_v25  ;;  %v485_v11 = vpack.c.bf16 %v443_v7, %v442_v6  ;;  %v412_v16 = vld [vmem:[%s6542_s1 + $0x60] sm:$0xff]  ;;  %v413_v17 = vld [vmem:[%s6542_s1 + $0x68] sm:$0xff]  ;;  %v108_v21 = vpack.c.bf16 %v67_v15, %v66_v14  ;;  %v36_v24 = vld [vmem:[%s6541_s0 + $0x70] sm:$0xff] }
  0x1a   :  { %2834 = vmatmul.msk.bf16.gmra.mxu1 %vm134_vm0, %v465_v26  ;;  %2850 = vmatmul.msk.bf16.gmra.mxu3 %vm134_vm0, %v481_v27  ;;  %v444_v18 = vld [vmem:[%s6542_s1 + $0x160] sm:$0xff]  ;;  %v445_v19 = vld [vmem:[%s6542_s1 + $0x168] sm:$0xff]  ;;  %v470_v22 = vpack.c.bf16 %v413_v17, %v412_v16  ;;  %v37_v25 = vld [vmem:[%s6541_s0 + $0x78] sm:$0xff] }
  0x1b   :  { %v486_v23 = vpack.c.bf16 %v445_v19, %v444_v18  ;;  %v68_v26 = vld [vmem:[%s6541_s0 + $0x170] sm:$0xff]  ;;  %v69_v27 = vld [vmem:[%s6541_s0 + $0x178] sm:$0xff]  ;;  %v93_v32 = vpack.c.bf16 %v37_v25, %v36_v24  ;;  %v71_v40 = vld [vmem:[%s6541_s0 + $0x188] sm:$0xff] }
  0x1c   :  { %v414_v28 = vld [vmem:[%s6542_s1 + $0x70] sm:$0xff]  ;;  %v415_v29 = vld [vmem:[%s6542_s1 + $0x78] sm:$0xff]  ;;  %v109_v33 = vpack.c.bf16 %v69_v27, %v68_v26  ;;  %v416_v41 = vld [vmem:[%s6542_s1 + $0x80] sm:$0xff] }
  0x1d   :  { %v446_v30 = vld [vmem:[%s6542_s1 + $0x170] sm:$0xff]  ;;  %v447_v31 = vld [vmem:[%s6542_s1 + $0x178] sm:$0xff]  ;;  %v471_v34 = vpack.c.bf16 %v415_v29, %v414_v28  ;;  %v417_v43 = vld [vmem:[%s6542_s1 + $0x88] sm:$0xff] }
  0x1e   :  { %v487_v35 = vpack.c.bf16 %v447_v31, %v446_v30  ;;  %v448_v44 = vld [vmem:[%s6542_s1 + $0x180] sm:$0xff]  ;;  %v449_v45 = vld [vmem:[%s6542_s1 + $0x188] sm:$0xff]  ;;  %v40_v5 = vld [vmem:[%s6541_s0 + $0x90] sm:$0xff] }
  0x1f   :  { %v41_v6 = vld [vmem:[%s6541_s0 + $0x98] sm:$0xff]  ;;  %v450_v13 = vld [vmem:[%s6542_s1 + $0x190] sm:$0xff] }
  0x20   :  { %v419_v12 = vld [vmem:[%s6542_s1 + $0x98] sm:$0xff]  ;;  %v95_v19 = vpack.c.bf16 %v41_v6, %v40_v5 }
  0x21   :  { %v451_v14 = vld [vmem:[%s6542_s1 + $0x198] sm:$0xff] }
  0x22   :  { %v489_v24 = vpack.c.bf16 %v451_v14, %v450_v13 }
  0x29   :  { %2795 = vmatmul.msk.bf16.gmra.mxu0 %vm134_vm0, %v88_v36  ;;  %2811 = vmatmul.msk.bf16.gmra.mxu2 %vm134_vm0, %v104_v37  ;;  %v777_v36 = vld [vmem:[%s6545_s4] sm:$0x3] }
  0x2a   :  { %2835 = vmatmul.msk.bf16.gmra.mxu1 %vm134_vm0, %v466_v38  ;;  %2851 = vmatmul.msk.bf16.gmra.mxu3 %vm134_vm0, %v482_v39  ;;  %v38_v37 = vld [vmem:[%s6541_s0 + $0x80] sm:$0xff]  ;;  %v39_v38 = vld [vmem:[%s6541_s0 + $0x88] sm:$0xff]  ;;  %v3957_v42 = vperm.slane %v777_v36, 0  ;;  %v3968_v46 = vperm.slane %v777_v36, 1 }
  0x2b   :  { %v70_v39 = vld [vmem:[%s6541_s0 + $0x180] sm:$0xff]  ;;  %v94_v47 = vpack.c.bf16 %v39_v38, %v38_v37 }
  0x39   :  { %2796 = vmatmul.msk.bf16.gmra.mxu0 %vm134_vm0, %v89_v48  ;;  %2812 = vmatmul.msk.bf16.gmra.mxu2 %vm134_vm0, %v105_v49  ;;  %v110_v48 = vpack.c.bf16 %v71_v40, %v70_v39 }
  0x3a   :  { %2836 = vmatmul.msk.bf16.gmra.mxu1 %vm134_vm0, %v467_v50  ;;  %2852 = vmatmul.msk.bf16.gmra.mxu3 %vm134_vm0, %v483_v51  ;;  %v472_v50 = vpack.c.bf16 %v417_v43, %v416_v41  ;;  %v488_v51 = vpack.c.bf16 %v449_v45, %v448_v44  ;;  %v42_v43 = vld [vmem:[%s6541_s0 + $0xa0] sm:$0xff]  ;;  %v43_v44 = vld [vmem:[%s6541_s0 + $0xa8] sm:$0xff] }
  0x3b   :  { %v96_v5 = vpack.c.bf16 %v43_v44, %v42_v43  ;;  %v44_v44 = vld [vmem:[%s6541_s0 + $0xb0] sm:$0xff] }
  0x49   :  { %2797 = vmatmul.msk.bf16.gmra.mxu0 %vm134_vm0, %v90_v60  ;;  %2813 = vmatmul.msk.bf16.gmra.mxu2 %vm134_vm0, %v106_v61 }
  0x4a   :  { %2837 = vmatmul.msk.bf16.gmra.mxu1 %vm134_vm0, %v468_v62  ;;  %2853 = vmatmul.msk.bf16.gmra.mxu3 %vm134_vm0, %v484_v63 }
  0x59   :  { %2798 = vmatmul.msk.bf16.gmra.mxu0 %vm134_vm0, %v91_v8  ;;  %2814 = vmatmul.msk.bf16.gmra.mxu2 %vm134_vm0, %v107_v9  ;;  %v72_v9 = vld [vmem:[%s6541_s0 + $0x190] sm:$0xff] }
  0x5a   :  { %2838 = vmatmul.msk.bf16.gmra.mxu1 %vm134_vm0, %v469_v10  ;;  %2854 = vmatmul.msk.bf16.gmra.mxu3 %vm134_vm0, %v485_v11  ;;  %v73_v10 = vld [vmem:[%s6541_s0 + $0x198] sm:$0xff]  ;;  %v418_v11 = vld [vmem:[%s6542_s1 + $0x90] sm:$0xff] }
  0x69   :  { %2799 = vmatmul.msk.bf16.gmra.mxu0 %vm134_vm0, %v92_v20  ;;  %2815 = vmatmul.msk.bf16.gmra.mxu2 %vm134_vm0, %v108_v21  ;;  %v111_v20 = vpack.c.bf16 %v73_v10, %v72_v9 }
  0x6a   :  { %2839 = vmatmul.msk.bf16.gmra.mxu1 %vm134_vm0, %v470_v22  ;;  %2855 = vmatmul.msk.bf16.gmra.mxu3 %vm134_vm0, %v486_v23  ;;  %v473_v23 = vpack.c.bf16 %v419_v12, %v418_v11 }
  0x79   :  { %2800 = vmatmul.msk.bf16.gmra.mxu0 %vm134_vm0, %v93_v32  ;;  %2816 = vmatmul.msk.bf16.gmra.mxu2 %vm134_vm0, %v109_v33 }
  0x7a   :  { %2840 = vmatmul.msk.bf16.gmra.mxu1 %vm134_vm0, %v471_v34  ;;  %2856 = vmatmul.msk.bf16.gmra.mxu3 %vm134_vm0, %v487_v35 }
  0x86   :  { %v240_v49 = vpop.f32.mrf.mxu0 }
  0x87   :  { %v3971_v52 = vadd.f32 %v3957_v42, %v240_v49  ;;  %v617_v53 = vpop.f32.mrf.mxu1  ;;  %v75_v49 = vld [vmem:[%s6541_s0 + $0x1a8] sm:$0xff] }
  0x88   :  { %v3974_v54 = vadd.f32 %v3968_v46, %v617_v53  ;;  %v453_v53 = vld [vmem:[%s6542_s1 + $0x1a8] sm:$0xff] }
  0x89   :  { %v6590_v55 = vmax.f32 %v3971_v52, 0.0  ;;  %2801 = vmatmul.msk.bf16.gmra.mxu0 %vm134_vm0, %v94_v47  ;;  %2817 = vmatmul.msk.bf16.gmra.mxu2 %vm134_vm0, %v110_v48  ;;  %v420_v47 = vld [vmem:[%s6542_s1 + $0xa0] sm:$0xff] }
  0x8a   :  { %v6581_v56 = vmax.f32 %v3974_v54, 0.0  ;;  %2841 = vmatmul.msk.bf16.gmra.mxu1 %vm134_vm0, %v472_v50  ;;  %2857 = vmatmul.msk.bf16.gmra.mxu3 %vm134_vm0, %v488_v51  ;;  %v74_v48 = vld [vmem:[%s6541_s0 + $0x1a0] sm:$0xff]  ;;  %v421_v50 = vld [vmem:[%s6542_s1 + $0xa8] sm:$0xff] }
  0x8b   :  { %v452_v51 = vld [vmem:[%s6542_s1 + $0x1a0] sm:$0xff]  ;;  %v112_v6 = vpack.c.bf16 %v75_v49, %v74_v48  ;;  %v474_v10 = vpack.c.bf16 %v421_v50, %v420_v47  ;;  %v422_v47 = vld [vmem:[%s6542_s1 + $0xb0] sm:$0xff] }
  0x8c   :  { %v320_v57 = vpop.f32.mrf.mxu2  ;;  %v1039_v58 = vmax.f32 %v6590_v55, %v6581_v56  ;;  %v490_v11 = vpack.c.bf16 %v453_v53, %v452_v51  ;;  %v423_v53 = vld [vmem:[%s6542_s1 + $0xb8] sm:$0xff] }
  0x8d   :  { %v3987_v59 = vadd.f32 %v3957_v42, %v320_v57  ;;  %v697_v60 = vpop.f32.mrf.mxu3 }
  0x8e   :  { %v3990_v61 = vadd.f32 %v3968_v46, %v697_v60  ;;  %1040 = vmax.xlane.f32.xlu0 %v1039_v58  ;;  %v242_v62 = vpop.f32.mrf.mxu0 }
  0x8f   :  { %v6580_v63 = vmax.f32 %v3987_v59, 0.0  ;;  %v3994_v0 = vadd.f32 %v3957_v42, %v242_v62  ;;  %v619_v1 = vpop.f32.mrf.mxu1 }
  0x90   :  { %v6579_v2 = vmax.f32 %v3990_v61, 0.0  ;;  %v3998_v3 = vadd.f32 %v3968_v46, %v619_v1 }
  0x91   :  { %v6578_v4 = vmax.f32 %v3994_v0, 0.0 }
  0x92   :  { %v6577_v7 = vmax.f32 %v3998_v3, 0.0  ;;  %v1135_v8 = vmax.f32 %v6580_v63, %v6579_v2 }
  0x94   :  { %1136 = vmax.xlane.f32.xlu2 %v1135_v8  ;;  %v322_v15 = vpop.f32.mrf.mxu2  ;;  %v1042_v16 = vmax.f32 %v6578_v4, %v6577_v7 }
  0x95   :  { %v4035_v17 = vadd.f32 %v3957_v42, %v322_v15  ;;  %v699_v18 = vpop.f32.mrf.mxu3 }
  0x96   :  { %v4038_v21 = vadd.f32 %v3968_v46, %v699_v18  ;;  %1043 = vmax.xlane.f32.xlu0 %v1042_v16  ;;  %v245_v22 = vpop.f32.mrf.mxu0 }
  0x97   :  { %v4041_v25 = vadd.f32 %v3957_v42, %v245_v22  ;;  %v622_v26 = vpop.f32.mrf.mxu1  ;;  %v6576_v27 = vmax.f32 %v4035_v17, 0.0 }
  0x98   :  { %v6575_v28 = vmax.f32 %v4038_v21, 0.0  ;;  %v4046_v29 = vadd.f32 %v3968_v46, %v622_v26 }
  0x99   :  { %v6574_v30 = vmax.f32 %v4041_v25, 0.0  ;;  %2802 = vmatmul.msk.bf16.gmra.mxu0 %vm134_vm0, %v95_v19  ;;  %2818 = vmatmul.msk.bf16.gmra.mxu2 %vm134_vm0, %v111_v20 }
  0x9a   :  { %v6565_v31 = vmax.f32 %v4046_v29, 0.0  ;;  %2842 = vmatmul.msk.bf16.gmra.mxu1 %vm134_vm0, %v473_v23  ;;  %2858 = vmatmul.msk.bf16.gmra.mxu3 %vm134_vm0, %v489_v24  ;;  %v1138_v33 = vmax.f32 %v6576_v27, %v6575_v28 }
  0x9c   :  { %v325_v32 = vpop.f32.mrf.mxu2  ;;  %v1045_v34 = vmax.f32 %v6574_v30, %v6565_v31 }
  0x9d   :  { %v4063_v35 = vadd.f32 %v3957_v42, %v325_v32  ;;  %v702_v36 = vpop.f32.mrf.mxu3 }
  0x9e   :  { %v4066_v37 = vadd.f32 %v3968_v46, %v702_v36  ;;  %1139 = vmax.xlane.f32.xlu0 %v1138_v33  ;;  %1046 = vmax.xlane.f32.xlu1 %v1045_v34  ;;  %v247_v38 = vpop.f32.mrf.mxu0 }
  0x9f   :  { %v6564_v39 = vmax.f32 %v4063_v35, 0.0  ;;  %v624_v40 = vpop.f32.mrf.mxu1  ;;  %v4099_v57 = vadd.f32 %v3957_v42, %v247_v38 }
  0xa0   :  { %v6563_v41 = vmax.f32 %v4066_v37, 0.0  ;;  %v4102_v58 = vadd.f32 %v3968_v46, %v624_v40 }
  0xa1   :  { %v6562_v14 = vmax.f32 %v4099_v57, 0.0 }
  0xa2   :  { %v1141_v45 = vmax.f32 %v6564_v39, %v6563_v41  ;;  %v6561_v15 = vmax.f32 %v4102_v58, 0.0 }
  0xa4   :  { %v327_v60 = vpop.f32.mrf.mxu2  ;;  %v1048_v23 = vmax.f32 %v6562_v14, %v6561_v15 }
  0xa5   :  { %v4105_v62 = vadd.f32 %v3957_v42, %v327_v60  ;;  %v704_v1 = vpop.f32.mrf.mxu3  ;;  %v76_v60 = vld [vmem:[%s6541_s0 + $0x1b0] sm:$0xff] }
  0xa6   :  { %v4108_v8 = vadd.f32 %v3968_v46, %v704_v1  ;;  %1142 = vmax.xlane.f32.xlu1 %v1141_v45  ;;  %v250_v9 = vpop.f32.mrf.mxu0  ;;  %v45_v45 = vld [vmem:[%s6541_s0 + $0xb8] sm:$0xff] }
  0xa7   :  { %v6560_v12 = vmax.f32 %v4105_v62, 0.0  ;;  %v627_v13 = vpop.f32.mrf.mxu1  ;;  %v4117_v18 = vadd.f32 %v3957_v42, %v250_v9  ;;  %v77_v1 = vld [vmem:[%s6541_s0 + $0x1b8] sm:$0xff] }
  0xa8   :  { %v6559_v16 = vmax.f32 %v4108_v8, 0.0  ;;  %v4120_v19 = vadd.f32 %v3968_v46, %v627_v13  ;;  %v97_v13 = vpack.c.bf16 %v45_v45, %v44_v44 }
  0xa9   :  { %2803 = vmatmul.msk.bf16.gmra.mxu0 %vm134_vm0, %v96_v5  ;;  %2819 = vmatmul.msk.bf16.gmra.mxu2 %vm134_vm0, %v112_v6  ;;  %v6558_v32 = vmax.f32 %v4117_v18, 0.0  ;;  %v454_v5 = vld [vmem:[%s6542_s1 + $0x1b0] sm:$0xff]  ;;  %v455_v6 = vld [vmem:[%s6542_s1 + $0x1b8] sm:$0xff] }
  0xaa   :  { %2843 = vmatmul.msk.bf16.gmra.mxu1 %vm134_vm0, %v474_v10  ;;  %2859 = vmatmul.msk.bf16.gmra.mxu3 %vm134_vm0, %v490_v11  ;;  %v1144_v20 = vmax.f32 %v6560_v12, %v6559_v16  ;;  %v6557_v33 = vmax.f32 %v4120_v19, 0.0 }
  0xac   :  { %1145 = vmax.xlane.f32.xlu2 %v1144_v20  ;;  %v330_v22 = vpop.f32.mrf.mxu2  ;;  %v1051_v51 = vmax.f32 %v6558_v32, %v6557_v33  ;;  %v475_v20 = vpack.c.bf16 %v423_v53, %v422_v47 }
  0xad   :  { %v4133_v24 = vadd.f32 %v3957_v42, %v330_v22  ;;  %v707_v26 = vpop.f32.mrf.mxu3  ;;  %v113_v22 = vpack.c.bf16 %v77_v1, %v76_v60 }
  0xae   :  { %v4138_v34 = vadd.f32 %v3968_v46, %v707_v26  ;;  %1049 = vmax.xlane.f32.xlu1 %v1048_v23  ;;  %v252_v36 = vpop.f32.mrf.mxu0 }
  0xaf   :  { %v6548_v38 = vmax.f32 %v4133_v24, 0.0  ;;  %v629_v40 = vpop.f32.mrf.mxu1  ;;  %v4152_v48 = vadd.f32 %v3957_v42, %v252_v36 }
  0xb0   :  { %v6547_v43 = vmax.f32 %v4138_v34, 0.0  ;;  %v4155_v49 = vadd.f32 %v3968_v46, %v629_v40 }
  0xb1   :  { %v6555_v23 = vmax.f32 %v4152_v48, 0.0 }
  0xb2   :  { %v1147_v50 = vmax.f32 %v6548_v38, %v6547_v43  ;;  %v6554_v26 = vmax.f32 %v4155_v49, 0.0  ;;  %v491_v43 = vpack.c.bf16 %v455_v6, %v454_v5 }
  0xb4   :  { %1148 = vmax.xlane.f32.xlu0 %v1147_v50  ;;  %1052 = vmax.xlane.f32.xlu2 %v1051_v51  ;;  %v332_v9 = vpop.f32.mrf.mxu2  ;;  %v1054_v60 = vmax.f32 %v6555_v23, %v6554_v26 }
  0xb5   :  { %v4181_v10 = vadd.f32 %v3957_v42, %v332_v9  ;;  %v709_v11 = vpop.f32.mrf.mxu3 }
  0xb6   :  { %v4186_v36 = vadd.f32 %v3968_v46, %v709_v11  ;;  %v255_v40 = vpop.f32.mrf.mxu0 }
  0xb7   :  { %v6556_v50 = vmax.f32 %v4181_v10, 0.0  ;;  %v4190_v51 = vadd.f32 %v3957_v42, %v255_v40  ;;  %v632_v9 = vpop.f32.mrf.mxu1 }
  0xb8   :  { %v6551_v38 = vmax.f32 %v4186_v36, 0.0  ;;  %v4194_v44 = vadd.f32 %v3968_v46, %v632_v9 }
  0xb9   :  { %v6550_v45 = vmax.f32 %v4190_v51, 0.0  ;;  %2804 = vmatmul.msk.bf16.gmra.mxu0 %vm134_vm0, %v97_v13  ;;  %2820 = vmatmul.msk.bf16.gmra.mxu2 %vm134_vm0, %v113_v22 }
  0xba   :  { %v6549_v47 = vmax.f32 %v4194_v44, 0.0  ;;  %v1150_v53 = vmax.f32 %v6556_v50, %v6551_v38  ;;  %2844 = vmatmul.msk.bf16.gmra.mxu1 %vm134_vm0, %v475_v20  ;;  %2860 = vmatmul.msk.bf16.gmra.mxu3 %vm134_vm0, %v491_v43  ;;  %v457_v38 = vld [vmem:[%s6542_s1 + $0x1c8] sm:$0xff] }
  0xbc   :  { %1151 = vmax.xlane.f32.xlu1 %v1150_v53  ;;  %1055 = vmax.xlane.f32.xlu2 %v1054_v60  ;;  %v335_v1 = vpop.f32.mrf.mxu2  ;;  %v1057_v5 = vmax.f32 %v6550_v45, %v6549_v47  ;;  %v46_v47 = vld [vmem:[%s6541_s0 + $0xc0] sm:$0xff]  ;;  %v47_v45 = vld [vmem:[%s6541_s0 + $0xc8] sm:$0xff] }
  0xbd   :  { %v4215_v6 = vadd.f32 %v3957_v42, %v335_v1  ;;  %v712_v11 = vpop.f32.mrf.mxu3  ;;  %v78_v1 = vld [vmem:[%s6541_s0 + $0x1c0] sm:$0xff]  ;;  %v98_v16 = vpack.c.bf16 %v47_v45, %v46_v47 }
  0xbe   :  { %v4218_v13 = vadd.f32 %v3968_v46, %v712_v11  ;;  %1058 = vmax.xlane.f32.xlu0 %v1057_v5  ;;  %v257_v22 = vpop.f32.mrf.mxu0  ;;  %v79_v5 = vld [vmem:[%s6541_s0 + $0x1c8] sm:$0xff] }
  0xbf   :  { %v6553_v20 = vmax.f32 %v4215_v6, 0.0  ;;  %v4222_v43 = vadd.f32 %v3957_v42, %v257_v22  ;;  %v634_v40 = vpop.f32.mrf.mxu1  ;;  %v114_v32 = vpack.c.bf16 %v79_v5, %v78_v1 }
  0xc0   :  { %v6552_v9 = vmax.f32 %v4218_v13, 0.0  ;;  %v4226_v53 = vadd.f32 %v3968_v46, %v634_v40  ;;  %v456_v40 = vld [vmem:[%s6542_s1 + $0x1c0] sm:$0xff] }
  0xc1   :  { %v6573_v60 = vmax.f32 %v4222_v43, 0.0  ;;  %v492_v14 = vpack.c.bf16 %v457_v38, %v456_v40  ;;  %v48_v40 = vld [vmem:[%s6541_s0 + $0xd0] sm:$0xff] }
  0xc2   :  { %v6566_v11 = vmax.f32 %v4226_v53, 0.0  ;;  %v1153_v22 = vmax.f32 %v6553_v20, %v6552_v9  ;;  %v424_v9 = vld [vmem:[%s6542_s1 + $0xc0] sm:$0xff]  ;;  %v425_v20 = vld [vmem:[%s6542_s1 + $0xc8] sm:$0xff] }
  0xc3   :  { %v476_v41 = vpack.c.bf16 %v425_v20, %v424_v9 }
  0xc4   :  { %1154 = vmax.xlane.f32.xlu2 %v1153_v22  ;;  %v337_v26 = vpop.f32.mrf.mxu2  ;;  %v1060_v23 = vmax.f32 %v6573_v60, %v6566_v11 }
  0xc5   :  { %v4263_v50 = vadd.f32 %v3957_v42, %v337_v26  ;;  %v714_v33 = vpop.f32.mrf.mxu3 }
  0xc6   :  { %v4266_v12 = vadd.f32 %v3968_v46, %v714_v33  ;;  %1061 = vmax.xlane.f32.xlu1 %v1060_v23  ;;  %v260_v15 = vpop.f32.mrf.mxu0 }
  0xc7   :  { %v6572_v22 = vmax.f32 %v4263_v50, 0.0  ;;  %v4270_v39 = vadd.f32 %v3957_v42, %v260_v15  ;;  %v637_v31 = vpop.f32.mrf.mxu1 }
  0xc8   :  { %v6571_v11 = vmax.f32 %v4266_v12, 0.0  ;;  %v4274_v26 = vadd.f32 %v3968_v46, %v637_v31 }
  0xc9   :  { %v6570_v45 = vmax.f32 %v4270_v39, 0.0  ;;  %2821 = vmatmul.msk.bf16.gmra.mxu2 %vm134_vm0, %v114_v32  ;;  %2805 = vmatmul.msk.bf16.gmra.mxu0 %vm134_vm0, %v98_v16 }
  0xca   :  { %v6567_v33 = vmax.f32 %v4274_v26, 0.0  ;;  %v1156_v15 = vmax.f32 %v6572_v22, %v6571_v11  ;;  %2861 = vmatmul.msk.bf16.gmra.mxu3 %vm134_vm0, %v492_v14  ;;  %2845 = vmatmul.msk.bf16.gmra.mxu1 %vm134_vm0, %v476_v41 }
  0xcc   :  { %1157 = vmax.xlane.f32.xlu0 %v1156_v15  ;;  %v340_v31 = vpop.f32.mrf.mxu2  ;;  %v1063_v32 = vmax.f32 %v6570_v45, %v6567_v33  ;;  %v49_v15 = vld [vmem:[%s6541_s0 + $0xd8] sm:$0xff] }
  0xcd   :  { %v4291_v16 = vadd.f32 %v3957_v42, %v340_v31  ;;  %v717_v38 = vpop.f32.mrf.mxu3  ;;  %v427_v33 = vld [vmem:[%s6542_s1 + $0xd8] sm:$0xff]  ;;  %v99_v30 = vpack.c.bf16 %v49_v15, %v48_v40 }
  0xce   :  { %v4294_v23 = vadd.f32 %v3968_v46, %v717_v38  ;;  %1064 = vmax.xlane.f32.xlu2 %v1063_v32  ;;  %v262_v47 = vpop.f32.mrf.mxu0  ;;  %v426_v38 = vld [vmem:[%s6542_s1 + $0xd0] sm:$0xff] }
  0xcf   :  { %v6569_v14 = vmax.f32 %v4291_v16, 0.0  ;;  %v4298_v41 = vadd.f32 %v3957_v42, %v262_v47  ;;  %v639_v20 = vpop.f32.mrf.mxu1  ;;  %v80_v47 = vld [vmem:[%s6541_s0 + $0x1d0] sm:$0xff]  ;;  %v477_v4 = vpack.c.bf16 %v427_v33, %v426_v38 }
  0xd0   :  { %v6568_v9 = vmax.f32 %v4294_v23, 0.0  ;;  %v4302_v1 = vadd.f32 %v3968_v46, %v639_v20  ;;  %v81_v20 = vld [vmem:[%s6541_s0 + $0x1d8] sm:$0xff] }
  0xd1   :  { %v6589_v5 = vmax.f32 %v4298_v41, 0.0  ;;  %v115_v28 = vpack.c.bf16 %v81_v20, %v80_v47  ;;  %v50_v20 = vld [vmem:[%s6541_s0 + $0xe0] sm:$0xff] }
  0xd2   :  { %v6582_v31 = vmax.f32 %v4302_v1, 0.0  ;;  %v1159_v32 = vmax.f32 %v6569_v14, %v6568_v9  ;;  %v458_v9 = vld [vmem:[%s6542_s1 + $0x1d0] sm:$0xff]  ;;  %v459_v14 = vld [vmem:[%s6542_s1 + $0x1d8] sm:$0xff] }
  0xd3   :  { %v493_v2 = vpack.c.bf16 %v459_v14, %v458_v9 }
  0xd4   :  { %1160 = vmax.xlane.f32.xlu1 %v1159_v32  ;;  %v342_v45 = vpop.f32.mrf.mxu2  ;;  %v1066_v11 = vmax.f32 %v6589_v5, %v6582_v31 }
  0xd5   :  { %v4339_v22 = vadd.f32 %v3957_v42, %v342_v45  ;;  %v719_v60 = vpop.f32.mrf.mxu3 }
  0xd6   :  { %v4342_v27 = vadd.f32 %v3968_v46, %v719_v60  ;;  %1067 = vmax.xlane.f32.xlu0 %v1066_v11  ;;  %v265_v7 = vpop.f32.mrf.mxu0 }
  0xd7   :  { %v6588_v32 = vmax.f32 %v4339_v22, 0.0  ;;  %v4346_v63 = vadd.f32 %v3957_v42, %v265_v7  ;;  %v642_v56 = vpop.f32.mrf.mxu1 }
  0xd8   :  { %6858 = vst [vmem:[#allocation5_spill] sm:$0xff] %v4342_v27  ;;  %v6587_v31 = vmax.f32 %v4342_v27, 0.0  ;;  %v4350_v45 = vadd.f32 %v3968_v46, %v642_v56 }
  0xd9   :  { %6859 = vst [vmem:[#allocation6_spill] sm:$0xff] %v4346_v63  ;;  %v6586_v40 = vmax.f32 %v4346_v63, 0.0  ;;  %2806 = vmatmul.msk.bf16.gmra.mxu0 %vm134_vm0, %v99_v30  ;;  %2822 = vmatmul.msk.bf16.gmra.mxu2 %vm134_vm0, %v115_v28 }
  0xda   :  { %6860 = vst [vmem:[#allocation7_spill] sm:$0xff] %v4350_v45  ;;  %v6583_v60 = vmax.f32 %v4350_v45, 0.0  ;;  %v1162_v7 = vmax.f32 %v6588_v32, %v6587_v31  ;;  %2846 = vmatmul.msk.bf16.gmra.mxu1 %vm134_vm0, %v477_v4  ;;  %2862 = vmatmul.msk.bf16.gmra.mxu3 %vm134_vm0, %v493_v2 }
  0xdc   :  { %1163 = vmax.xlane.f32.xlu2 %v1162_v7  ;;  %v345_v56 = vpop.f32.mrf.mxu2  ;;  %v1069_v30 = vmax.f32 %v6586_v40, %v6583_v60  ;;  %v51_v7 = vld [vmem:[%s6541_s0 + $0xe8] sm:$0xff] }
  0xdd   :  { %v4367_v28 = vadd.f32 %v3957_v42, %v345_v56  ;;  %v722_v11 = vpop.f32.mrf.mxu3  ;;  %v429_v60 = vld [vmem:[%s6542_s1 + $0xe8] sm:$0xff]  ;;  %v100_v55 = vpack.c.bf16 %v51_v7, %v50_v20 }
  0xde   :  { %v4370_v33 = vadd.f32 %v3968_v46, %v722_v11  ;;  %1070 = vmax.xlane.f32.xlu1 %v1069_v30  ;;  %v267_v14 = vpop.f32.mrf.mxu0  ;;  %v428_v11 = vld [vmem:[%s6542_s1 + $0xe0] sm:$0xff] }
  0xdf   :  { %6861 = vst [vmem:[#allocation8_spill] sm:$0xff] %v4367_v28  ;;  %v6585_v4 = vmax.f32 %v4367_v28, 0.0  ;;  %v4374_v2 = vadd.f32 %v3957_v42, %v267_v14  ;;  %v644_v9 = vpop.f32.mrf.mxu1  ;;  %v82_v14 = vld [vmem:[%s6541_s0 + $0x1e0] sm:$0xff]  ;;  %v478_v63 = vpack.c.bf16 %v429_v60, %v428_v11 }
  0xe0   :  { %6862 = vst [vmem:[#allocation9_spill] sm:$0xff] %v4370_v33  ;;  %v6584_v15 = vmax.f32 %v4370_v33, 0.0  ;;  %v4378_v38 = vadd.f32 %v3968_v46, %v644_v9  ;;  %v83_v9 = vld [vmem:[%s6541_s0 + $0x1e8] sm:$0xff] }
  0xe1   :  { %6863 = vst [vmem:[#allocation10_spill] sm:$0xff] %v4374_v2  ;;  %v6607_v47 = vmax.f32 %v4374_v2, 0.0  ;;  %v116_v33 = vpack.c.bf16 %v83_v9, %v82_v14 }
  0xe2   :  { %6864 = vst [vmem:[#allocation11_spill] sm:$0xff] %v4378_v38  ;;  %v6598_v56 = vmax.f32 %v4378_v38, 0.0  ;;  %v1165_v30 = vmax.f32 %v6585_v4, %v6584_v15  ;;  %v460_v15 = vld [vmem:[%s6542_s1 + $0x1e0] sm:$0xff]  ;;  %v461_v4 = vld [vmem:[%s6542_s1 + $0x1e8] sm:$0xff] }
  0xe3   :  { %v494_v27 = vpack.c.bf16 %v461_v4, %v460_v15 }
  0xe4   :  { %1166 = vmax.xlane.f32.xlu0 %v1165_v30  ;;  %v347_v40 = vpop.f32.mrf.mxu2  ;;  %v1072_v31 = vmax.f32 %v6607_v47, %v6598_v56 }
  0xe5   :  { %v4415_v32 = vadd.f32 %v3957_v42, %v347_v40  ;;  %v724_v5 = vpop.f32.mrf.mxu3 }
  0xe6   :  { %v4418_v28 = vadd.f32 %v3968_v46, %v724_v5  ;;  %1073 = vmax.xlane.f32.xlu2 %v1072_v31  ;;  %v270_v45 = vpop.f32.mrf.mxu0 }
  0xe7   :  { %v6606_v30 = vmax.f32 %v4415_v32, 0.0  ;;  %v4422_v38 = vadd.f32 %v3957_v42, %v270_v45  ;;  %v647_v2 = vpop.f32.mrf.mxu1 }
  0xe8   :  { %v6605_v56 = vmax.f32 %v4418_v28, 0.0  ;;  %v4426_v40 = vadd.f32 %v3968_v46, %v647_v2 }
  0xe9   :  { %v6604_v20 = vmax.f32 %v4422_v38, 0.0  ;;  %2807 = vmatmul.msk.bf16.gmra.mxu0 %vm134_vm0, %v100_v55  ;;  %2823 = vmatmul.msk.bf16.gmra.mxu2 %vm134_vm0, %v116_v33 }
  0xea   :  { %v6603_v5 = vmax.f32 %v4426_v40, 0.0  ;;  %v1168_v31 = vmax.f32 %v6606_v30, %v6605_v56  ;;  %2847 = vmatmul.msk.bf16.gmra.mxu1 %vm134_vm0, %v478_v63  ;;  %2863 = vmatmul.msk.bf16.gmra.mxu3 %vm134_vm0, %v494_v27 }
  0xec   :  { %1169 = vmax.xlane.f32.xlu1 %v1168_v31  ;;  %v350_v45 = vpop.f32.mrf.mxu2  ;;  %v1075_v55 = vmax.f32 %v6604_v20, %v6603_v5 }
  0xed   :  { %v4443_v60 = vadd.f32 %v3957_v42, %v350_v45  ;;  %v727_v33 = vpop.f32.mrf.mxu3 }
  0xee   :  { %v4446_v4 = vadd.f32 %v3968_v46, %v727_v33  ;;  %1076 = vmax.xlane.f32.xlu0 %v1075_v55  ;;  %v272_v2 = vpop.f32.mrf.mxu0  ;;  %v84_v33 = vld [vmem:[%s6541_s0 + $0x1f0] sm:$0xff] }
  0xef   :  { %v6600_v63 = vmax.f32 %v4443_v60, 0.0  ;;  %v4450_v27 = vadd.f32 %v3957_v42, %v272_v2  ;;  %v649_v15 = vpop.f32.mrf.mxu1  ;;  %v85_v2 = vld [vmem:[%s6541_s0 + $0x1f8] sm:$0xff] }
  0xf0   :  { %v6599_v7 = vmax.f32 %v4446_v4, 0.0  ;;  %v4454_v11 = vadd.f32 %v3968_v46, %v649_v15  ;;  %v462_v15 = vld [vmem:[%s6542_s1 + $0x1f0] sm:$0xff] }
  0xf1   :  { %6865 = vst [vmem:[#allocation12_spill] sm:$0xff] %v4450_v27  ;;  %v6602_v14 = vmax.f32 %v4450_v27, 0.0 }
  0xf2   :  { %6866 = vst [vmem:[#allocation13_spill] sm:$0xff] %v4454_v11  ;;  %v6601_v9 = vmax.f32 %v4454_v11, 0.0  ;;  %v1171_v31 = vmax.f32 %v6600_v63, %v6599_v7  ;;  %v117_v63 = vpack.c.bf16 %v85_v2, %v84_v33 }
  0xf4   :  { %1172 = vmax.xlane.f32.xlu2 %v1171_v31  ;;  %v352_v45 = vpop.f32.mrf.mxu2  ;;  %v1078_v55 = vmax.f32 %v6602_v14, %v6601_v9  ;;  %v463_v9 = vld [vmem:[%s6542_s1 + $0x1f8] sm:$0xff] }
  0xf5   :  { %v4476_v31 = vadd.f32 %v3957_v42, %v352_v45  ;;  %v729_v7 = vpop.f32.mrf.mxu3  ;;  %v495_v20 = vpack.c.bf16 %v463_v9, %v462_v15  ;;  %v431_v15 = vld [vmem:[%s6542_s1 + $0xf8] sm:$0xff] }
  0xf6   :  { %v4482_v14 = vadd.f32 %v3968_v46, %v729_v7  ;;  %1079 = vmax.xlane.f32.xlu1 %v1078_v55  ;;  %v275_v5 = vpop.f32.mrf.mxu0 }
  0xf7   :  { %6867 = vst [vmem:[#allocation14_spill] sm:$0xff] %v4476_v31  ;;  %v6609_v56 = vmax.f32 %v4476_v31, 0.0  ;;  %v4486_v30 = vadd.f32 %v3957_v42, %v275_v5  ;;  %v652_v47 = vpop.f32.mrf.mxu1  ;;  %v52_v5 = vld [vmem:[%s6541_s0 + $0xf0] sm:$0xff] }
  0xf8   :  { %6868 = vst [vmem:[#allocation15_spill] sm:$0xff] %v4482_v14  ;;  %v6608_v45 = vmax.f32 %v4482_v14, 0.0  ;;  %v4490_v33 = vadd.f32 %v3968_v46, %v652_v47  ;;  %v53_v47 = vld [vmem:[%s6541_s0 + $0xf8] sm:$0xff]  ;;  %s3670_s0 = smov [#allocation2]  }
  0xf9   :  { %6869 = vst [vmem:[#allocation16_spill] sm:$0xff] %v4486_v30  ;;  %v6614_v2 = vmax.f32 %v4486_v30, 0.0  ;;  %2824 = vmatmul.msk.bf16.gmra.mxu2 %vm134_vm0, %v117_v63  ;;  %v430_v63 = vld [vmem:[%s6542_s1 + $0xf0] sm:$0xff]  ;;  %v101_v55 = vpack.c.bf16 %v53_v47, %v52_v5  ;;  %s2771_s1 = sshll.u32 %s3670_s0, 4  ;;  %s2772_s1 = int_to_ptr.vmem [resolvable:$true] %s2771_s1 }
  0xfa   :  { %6870 = vst [vmem:[#allocation17_spill] sm:$0xff] %v4490_v33  ;;  %v6613_v7 = vmax.f32 %v4490_v33, 0.0  ;;  %v1174_v9 = vmax.f32 %v6609_v56, %v6608_v45  ;;  %2864 = vmatmul.msk.bf16.gmra.mxu3 %vm134_vm0, %v495_v20  ;;  %v479_v56 = vpack.c.bf16 %v431_v15, %v430_v63 }
  0xfb   :  { %2808 = vmatmul.msk.bf16.gmra.mxu0 %vm134_vm0, %v101_v55 }
  0xfc   :  { %1175 = vmax.xlane.f32.xlu0 %v1174_v9  ;;  %v355_v45 = vpop.f32.mrf.mxu2  ;;  %v1081_v20 = vmax.f32 %v6614_v2, %v6613_v7  ;;  %2848 = vmatmul.msk.bf16.gmra.mxu1 %vm134_vm0, %v479_v56 }
  0xfd   :  { %v4517_v14 = vadd.f32 %v3957_v42, %v355_v45  ;;  %v732_v31 = vpop.f32.mrf.mxu3 }
  0xfe   :  { %v4521_v5 = vadd.f32 %v3968_v46, %v732_v31  ;;  %1082 = vmax.xlane.f32.xlu2 %v1081_v20  ;;  %v277_v47 = vpop.f32.mrf.mxu0  ;;  %v6875_v20 = vmax.f32 %v3971_v52, 0.0 }
  0xff   :  { %6871 = vst [vmem:[#allocation18_spill] sm:$0xff] %v4517_v14  ;;  %v6620_v9 = vmax.f32 %v4517_v14, 0.0  ;;  %v4526_v33 = vadd.f32 %v3957_v42, %v277_v47  ;;  %v654_v7 = vpop.f32.mrf.mxu1  ;;  %v6876_v47 = vmax.f32 %v3974_v54, 0.0 }
 0x100   :  { %6872 = vst [vmem:[#allocation19_spill] sm:$0xff] %v4521_v5  ;;  %v6619_v63 = vmax.f32 %v4521_v5, 0.0  ;;  %v4530_v45 = vadd.f32 %v3968_v46, %v654_v7 }
 0x101   :  { %6873 = vst [vmem:[#allocation20_spill] sm:$0xff] %v4526_v33  ;;  %v6622_v55 = vmax.f32 %v4526_v33, 0.0  ;;  %v1041_v15 = vpop.xlane.xlu0 %1040 }
 0x102   :  { %6874 = vst [vmem:[#allocation21_spill] sm:$0xff] %v4530_v45  ;;  %v6621_v31 = vmax.f32 %v4530_v45, 0.0  ;;  %v1231_v2 = vsub.f32 %v6875_v20, %v1041_v15  ;;  %v1177_v56 = vmax.f32 %v6620_v9, %v6619_v63  ;;  %v1232_v30 = vsub.f32 %v6876_v47, %v1041_v15 }
 0x104   :  { %1178 = vmax.xlane.f32.xlu1 %v1177_v56  ;;  %v357_v11 = vpop.f32.mrf.mxu2  ;;  %v1084_v7 = vmax.f32 %v6622_v55, %v6621_v31  ;;  %v1359_v20 = vmul.f32 1.442695, %v1231_v2  ;;  %v1361_v9 = vmul.f32 1.442695, %v1232_v30  ;;  %v6879_v2 = vmax.f32 %v3987_v59, 0.0 }
 0x105   :  { %v4547_v27 = vadd.f32 %v3957_v42, %v357_v11  ;;  %v734_v52 = vpop.f32.mrf.mxu3  ;;  %v6882_v31 = vmax.f32 %v3998_v3, 0.0 }
 0x106   :  { %v4550_v5 = vadd.f32 %v3968_v46, %v734_v52  ;;  %1085 = vmax.xlane.f32.xlu0 %v1084_v7  ;;  %v280_v63 = vpop.f32.mrf.mxu0  ;;  %v6880_v52 = vmax.f32 %v3990_v61, 0.0  ;;  %2876 = vpow2.f32 %v1359_v20 }
 0x107   :  { %6877 = vst [vmem:[#allocation22_spill] sm:$0xff] %v4547_v27  ;;  %v657_v15 = vpop.f32.mrf.mxu1  ;;  %v1137_v56 = vpop.xlane.xlu2 %1136  ;;  %v4554_v47 = vadd.f32 %v3957_v42, %v280_v63  ;;  %v6881_v63 = vmax.f32 %v3994_v0, 0.0  ;;  %2878 = vpow2.f32 %v1361_v9  ;;  %v6884_v59 = vmax.f32 %v4547_v27, 0.0 }
 0x108   :  { %6878 = vst [vmem:[#allocation23_spill] sm:$0xff] %v4550_v5  ;;  %v4558_v11 = vadd.f32 %v3968_v46, %v657_v15  ;;  %v1295_v55 = vsub.f32 %v6879_v2, %v1137_v56  ;;  %v1296_v7 = vsub.f32 %v6880_v52, %v1137_v56  ;;  %v6883_v14 = vmax.f32 %v4550_v5, 0.0 }
 0x109   :  { %v6627_v30 = vmax.f32 %v4554_v47, 0.0  ;;  %v1044_v45 = vpop.xlane.xlu0 %1043 }
 0x10a   :  { %v6626_v54 = vmax.f32 %v4558_v11, 0.0  ;;  %v1233_v33 = vsub.f32 %v6881_v63, %v1044_v45  ;;  %v1234_v15 = vsub.f32 %v6882_v31, %v1044_v45  ;;  %v1180_v2 = vmax.f32 %v6884_v59, %v6883_v14 }
 0x10b   :  { %v1487_v61 = vmul.f32 1.442695, %v1295_v55  ;;  %v1489_v52 = vmul.f32 1.442695, %v1296_v7 }
 0x10c   :  { %v360_v56 = vpop.f32.mrf.mxu2  ;;  %v1087_v20 = vmax.f32 %v6627_v30, %v6626_v54  ;;  %1181 = vmax.xlane.f32.xlu2 %v1180_v2  ;;  %v1363_v3 = vmul.f32 1.442695, %v1233_v33  ;;  %v1365_v14 = vmul.f32 1.442695, %v1234_v15  ;;  %v4588_v54 = vpop.eup %2876 }
 0x10d   :  { %v4579_v0 = vadd.f32 %v3957_v42, %v360_v56  ;;  %v737_v9 = vpop.f32.mrf.mxu3  ;;  %6887 = vst [vmem:[#allocation26_spill] sm:$0xff] %v4588_v54  ;;  %2880 = vpow2.f32 %v1487_v61  ;;  %v4594_v33 = vpop.eup %2878  ;;  %v6891_v61 = vmax.f32 %v4038_v21, 0.0 }
 0x10e   :  { %v4582_v45 = vadd.f32 %v3968_v46, %v737_v9  ;;  %1088 = vmax.xlane.f32.xlu1 %v1087_v20  ;;  %v282_v31 = vpop.f32.mrf.mxu0  ;;  %6889 = vst [vmem:[#allocation28_spill] sm:$0xff] %v4594_v33  ;;  %2882 = vpow2.f32 %v1489_v52  ;;  %v1615_v56 = vadd.f32 %v4594_v33, %v4588_v54 }
 0x10f   :  { %v4586_v63 = vadd.f32 %v3957_v42, %v282_v31  ;;  %v659_v59 = vpop.f32.mrf.mxu1  ;;  %2884 = vpow2.f32 %v1363_v3  ;;  %v6890_v31 = vmax.f32 %v4035_v17, 0.0 }
 0x110   :  { %6885 = vst [vmem:[#allocation24_spill] sm:$0xff] %v4582_v45  ;;  %v6630_v7 = vmax.f32 %v4582_v45, 0.0  ;;  %v4592_v2 = vadd.f32 %v3968_v46, %v659_v59  ;;  %2886 = vpow2.f32 %v1365_v14  ;;  %v6892_v59 = vmax.f32 %v4579_v0, 0.0 }
 0x111   :  { %6886 = vst [vmem:[#allocation25_spill] sm:$0xff] %v4586_v63  ;;  %v1140_v15 = vpop.xlane.xlu0 %1139  ;;  %v1047_v20 = vpop.xlane.xlu1 %1046  ;;  %v6893_v3 = vmax.f32 %v4586_v63, 0.0 }
 0x112   :  { %6888 = vst [vmem:[#allocation27_spill] sm:$0xff] %v4592_v2  ;;  %v6632_v9 = vmax.f32 %v4592_v2, 0.0  ;;  %v1297_v30 = vsub.f32 %v6890_v31, %v1140_v15  ;;  %v1298_v55 = vsub.f32 %v6891_v61, %v1140_v15  ;;  %v1183_v5 = vmax.f32 %v6892_v59, %v6630_v7 }
 0x113   :  { %v4615_v14 = vpop.eup %2880  ;;  %v6895_v2 = vmax.f32 %v4041_v25, 0.0 }
 0x114   :  { %v362_v52 = vpop.f32.mrf.mxu2  ;;  %v1090_v27 = vmax.f32 %v6893_v3, %v6632_v9  ;;  %1184 = vmax.xlane.f32.xlu0 %v1183_v5  ;;  %v1491_v15 = vmul.f32 1.442695, %v1297_v30  ;;  %v4620_v59 = vpop.eup %2882  ;;  %v1493_v7 = vmul.f32 1.442695, %v1298_v55 }
 0x115   :  { %v4613_v17 = vadd.f32 %v3957_v42, %v362_v52  ;;  %v739_v21 = vpop.f32.mrf.mxu3  ;;  %6894 = vst [vmem:[#allocation29_spill] sm:$0xff] %v4620_v59  ;;  %v1235_v3 = vsub.f32 %v6895_v2, %v1047_v20  ;;  %v4624_v9 = vpop.eup %2884  ;;  %v6897_v52 = vmax.f32 %v4046_v29, 0.0  ;;  %v6900_v2 = vmax.f32 %v4063_v35, 0.0 }
 0x116   :  { %v4618_v31 = vadd.f32 %v3968_v46, %v739_v21  ;;  %1616 = vadd.xlane.f32.xlu1 %v1615_v56  ;;  %1091 = vmax.xlane.f32.xlu2 %v1090_v27  ;;  %v285_v61 = vpop.f32.mrf.mxu0  ;;  %6896 = vst [vmem:[#allocation30_spill] sm:$0xff] %v4624_v9  ;;  %v4630_v33 = vpop.eup %2886  ;;  %2888 = vpow2.f32 %v1491_v15  ;;  %v1711_v30 = vadd.f32 %v4620_v59, %v4615_v14 }
 0x117   :  { %v662_v5 = vpop.f32.mrf.mxu1  ;;  %v1236_v63 = vsub.f32 %v6897_v52, %v1047_v20  ;;  %6898 = vst [vmem:[#allocation31_spill] sm:$0xff] %v4630_v33  ;;  %v4633_v27 = vadd.f32 %v3957_v42, %v285_v61  ;;  %2890 = vpow2.f32 %v1493_v7  ;;  %v1367_v29 = vmul.f32 1.442695, %v1235_v3 }
 0x118   :  { %v4636_v55 = vadd.f32 %v3968_v46, %v662_v5  ;;  %v6901_v20 = vmax.f32 %v4066_v37, 0.0  ;;  %v6902_v61 = vmax.f32 %v4618_v31, 0.0  ;;  %v6903_v5 = vmax.f32 %v4613_v17, 0.0 }
 0x119   :  { %v1143_v25 = vpop.xlane.xlu1 %1142  ;;  %v1369_v21 = vmul.f32 1.442695, %v1236_v63  ;;  %v1618_v15 = vadd.f32 %v4630_v33, %v4624_v9  ;;  %2892 = vpow2.f32 %v1367_v29  ;;  %v6907_v29 = vmax.f32 %v4099_v57, 0.0 }
 0x11a   :  { %6899 = vst [vmem:[#allocation32_spill] sm:$0xff] %v4636_v55  ;;  %v1299_v56 = vsub.f32 %v6900_v2, %v1143_v25  ;;  %v1300_v52 = vsub.f32 %v6901_v20, %v1143_v25  ;;  %v1186_v45 = vmax.f32 %v6903_v5, %v6902_v61  ;;  %v6642_v7 = vmax.f32 %v4636_v55, 0.0 }
 0x11b   :  { %2894 = vpow2.f32 %v1369_v21 }
 0x11c   :  { %v365_v54 = vpop.f32.mrf.mxu2  ;;  %1712 = vadd.xlane.f32.xlu0 %v1711_v30  ;;  %v1495_v25 = vmul.f32 1.442695, %v1299_v56  ;;  %v1497_v20 = vmul.f32 1.442695, %v1300_v52  ;;  %v4659_v33 = vpop.eup %2888 }
 0x11d   :  { %v4653_v37 = vadd.f32 %v3957_v42, %v365_v54  ;;  %v742_v3 = vpop.f32.mrf.mxu3  ;;  %v4662_v30 = vpop.eup %2890 }
 0x11e   :  { %v4656_v63 = vadd.f32 %v3968_v46, %v742_v3  ;;  %1187 = vmax.xlane.f32.xlu1 %v1186_v45  ;;  %1619 = vadd.xlane.f32.xlu2 %v1618_v15  ;;  %v287_v2 = vpop.f32.mrf.mxu0  ;;  %v6906_v45 = vmax.f32 %v4633_v27, 0.0  ;;  %2896 = vpow2.f32 %v1495_v25  ;;  %v6908_v3 = vmax.f32 %v4102_v58, 0.0 }
 0x11f   :  { %6904 = vst [vmem:[#allocation33_spill] sm:$0xff] %v4653_v37  ;;  %v664_v5 = vpop.f32.mrf.mxu1  ;;  %v1146_v35 = vpop.xlane.xlu2 %1145  ;;  %2898 = vpow2.f32 %v1497_v20  ;;  %v6909_v21 = vmax.f32 %v4653_v37, 0.0  ;;  %v4680_v55 = vadd.f32 %v3957_v42, %v287_v2  ;;  %v1714_v25 = vadd.f32 %v4662_v30, %v4659_v33 }
 0x120   :  { %6905 = vst [vmem:[#allocation34_spill] sm:$0xff] %v4656_v63  ;;  %v6641_v54 = vmax.f32 %v4656_v63, 0.0  ;;  %v1093_v15 = vmax.f32 %v6906_v45, %v6642_v7  ;;  %v4677_v59 = vadd.f32 %v3968_v46, %v664_v5  ;;  %v4684_v57 = vpop.eup %2892  ;;  %v6913_v2 = vmax.f32 %v4105_v62, 0.0 }
 0x121   :  { %v1050_v56 = vpop.xlane.xlu1 %1049  ;;  %6910 = vst [vmem:[#allocation35_spill] sm:$0xff] %v4684_v57  ;;  %v4686_v20 = vpop.eup %2894  ;;  %v6917_v62 = vmax.f32 %v4117_v18, 0.0 }
 0x122   :  { %v1237_v52 = vsub.f32 %v6907_v29, %v1050_v56  ;;  %v1238_v61 = vsub.f32 %v6908_v3, %v1050_v56  ;;  %v1189_v9 = vmax.f32 %v6909_v21, %v6641_v54  ;;  %6911 = vst [vmem:[#allocation36_spill] sm:$0xff] %v4686_v20  ;;  %v1301_v21 = vsub.f32 %v6913_v2, %v1146_v35 }
 0x123   :  { %v6920_v18 = vmax.f32 %v4677_v59, 0.0 }
 0x124   :  { %1094 = vmax.xlane.f32.xlu0 %v1093_v15  ;;  %v1371_v58 = vmul.f32 1.442695, %v1237_v52  ;;  %v1373_v56 = vmul.f32 1.442695, %v1238_v61  ;;  %v367_v45 = vpop.f32.mrf.mxu2  ;;  %v4688_v3 = vpop.eup %2896  ;;  %v6915_v15 = vmax.f32 %v4108_v8, 0.0  ;;  %v1621_v61 = vadd.f32 %v4686_v20, %v4684_v57 }
 0x125   :  { %v744_v29 = vpop.f32.mrf.mxu3  ;;  %6912 = vst [vmem:[#allocation37_spill] sm:$0xff] %v4688_v3  ;;  %v4694_v63 = vpop.eup %2898  ;;  %v4709_v5 = vadd.f32 %v3957_v42, %v367_v45 }
 0x126   :  { %1715 = vadd.xlane.f32.xlu1 %v1714_v25  ;;  %1190 = vmax.xlane.f32.xlu2 %v1189_v9  ;;  %6914 = vst [vmem:[#allocation38_spill] sm:$0xff] %v4694_v63  ;;  %v1302_v52 = vsub.f32 %v6915_v15, %v1146_v35  ;;  %v290_v9 = vpop.f32.mrf.mxu0  ;;  %2900 = vpow2.f32 %v1371_v58  ;;  %v4712_v8 = vadd.f32 %v3968_v46, %v744_v29  ;;  %v6919_v35 = vmax.f32 %v4120_v19, 0.0 }
 0x127   :  { %v1053_v7 = vpop.xlane.xlu2 %1052  ;;  %v667_v25 = vpop.f32.mrf.mxu1  ;;  %v4706_v54 = vadd.f32 %v3957_v42, %v290_v9  ;;  %2902 = vpow2.f32 %v1373_v56  ;;  %v1499_v58 = vmul.f32 1.442695, %v1301_v21  ;;  %v6652_v19 = vmax.f32 %v4709_v5, 0.0 }
 0x128   :  { %v4701_v37 = vadd.f32 %v3968_v46, %v667_v25  ;;  %v1239_v2 = vsub.f32 %v6917_v62, %v1053_v7  ;;  %v1240_v15 = vsub.f32 %v6919_v35, %v1053_v7  ;;  %v1717_v25 = vadd.f32 %v4694_v63, %v4688_v3  ;;  %v1149_v45 = vpop.xlane.xlu0 %1148 }
 0x129   :  { %6918 = vst [vmem:[#allocation40_spill] sm:$0xff] %v4706_v54  ;;  %v6921_v62 = vmax.f32 %v4680_v55, 0.0  ;;  %v1501_v20 = vmul.f32 1.442695, %v1302_v52  ;;  %v6650_v29 = vmax.f32 %v4706_v54, 0.0  ;;  %v6651_v7 = vmax.f32 %v4712_v8, 0.0 }
 0x12a   :  { %6916 = vst [vmem:[#allocation39_spill] sm:$0xff] %v4701_v37  ;;  %v6649_v56 = vmax.f32 %v4701_v37, 0.0  ;;  %v1375_v57 = vmul.f32 1.442695, %v1239_v2  ;;  %v1377_v21 = vmul.f32 1.442695, %v1240_v15  ;;  %2904 = vpow2.f32 %v1499_v58 }
 0x12b   :  { %v1096_v9 = vmax.f32 %v6921_v62, %v6920_v18  ;;  %2906 = vpow2.f32 %v1501_v20  ;;  %v6924_v58 = vmax.f32 %v4138_v34, 0.0 }
 0x12c   :  { %1622 = vadd.xlane.f32.xlu0 %v1621_v61  ;;  %v370_v35 = vpop.f32.mrf.mxu2  ;;  %v4726_v3 = vpop.eup %2900  ;;  %v6923_v61 = vmax.f32 %v4133_v24, 0.0  ;;  %2908 = vpow2.f32 %v1375_v57  ;;  %v1099_v15 = vmax.f32 %v6650_v29, %v6649_v56  ;;  %v1192_v24 = vmax.f32 %v6652_v19, %v6651_v7 }
 0x12d   :  { %v747_v63 = vpop.f32.mrf.mxu3  ;;  %v4728_v52 = vpop.eup %2902  ;;  %v1304_v62 = vsub.f32 %v6924_v58, %v1149_v45  ;;  %2910 = vpow2.f32 %v1377_v21  ;;  %v6926_v7 = vmax.f32 %v4181_v10, 0.0 }
 0x12e   :  { %1718 = vadd.xlane.f32.xlu2 %v1717_v25  ;;  %1097 = vmax.xlane.f32.xlu1 %v1096_v9  ;;  %6922 = vst [vmem:[#allocation41_spill] sm:$0xff] %v4728_v52  ;;  %v1303_v2 = vsub.f32 %v6923_v61, %v1149_v45  ;;  %v4733_v25 = vadd.f32 %v3957_v42, %v370_v35  ;;  %v292_v56 = vpop.f32.mrf.mxu0 }
 0x12f   :  { %v4736_v18 = vadd.f32 %v3968_v46, %v747_v63  ;;  %v1624_v57 = vadd.f32 %v4728_v52, %v4726_v3  ;;  %v1152_v20 = vpop.xlane.xlu1 %1151  ;;  %v1056_v34 = vpop.xlane.xlu2 %1055  ;;  %v1505_v21 = vmul.f32 1.442695, %v1304_v62 }
 0x130   :  { %v4750_v63 = vpop.eup %2904  ;;  %v1503_v9 = vmul.f32 1.442695, %v1303_v2  ;;  %v669_v58 = vpop.f32.mrf.mxu1  ;;  %v6928_v2 = vmax.f32 %v4152_v48, 0.0  ;;  %v6931_v52 = vmax.f32 %v4733_v25, 0.0  ;;  %v6932_v48 = vmax.f32 %v4186_v36, 0.0 }
 0x131   :  { %v4754_v45 = vpop.eup %2906  ;;  %v6930_v54 = vmax.f32 %v4736_v18, 0.0 }
 0x132   :  { %v4756_v29 = vpop.eup %2908  ;;  %v1241_v35 = vsub.f32 %v6928_v2, %v1056_v34  ;;  %2912 = vpow2.f32 %v1503_v9  ;;  %v1720_v62 = vadd.f32 %v4754_v45, %v4750_v63  ;;  %v1306_v2 = vsub.f32 %v6932_v48, %v1152_v20 }
 0x133   :  { %6925 = vst [vmem:[#allocation42_spill] sm:$0xff] %v4756_v29  ;;  %v4760_v19 = vpop.eup %2910  ;;  %v1195_v10 = vmax.f32 %v6931_v52, %v6930_v54  ;;  %2914 = vpow2.f32 %v1505_v21  ;;  %v4778_v9 = vadd.f32 %v3957_v42, %v292_v56 }
 0x134   :  { %1193 = vmax.xlane.f32.xlu0 %v1192_v24  ;;  %v1305_v24 = vsub.f32 %v6926_v7, %v1152_v20  ;;  %6927 = vst [vmem:[#allocation43_spill] sm:$0xff] %v4760_v19  ;;  %v372_v37 = vpop.f32.mrf.mxu2  ;;  %v4773_v7 = vadd.f32 %v3968_v46, %v669_v58  ;;  %v1627_v54 = vadd.f32 %v4760_v19, %v4756_v29  ;;  %v1379_v52 = vmul.f32 1.442695, %v1241_v35  ;;  %v1059_v58 = vpop.xlane.xlu0 %1058 }
 0x135   :  { %v749_v61 = vpop.f32.mrf.mxu3  ;;  %v1509_v56 = vmul.f32 1.442695, %v1306_v2  ;;  %v6658_v20 = vmax.f32 %v4778_v9, 0.0 }
 0x136   :  { %1625 = vadd.xlane.f32.xlu1 %v1624_v57  ;;  %1100 = vmax.xlane.f32.xlu2 %v1099_v15  ;;  %v6929_v15 = vmax.f32 %v4155_v49, 0.0  ;;  %v1507_v49 = vmul.f32 1.442695, %v1305_v24  ;;  %v6657_v36 = vmax.f32 %v4773_v7, 0.0 }
 0x138   :  { %v1242_v57 = vsub.f32 %v6929_v15, %v1056_v34  ;;  %v4781_v34 = vadd.f32 %v3957_v42, %v372_v37  ;;  %v4784_v15 = vadd.f32 %v3968_v46, %v749_v61  ;;  %v672_v24 = vpop.f32.mrf.mxu1  ;;  %v295_v37 = vpop.f32.mrf.mxu0  ;;  %2916 = vpow2.f32 %v1507_v49 }
 0x139   :  { %v4790_v48 = vpop.eup %2912  ;;  %2918 = vpow2.f32 %v1379_v52  ;;  %v4802_v2 = vadd.f32 %v3957_v42, %v295_v37  ;;  %v6938_v49 = vmax.f32 %v4194_v44, 0.0  ;;  %v1102_v61 = vmax.f32 %v6658_v20, %v6657_v36  ;;  %v1155_v52 = vpop.xlane.xlu2 %1154 }
 0x13a   :  { %6933 = vst [vmem:[#allocation44_spill] sm:$0xff] %v4781_v34  ;;  %v1381_v21 = vmul.f32 1.442695, %v1242_v57  ;;  %v6661_v19 = vmax.f32 %v4784_v15, 0.0  ;;  %v4794_v35 = vpop.eup %2914  ;;  %v6937_v57 = vmax.f32 %v4190_v51, 0.0 }
 0x13b   :  { %6934 = vst [vmem:[#allocation45_spill] sm:$0xff] %v4784_v15  ;;  %v1723_v51 = vadd.f32 %v4794_v35, %v4790_v48 }
 0x13c   :  { %1721 = vadd.xlane.f32.xlu0 %v1720_v62  ;;  %6935 = vst [vmem:[#allocation46_spill] sm:$0xff] %v4790_v48  ;;  %2920 = vpow2.f32 %v1381_v21  ;;  %v1243_v62 = vsub.f32 %v6937_v57, %v1059_v58  ;;  %v6939_v21 = vmax.f32 %v4781_v34, 0.0  ;;  %v375_v37 = vpop.f32.mrf.mxu2  ;;  %v6943_v34 = vmax.f32 %v4218_v13, 0.0 }
 0x13d   :  { %6936 = vst [vmem:[#allocation47_spill] sm:$0xff] %v4794_v35  ;;  %2922 = vpow2.f32 %v1509_v56  ;;  %v752_v56 = vpop.f32.mrf.mxu3  ;;  %v1062_v35 = vpop.xlane.xlu1 %1061  ;;  %v6949_v13 = vmax.f32 %v4226_v53, 0.0 }
 0x13e   :  { %1196 = vmax.xlane.f32.xlu1 %v1195_v10  ;;  %1628 = vadd.xlane.f32.xlu2 %v1627_v54  ;;  %v4799_v10 = vadd.f32 %v3968_v46, %v672_v24  ;;  %v1244_v54 = vsub.f32 %v6938_v49, %v1059_v58  ;;  %v1198_v24 = vmax.f32 %v6939_v21, %v6661_v19  ;;  %v4816_v57 = vpop.eup %2916  ;;  %v1383_v44 = vmul.f32 1.442695, %v1243_v62 }
 0x13f   :  { %6940 = vst [vmem:[#allocation48_spill] sm:$0xff] %v4816_v57  ;;  %v4820_v36 = vpop.eup %2918  ;;  %v6941_v21 = vmax.f32 %v4215_v6, 0.0  ;;  %v1308_v62 = vsub.f32 %v6943_v34, %v1155_v52  ;;  %v4831_v58 = vadd.f32 %v3957_v42, %v375_v37  ;;  %v1246_v34 = vsub.f32 %v6949_v13, %v1062_v35 }
 0x140   :  { %v1385_v20 = vmul.f32 1.442695, %v1244_v54  ;;  %v674_v49 = vpop.f32.mrf.mxu1  ;;  %2924 = vpow2.f32 %v1383_v44  ;;  %v6946_v54 = vmax.f32 %v4222_v43, 0.0  ;;  %v6947_v6 = vmax.f32 %v4799_v10, 0.0 }
 0x141   :  { %6944 = vst [vmem:[#allocation50_spill] sm:$0xff] %v4831_v58 }
 0x142   :  { %v4822_v15 = vpop.eup %2920  ;;  %v1245_v48 = vsub.f32 %v6946_v54, %v1062_v35  ;;  %2926 = vpow2.f32 %v1385_v20  ;;  %v1513_v54 = vmul.f32 1.442695, %v1308_v62  ;;  %v1158_v35 = vpop.xlane.xlu0 %1157 }
 0x143   :  { %v4826_v19 = vpop.eup %2922 }
 0x144   :  { %1103 = vmax.xlane.f32.xlu0 %v1102_v61  ;;  %v1307_v61 = vsub.f32 %v6941_v21, %v1155_v52  ;;  %6942 = vst [vmem:[#allocation49_spill] sm:$0xff] %v4826_v19  ;;  %v6948_v21 = vmax.f32 %v4802_v2, 0.0  ;;  %v1630_v52 = vadd.f32 %v4822_v15, %v4820_v36  ;;  %v1726_v43 = vadd.f32 %v4826_v19, %v4816_v57 }
 0x145   :  { %v1387_v53 = vmul.f32 1.442695, %v1245_v48 }
 0x146   :  { %1724 = vadd.xlane.f32.xlu1 %v1723_v51  ;;  %1199 = vmax.xlane.f32.xlu2 %v1198_v24  ;;  %v4834_v51 = vadd.f32 %v3968_v46, %v752_v56  ;;  %v297_v24 = vpop.f32.mrf.mxu0  ;;  %v1105_v29 = vmax.f32 %v6948_v21, %v6947_v6  ;;  %v1511_v37 = vmul.f32 1.442695, %v1307_v61  ;;  %v4847_v56 = vadd.f32 %v3968_v46, %v674_v49  ;;  %v377_v21 = vpop.f32.mrf.mxu2 }
 0x147   :  { %v4850_v44 = vadd.f32 %v3957_v42, %v297_v24  ;;  %v6667_v6 = vmax.f32 %v4831_v58, 0.0  ;;  %v1389_v61 = vmul.f32 1.442695, %v1246_v34  ;;  %v754_v49 = vpop.f32.mrf.mxu3  ;;  %v4856_v13 = vpop.eup %2924  ;;  %v4871_v24 = vadd.f32 %v3957_v42, %v377_v21 }
 0x148   :  { %6945 = vst [vmem:[#allocation51_spill] sm:$0xff] %v4834_v51  ;;  %v6666_v20 = vmax.f32 %v4834_v51, 0.0  ;;  %2928 = vpow2.f32 %v1511_v37  ;;  %v4860_v62 = vpop.eup %2926  ;;  %v4874_v19 = vadd.f32 %v3968_v46, %v754_v49 }
 0x149   :  { %6950 = vst [vmem:[#allocation52_spill] sm:$0xff] %v4847_v56  ;;  %2930 = vpow2.f32 %v1513_v54  ;;  %v1633_v54 = vadd.f32 %v4860_v62, %v4856_v13 }
 0x14a   :  { %6951 = vst [vmem:[#allocation53_spill] sm:$0xff] %v4850_v44  ;;  %v1201_v48 = vmax.f32 %v6667_v6, %v6666_v20  ;;  %2932 = vpow2.f32 %v1387_v53  ;;  %v6958_v20 = vmax.f32 %v4847_v56, 0.0  ;;  %v6959_v53 = vmax.f32 %v4850_v44, 0.0 }
 0x14b   :  { %6952 = vst [vmem:[#allocation54_spill] sm:$0xff] %v4856_v13  ;;  %2934 = vpow2.f32 %v1389_v61  ;;  %v1065_v61 = vpop.xlane.xlu2 %1064 }
 0x14c   :  { %1631 = vadd.xlane.f32.xlu0 %v1630_v52  ;;  %6953 = vst [vmem:[#allocation55_spill] sm:$0xff] %v4860_v62  ;;  %v6955_v52 = vmax.f32 %v4266_v12, 0.0  ;;  %v6963_v62 = vmax.f32 %v4270_v39, 0.0  ;;  %v6968_v39 = vmax.f32 %v4291_v16, 0.0 }
 0x14d   :  { %6956 = vst [vmem:[#allocation56_spill] sm:$0xff] %v4871_v24 }
 0x14e   :  { %1727 = vadd.xlane.f32.xlu2 %v1726_v43  ;;  %1106 = vmax.xlane.f32.xlu1 %v1105_v29  ;;  %v6954_v29 = vmax.f32 %v4263_v50, 0.0  ;;  %v1310_v37 = vsub.f32 %v6955_v52, %v1158_v35  ;;  %v300_v43 = vpop.f32.mrf.mxu0  ;;  %6957 = vst [vmem:[#allocation57_spill] sm:$0xff] %v4874_v19  ;;  %v1108_v50 = vmax.f32 %v6959_v53, %v6958_v20  ;;  %v4882_v12 = vpop.eup %2928 }
 0x14f   :  { %6960 = vst [vmem:[#allocation58_spill] sm:$0xff] %v4882_v12  ;;  %v4884_v21 = vpop.eup %2930  ;;  %v1161_v52 = vpop.xlane.xlu1 %1160  ;;  %v1247_v56 = vsub.f32 %v6963_v62, %v1065_v61  ;;  %v4900_v13 = vadd.f32 %v3957_v42, %v300_v43  ;;  %v6972_v43 = vmax.f32 %v4874_v19, 0.0 }
 0x150   :  { %v1309_v34 = vsub.f32 %v6954_v29, %v1158_v35  ;;  %v677_v29 = vpop.f32.mrf.mxu1  ;;  %6961 = vst [vmem:[#allocation59_spill] sm:$0xff] %v4884_v21  ;;  %v1517_v49 = vmul.f32 1.442695, %v1310_v37  ;;  %v4886_v6 = vpop.eup %2932  ;;  %v1311_v62 = vsub.f32 %v6968_v39, %v1161_v52 }
 0x151   :  { %6962 = vst [vmem:[#allocation60_spill] sm:$0xff] %v4886_v6  ;;  %v4892_v53 = vpop.eup %2934  ;;  %v757_v37 = vpop.f32.mrf.mxu3 }
 0x152   :  { %v1515_v35 = vmul.f32 1.442695, %v1309_v34  ;;  %6964 = vst [vmem:[#allocation61_spill] sm:$0xff] %v4892_v53  ;;  %v4908_v20 = vadd.f32 %v3968_v46, %v757_v37 }
 0x153   :  { %6967 = vst [vmem:[#allocation63_spill] sm:$0xff] %v4900_v13  ;;  %v1164_v37 = vpop.xlane.xlu2 %1163 }
 0x154   :  { %1202 = vmax.xlane.f32.xlu0 %v1201_v48  ;;  %v6965_v48 = vmax.f32 %v4274_v26, 0.0  ;;  %2936 = vpow2.f32 %v1515_v35  ;;  %6970 = vst [vmem:[#allocation65_spill] sm:$0xff] %v4908_v20  ;;  %v6971_v26 = vmax.f32 %v4294_v23, 0.0  ;;  %v6973_v35 = vmax.f32 %v4871_v24, 0.0 }
 0x155   :  { %2938 = vpow2.f32 %v1517_v49  ;;  %v6976_v49 = vmax.f32 %v4298_v41, 0.0 }
 0x156   :  { %1634 = vadd.xlane.f32.xlu1 %v1633_v54  ;;  %1109 = vmax.xlane.f32.xlu2 %v1108_v50  ;;  %v1248_v34 = vsub.f32 %v6965_v48, %v1065_v61  ;;  %v380_v54 = vpop.f32.mrf.mxu2  ;;  %v4897_v50 = vadd.f32 %v3968_v46, %v677_v29  ;;  %v1312_v61 = vsub.f32 %v6971_v26, %v1161_v52  ;;  %v1391_v48 = vmul.f32 1.442695, %v1247_v56  ;;  %v302_v23 = vpop.f32.mrf.mxu0 }
 0x157   :  { %v4905_v44 = vadd.f32 %v3957_v42, %v380_v54  ;;  %v1729_v29 = vadd.f32 %v4884_v21, %v4882_v12  ;;  %v1204_v16 = vmax.f32 %v6973_v35, %v6972_v43  ;;  %v1636_v54 = vadd.f32 %v4892_v53, %v4886_v6  ;;  %v1068_v26 = vpop.xlane.xlu0 %1067 }
 0x158   :  { %6966 = vst [vmem:[#allocation62_spill] sm:$0xff] %v4897_v50  ;;  %v1393_v39 = vmul.f32 1.442695, %v1248_v34  ;;  %v1519_v52 = vmul.f32 1.442695, %v1311_v62  ;;  %v679_v12 = vpop.f32.mrf.mxu1  ;;  %2940 = vpow2.f32 %v1391_v48  ;;  %v1071_v62 = vpop.xlane.xlu1 %1070  ;;  %v6977_v53 = vmax.f32 %v4897_v50, 0.0 }
 0x159   :  { %6969 = vst [vmem:[#allocation64_spill] sm:$0xff] %v4905_v44  ;;  %v1521_v43 = vmul.f32 1.442695, %v1312_v61  ;;  %v6978_v21 = vmax.f32 %v4900_v13, 0.0  ;;  %v6981_v48 = vmax.f32 %v4905_v44, 0.0  ;;  %v4941_v41 = vadd.f32 %v3968_v46, %v679_v12 }
 0x15a   :  { %v4924_v35 = vpop.eup %2936  ;;  %2942 = vpow2.f32 %v1393_v39  ;;  %v4944_v39 = vadd.f32 %v3957_v42, %v302_v23  ;;  %v6986_v12 = vmax.f32 %v4339_v22, 0.0 }
 0x15b   :  { %6974 = vst [vmem:[#allocation66_spill] sm:$0xff] %v4924_v35  ;;  %v4926_v34 = vpop.eup %2938  ;;  %v1111_v56 = vmax.f32 %v6978_v21, %v6977_v53  ;;  %2944 = vpow2.f32 %v1519_v52  ;;  %v1074_v22 = vpop.xlane.xlu2 %1073 }
 0x15c   :  { %1730 = vadd.xlane.f32.xlu0 %v1729_v29  ;;  %6975 = vst [vmem:[#allocation67_spill] sm:$0xff] %v4926_v34  ;;  %v1249_v29 = vsub.f32 %v6976_v49, %v1068_v26  ;;  %2946 = vpow2.f32 %v1521_v43  ;;  %v1732_v49 = vadd.f32 %v4926_v34, %v4924_v35  ;;  %v1313_v43 = vsub.f32 %v6986_v12, %v1164_v37  ;;  %v6995_v35 = vld [vmem:[#allocation7_spill] sm:$0xff] }
 0x15d   :  { %6982 = vst [vmem:[#allocation68_spill] sm:$0xff] %v4941_v41  ;;  %v7000_v19 = vmax.f32 %v4944_v39, 0.0 }
 0x15e   :  { %1205 = vmax.xlane.f32.xlu1 %v1204_v16  ;;  %1637 = vadd.xlane.f32.xlu2 %v1636_v54  ;;  %v6979_v16 = vmax.f32 %v4302_v1, 0.0  ;;  %v6980_v54 = vmax.f32 %v4908_v20, 0.0  ;;  %6983 = vst [vmem:[#allocation69_spill] sm:$0xff] %v4944_v39  ;;  %v1395_v21 = vmul.f32 1.442695, %v1249_v29  ;;  %v382_v53 = vpop.f32.mrf.mxu2  ;;  %v4948_v1 = vpop.eup %2940 }
 0x15f   :  { %6984 = vst [vmem:[#allocation70_spill] sm:$0xff] %v4948_v1  ;;  %v1167_v29 = vpop.xlane.xlu0 %1166 }
 0x160   :  { %v1250_v61 = vsub.f32 %v6979_v16, %v1068_v26  ;;  %v1207_v6 = vmax.f32 %v6981_v48, %v6980_v54  ;;  %v759_v26 = vpop.f32.mrf.mxu3  ;;  %v4950_v16 = vpop.eup %2942  ;;  %v6988_v48 = vld [vmem:[#allocation5_spill] sm:$0xff]  ;;  %2948 = vpow2.f32 %v1395_v21 }
 0x161   :  { %6985 = vst [vmem:[#allocation71_spill] sm:$0xff] %v4950_v16  ;;  %v305_v54 = vpop.f32.mrf.mxu0  ;;  %v4954_v23 = vpop.eup %2944  ;;  %v6989_v20 = vmax.f32 %v6988_v48, 0.0  ;;  %v1523_v48 = vmul.f32 1.442695, %v1313_v43 }
 0x162   :  { %v1397_v52 = vmul.f32 1.442695, %v1250_v61  ;;  %6987 = vst [vmem:[#allocation72_spill] sm:$0xff] %v4954_v23  ;;  %v682_v61 = vpop.f32.mrf.mxu1  ;;  %v4960_v44 = vpop.eup %2946 }
 0x163   :  { %v1314_v34 = vsub.f32 %v6989_v20, %v1164_v37  ;;  %6990 = vst [vmem:[#allocation5_spill] sm:$0xff] %v4960_v44  ;;  %v4964_v12 = vpop.xlane.xlu1 %1169  ;;  %v4967_v13 = vadd.f32 %v3968_v46, %v682_v61  ;;  %v4970_v20 = vadd.f32 %v3957_v42, %v305_v54  ;;  %v1639_v37 = vadd.f32 %v4950_v16, %v4948_v1 }
 0x164   :  { %1112 = vmax.xlane.f32.xlu0 %v1111_v56  ;;  %2950 = vpow2.f32 %v1397_v52  ;;  %v6996_v56 = vmax.f32 %v6995_v35, 0.0  ;;  %v1735_v61 = vadd.f32 %v4960_v44, %v4954_v23  ;;  %v6999_v54 = vmax.f32 %v4941_v41, 0.0 }
 0x165   :  { %6994 = vst [vmem:[#allocation73_spill] sm:$0xff] %v4970_v20  ;;  %v1525_v52 = vmul.f32 1.442695, %v1314_v34  ;;  %v6691_v35 = vmax.f32 %v4967_v13, 0.0  ;;  %2952 = vpow2.f32 %v1523_v48 }
 0x166   :  { %1733 = vadd.xlane.f32.xlu1 %v1732_v49  ;;  %1208 = vmax.xlane.f32.xlu2 %v1207_v6  ;;  %v6991_v6 = vld [vmem:[#allocation6_spill] sm:$0xff]  ;;  %v1252_v21 = vsub.f32 %v6996_v56, %v1071_v62  ;;  %v1114_v24 = vmax.f32 %v7000_v19, %v6999_v54  ;;  %v385_v43 = vpop.f32.mrf.mxu2 }
 0x167   :  { %v6992_v49 = vmax.f32 %v6991_v6, 0.0  ;;  %6993 = vst [vmem:[#allocation6_spill] sm:$0xff] %v4967_v13  ;;  %v4977_v6 = vadd.f32 %v3957_v42, %v382_v53  ;;  %2954 = vpow2.f32 %v1525_v52  ;;  %v4996_v19 = vpop.xlane.xlu0 %1076  ;;  %v5005_v48 = vadd.f32 %v3957_v42, %v385_v43 }
 0x168   :  { %v762_v53 = vpop.f32.mrf.mxu3  ;;  %v1401_v34 = vmul.f32 1.442695, %v1252_v21 }
 0x169   :  { %v1251_v50 = vsub.f32 %v6992_v49, %v1071_v62  ;;  %6997 = vst [vmem:[#allocation7_spill] sm:$0xff] %v4977_v6  ;;  %v4980_v49 = vadd.f32 %v3968_v46, %v759_v26  ;;  %v6692_v62 = vmax.f32 %v4970_v20, 0.0  ;;  %v4990_v26 = vpop.eup %2948  ;;  %v5008_v21 = vadd.f32 %v3968_v46, %v762_v53  ;;  %v307_v53 = vpop.f32.mrf.mxu0 }
 0x16a   :  { %7001 = vst [vmem:[#allocation75_spill] sm:$0xff] %v4990_v26  ;;  %v4994_v23 = vpop.eup %2950 }
 0x16b   :  { %6998 = vst [vmem:[#allocation74_spill] sm:$0xff] %v4980_v49  ;;  %v1399_v16 = vmul.f32 1.442695, %v1251_v50  ;;  %v4998_v50 = vpop.xlane.xlu2 %1172  ;;  %v1117_v52 = vmax.f32 %v6692_v62, %v6691_v35  ;;  %v7009_v1 = vmax.f32 %v4980_v49, 0.0  ;;  %v1642_v43 = vadd.f32 %v4994_v23, %v4990_v26  ;;  %v5022_v41 = vpop.eup %2952 }
 0x16c   :  { %1640 = vadd.xlane.f32.xlu0 %v1639_v37  ;;  %7002 = vst [vmem:[#allocation76_spill] sm:$0xff] %v4994_v23  ;;  %v5000_v37 = vpop.xlane.xlu1 %1079  ;;  %v684_v35 = vpop.f32.mrf.mxu1 }
 0x16d   :  { %2956 = vpow2.f32 %v1399_v16  ;;  %7006 = vst [vmem:[#allocation77_spill] sm:$0xff] %v5008_v21  ;;  %v7007_v16 = vld [vmem:[#allocation9_spill] sm:$0xff]  ;;  %v5024_v13 = vpop.eup %2954 }
 0x16e   :  { %1736 = vadd.xlane.f32.xlu2 %v1735_v61  ;;  %1115 = vmax.xlane.f32.xlu1 %v1114_v24  ;;  %v7003_v24 = vld [vmem:[#allocation8_spill] sm:$0xff]  ;;  %2958 = vpow2.f32 %v1401_v34  ;;  %v7008_v56 = vmax.f32 %v7007_v16, 0.0  ;;  %7011 = vst [vmem:[#allocation9_spill] sm:$0xff] %v5022_v41  ;;  %v387_v16 = vpop.f32.mrf.mxu2 }
 0x16f   :  { %v7004_v61 = vmax.f32 %v7003_v24, 0.0  ;;  %7005 = vst [vmem:[#allocation8_spill] sm:$0xff] %v5005_v48  ;;  %v7010_v24 = vmax.f32 %v4977_v6, 0.0  ;;  %v5032_v26 = vpop.xlane.xlu0 %1175 }
 0x170   :  { %v1316_v44 = vsub.f32 %v7008_v56, %v1167_v29  ;;  %7012 = vst [vmem:[#allocation78_spill] sm:$0xff] %v5024_v13 }
 0x171   :  { %v1315_v54 = vsub.f32 %v7004_v61, %v1167_v29  ;;  %v1210_v61 = vmax.f32 %v7010_v24, %v7009_v1  ;;  %v7014_v24 = vld [vmem:[#allocation10_spill] sm:$0xff] }
 0x172   :  { %v1529_v1 = vmul.f32 1.442695, %v1316_v44  ;;  %v7015_v62 = vmax.f32 %v7014_v24, 0.0  ;;  %v7019_v44 = vmax.f32 %v4415_v32, 0.0  ;;  %v7021_v24 = vmax.f32 %v5005_v48, 0.0 }
 0x173   :  { %v1527_v20 = vmul.f32 1.442695, %v1315_v54  ;;  %v5028_v56 = vpop.eup %2956  ;;  %v7017_v54 = vld [vmem:[#allocation11_spill] sm:$0xff]  ;;  %v5038_v39 = vpop.xlane.xlu2 %1082 }
 0x174   :  { %1211 = vmax.xlane.f32.xlu0 %v1210_v61  ;;  %7013 = vst [vmem:[#allocation79_spill] sm:$0xff] %v5028_v56  ;;  %v1253_v23 = vsub.f32 %v7015_v62, %v1074_v22  ;;  %v764_v61 = vpop.f32.mrf.mxu3  ;;  %v5034_v49 = vpop.eup %2958  ;;  %v7018_v6 = vmax.f32 %v7017_v54, 0.0  ;;  %v1738_v62 = vadd.f32 %v5024_v13, %v5022_v41  ;;  %v5055_v54 = vadd.f32 %v3968_v46, %v684_v35 }
 0x175   :  { %7016 = vst [vmem:[#allocation10_spill] sm:$0xff] %v5034_v49  ;;  %2960 = vpow2.f32 %v1527_v20  ;;  %v5058_v20 = vadd.f32 %v3957_v42, %v307_v53  ;;  %v5064_v13 = vadd.f32 %v3968_v46, %v764_v61  ;;  %v687_v35 = vpop.f32.mrf.mxu1  ;;  %v7032_v61 = vmax.f32 %v4426_v40, 0.0 }
 0x176   :  { %1643 = vadd.xlane.f32.xlu1 %v1642_v43  ;;  %1118 = vmax.xlane.f32.xlu2 %v1117_v52  ;;  %v1254_v34 = vsub.f32 %v7018_v6, %v1074_v22  ;;  %v1317_v52 = vsub.f32 %v7019_v44, %v4964_v12  ;;  %v7020_v43 = vmax.f32 %v5008_v21, 0.0  ;;  %2962 = vpow2.f32 %v1529_v1  ;;  %7023 = vst [vmem:[#allocation11_spill] sm:$0xff] %v5055_v54 }
 0x177   :  { %v5040_v29 = vpop.xlane.xlu1 %1178  ;;  %v7022_v22 = vmax.f32 %v4418_v28, 0.0  ;;  %7024 = vst [vmem:[#allocation80_spill] sm:$0xff] %v5058_v20  ;;  %v1403_v32 = vmul.f32 1.442695, %v1253_v23  ;;  %v5061_v44 = vadd.f32 %v3957_v42, %v387_v16  ;;  %v1645_v1 = vadd.f32 %v5034_v49, %v5028_v56  ;;  %v310_v28 = vpop.f32.mrf.mxu0 }
 0x178   :  { %v1213_v57 = vmax.f32 %v7021_v24, %v7020_v43  ;;  %7026 = vst [vmem:[#allocation82_spill] sm:$0xff] %v5064_v13  ;;  %v1405_v43 = vmul.f32 1.442695, %v1254_v34  ;;  %v6702_v53 = vmax.f32 %v5055_v54, 0.0  ;;  %v6703_v23 = vmax.f32 %v5058_v20, 0.0 }
 0x179   :  { %v1318_v6 = vsub.f32 %v7022_v22, %v4964_v12  ;;  %7025 = vst [vmem:[#allocation81_spill] sm:$0xff] %v5061_v44  ;;  %v1531_v12 = vmul.f32 1.442695, %v1317_v52  ;;  %2964 = vpow2.f32 %v1403_v32  ;;  %v5074_v49 = vpop.xlane.xlu0 %1085  ;;  %v5086_v32 = vadd.f32 %v3968_v46, %v687_v35  ;;  %v390_v22 = vpop.f32.mrf.mxu2 }
 0x17a   :  { %2966 = vpow2.f32 %v1405_v43  ;;  %v1256_v43 = vsub.f32 %v7032_v61, %v4996_v19  ;;  %v7033_v35 = vmax.f32 %v5064_v13, 0.0  ;;  %v7040_v61 = vmax.f32 %v4446_v4, 0.0 }
 0x17b   :  { %v1533_v24 = vmul.f32 1.442695, %v1318_v6  ;;  %v5070_v16 = vpop.eup %2960  ;;  %2968 = vpow2.f32 %v1531_v12  ;;  %7030 = vst [vmem:[#allocation85_spill] sm:$0xff] %v5086_v32  ;;  %v1120_v12 = vmax.f32 %v6703_v23, %v6702_v53  ;;  %v7045_v54 = vmax.f32 %v5086_v32, 0.0 }
 0x17c   :  { %1739 = vadd.xlane.f32.xlu0 %v1738_v62  ;;  %7027 = vst [vmem:[#allocation83_spill] sm:$0xff] %v5070_v16  ;;  %v5076_v34 = vpop.eup %2962  ;;  %v7029_v62 = vmax.f32 %v4422_v38, 0.0  ;;  %v767_v56 = vpop.f32.mrf.mxu3  ;;  %v1409_v23 = vmul.f32 1.442695, %v1256_v43 }
 0x17d   :  { %7028 = vst [vmem:[#allocation84_spill] sm:$0xff] %v5076_v34  ;;  %2970 = vpow2.f32 %v1533_v24  ;;  %v1741_v38 = vadd.f32 %v5076_v34, %v5070_v16  ;;  %v5126_v43 = vadd.f32 %v3968_v46, %v767_v56 }
 0x17e   :  { %1214 = vmax.xlane.f32.xlu1 %v1213_v57  ;;  %1646 = vadd.xlane.f32.xlu2 %v1645_v1  ;;  %v1255_v6 = vsub.f32 %v7029_v62, %v4996_v19  ;;  %v5089_v1 = vadd.f32 %v3957_v42, %v310_v28  ;;  %v7034_v62 = vmax.f32 %v5061_v44, 0.0 }
 0x17f   :  { %v5078_v57 = vpop.xlane.xlu2 %1181  ;;  %v5104_v24 = vpop.eup %2964  ;;  %7042 = vst [vmem:[#allocation92_spill] sm:$0xff] %v5126_v43 }
 0x180   :  { %7031 = vst [vmem:[#allocation86_spill] sm:$0xff] %v5089_v1  ;;  %v1216_v28 = vmax.f32 %v7034_v62, %v7033_v35  ;;  %v1407_v40 = vmul.f32 1.442695, %v1255_v6  ;;  %v5108_v53 = vpop.eup %2966  ;;  %v312_v34 = vpop.f32.mrf.mxu0  ;;  %v7038_v35 = vmax.f32 %v4443_v60, 0.0  ;;  %v7043_v60 = vld [vmem:[#allocation12_spill] sm:$0xff]  ;;  %v7046_v4 = vmax.f32 %v5089_v1, 0.0 }
 0x181   :  { %v5080_v52 = vpop.xlane.xlu1 %1088  ;;  %7035 = vst [vmem:[#allocation87_spill] sm:$0xff] %v5104_v24  ;;  %v5110_v16 = vpop.eup %2968  ;;  %v1648_v20 = vadd.f32 %v5108_v53, %v5104_v24 }
 0x182   :  { %7036 = vst [vmem:[#allocation88_spill] sm:$0xff] %v5108_v53  ;;  %v1319_v62 = vsub.f32 %v7038_v35, %v4998_v50  ;;  %2972 = vpow2.f32 %v1407_v40  ;;  %v7044_v35 = vmax.f32 %v7043_v60, 0.0  ;;  %v5148_v60 = vadd.f32 %v3957_v42, %v312_v34 }
 0x183   :  { %7037 = vst [vmem:[#allocation89_spill] sm:$0xff] %v5110_v16  ;;  %v5117_v6 = vpop.eup %2970  ;;  %2974 = vpow2.f32 %v1409_v23  ;;  %v6717_v23 = vmax.f32 %v5126_v43, 0.0 }
 0x184   :  { %1121 = vmax.xlane.f32.xlu0 %v1120_v12  ;;  %v689_v12 = vpop.f32.mrf.mxu1  ;;  %7039 = vst [vmem:[#allocation90_spill] sm:$0xff] %v5117_v6  ;;  %v1257_v44 = vsub.f32 %v7044_v35, %v5000_v37  ;;  %v1535_v21 = vmul.f32 1.442695, %v1319_v62  ;;  %v1744_v35 = vadd.f32 %v5117_v6, %v5110_v16  ;;  %v769_v62 = vpop.f32.mrf.mxu3 }
 0x185   :  { %v5145_v40 = vadd.f32 %v3968_v46, %v689_v12  ;;  %v5180_v53 = vadd.f32 %v3968_v46, %v769_v62 }
 0x186   :  { %1742 = vadd.xlane.f32.xlu1 %v1741_v38  ;;  %1217 = vmax.xlane.f32.xlu2 %v1216_v28  ;;  %v1320_v38 = vsub.f32 %v7040_v61, %v4998_v50  ;;  %v5123_v28 = vadd.f32 %v3957_v42, %v390_v22  ;;  %v1123_v50 = vmax.f32 %v7046_v4, %v7045_v54  ;;  %v7047_v22 = vld [vmem:[#allocation13_spill] sm:$0xff]  ;;  %v1411_v4 = vmul.f32 1.442695, %v1257_v44 }
 0x187   :  { %v5115_v41 = vpop.xlane.xlu0 %1184  ;;  %v7048_v61 = vmax.f32 %v7047_v22, 0.0  ;;  %7049 = vst [vmem:[#allocation12_spill] sm:$0xff] %v5145_v40  ;;  %2976 = vpow2.f32 %v1535_v21  ;;  %v7054_v21 = vld [vmem:[#allocation14_spill] sm:$0xff]  ;;  %v7074_v58 = vmax.f32 %v5180_v53, 0.0 }
 0x188   :  { %7041 = vst [vmem:[#allocation91_spill] sm:$0xff] %v5123_v28  ;;  %v1537_v32 = vmul.f32 1.442695, %v1320_v38  ;;  %v5154_v12 = vpop.eup %2972  ;;  %v7053_v44 = vmax.f32 %v5123_v28, 0.0 }
 0x189   :  { %v5128_v19 = vpop.xlane.xlu1 %1616  ;;  %v5130_v13 = vpop.xlane.xlu2 %1091  ;;  %v1258_v56 = vsub.f32 %v7048_v61, %v5000_v37  ;;  %7050 = vst [vmem:[#allocation13_spill] sm:$0xff] %v5148_v60  ;;  %v7056_v61 = vld [vmem:[#allocation15_spill] sm:$0xff] }
 0x18a   :  { %v392_v37 = vpop.f32.mrf.mxu2  ;;  %7051 = vst [vmem:[#allocation93_spill] sm:$0xff] %v5154_v12  ;;  %v5160_v38 = vpop.eup %2974  ;;  %2978 = vpow2.f32 %v1537_v32  ;;  %v7057_v34 = vmax.f32 %v7056_v61, 0.0 }
 0x18b   :  { %v1413_v22 = vmul.f32 1.442695, %v1258_v56  ;;  %7052 = vst [vmem:[#allocation94_spill] sm:$0xff] %v5160_v38  ;;  %2980 = vpow2.f32 %v1411_v4  ;;  %v7055_v56 = vmax.f32 %v7054_v21, 0.0  ;;  %v5177_v32 = vadd.f32 %v3957_v42, %v392_v37 }
 0x18c   :  { %1649 = vadd.xlane.f32.xlu0 %v1648_v20  ;;  %v1322_v16 = vsub.f32 %v7057_v34, %v5032_v26  ;;  %v1651_v24 = vadd.f32 %v5160_v38, %v5154_v12  ;;  %v7058_v4 = vmax.f32 %v5145_v40, 0.0  ;;  %v7062_v34 = vld [vmem:[#allocation16_spill] sm:$0xff] }
 0x18d   :  { %2982 = vpow2.f32 %v1413_v22  ;;  %v692_v22 = vpop.f32.mrf.mxu1 }
 0x18e   :  { %1745 = vadd.xlane.f32.xlu2 %v1744_v35  ;;  %1124 = vmax.xlane.f32.xlu1 %v1123_v50  ;;  %v1219_v50 = vmax.f32 %v7053_v44, %v6717_v23  ;;  %v1321_v35 = vsub.f32 %v7055_v56, %v5032_v26  ;;  %v7059_v44 = vmax.f32 %v5148_v60, 0.0  ;;  %v5188_v56 = vpop.eup %2976  ;;  %v315_v26 = vpop.f32.mrf.mxu0  ;;  %v1541_v62 = vmul.f32 1.442695, %v1322_v16 }
 0x18f   :  { %v5158_v6 = vpop.xlane.xlu0 %1712  ;;  %7060 = vst [vmem:[#allocation14_spill] sm:$0xff] %v5188_v56  ;;  %v7063_v23 = vmax.f32 %v7062_v34, 0.0  ;;  %v5207_v16 = vadd.f32 %v3968_v46, %v692_v22 }
 0x190   :  { %v1126_v21 = vmax.f32 %v7059_v44, %v7058_v4  ;;  %v1539_v61 = vmul.f32 1.442695, %v1321_v35  ;;  %v5190_v37 = vpop.eup %2978  ;;  %v7065_v4 = vld [vmem:[#allocation17_spill] sm:$0xff]  ;;  %v772_v35 = vpop.f32.mrf.mxu3 }
 0x191   :  { %v5162_v54 = vpop.xlane.xlu1 %1187  ;;  %v5164_v20 = vpop.xlane.xlu2 %1619  ;;  %7061 = vst [vmem:[#allocation15_spill] sm:$0xff] %v5190_v37  ;;  %v1259_v38 = vsub.f32 %v7063_v23, %v5038_v39  ;;  %v5210_v23 = vadd.f32 %v3957_v42, %v315_v26  ;;  %v7072_v26 = vld [vmem:[#allocation19_spill] sm:$0xff]  ;;  %v1747_v51 = vadd.f32 %v5190_v37, %v5188_v56  ;;  %v7085_v56 = vmax.f32 %v4558_v11, 0.0 }
 0x192   :  { %v395_v12 = vpop.f32.mrf.mxu2  ;;  %v5195_v40 = vpop.eup %2980  ;;  %7068 = vst [vmem:[#allocation95_spill] sm:$0xff] %v5207_v16  ;;  %2984 = vpow2.f32 %v1539_v61  ;;  %v7073_v1 = vmax.f32 %v7072_v26, 0.0 }
 0x193   :  { %7064 = vst [vmem:[#allocation16_spill] sm:$0xff] %v5195_v40  ;;  %v5204_v43 = vpop.eup %2982  ;;  %v5220_v60 = vadd.f32 %v3957_v42, %v395_v12  ;;  %2986 = vpow2.f32 %v1541_v62  ;;  %v1415_v22 = vmul.f32 1.442695, %v1259_v38 }
 0x194   :  { %1220 = vmax.xlane.f32.xlu0 %v1219_v50  ;;  %v7066_v50 = vmax.f32 %v7065_v4, 0.0  ;;  %7067 = vst [vmem:[#allocation17_spill] sm:$0xff] %v5204_v43  ;;  %v1324_v48 = vsub.f32 %v7073_v1, %v5040_v29  ;;  %v1654_v12 = vadd.f32 %v5204_v43, %v5195_v40 }
 0x195   :  { %7069 = vst [vmem:[#allocation96_spill] sm:$0xff] %v5210_v23  ;;  %2988 = vpow2.f32 %v1415_v22  ;;  %v694_v40 = vpop.f32.mrf.mxu1  ;;  %v7083_v22 = vmax.f32 %v5210_v23, 0.0  ;;  %v7086_v23 = vld [vmem:[#allocation22_spill] sm:$0xff] }
 0x196   :  { %1652 = vadd.xlane.f32.xlu1 %v1651_v24  ;;  %1127 = vmax.xlane.f32.xlu2 %v1126_v21  ;;  %v1260_v44 = vsub.f32 %v7066_v50, %v5038_v39  ;;  %v7070_v39 = vld [vmem:[#allocation18_spill] sm:$0xff]  ;;  %v5223_v24 = vadd.f32 %v3968_v46, %v772_v35 }
 0x197   :  { %v5202_v21 = vpop.xlane.xlu0 %1094  ;;  %v7071_v4 = vmax.f32 %v7070_v39, 0.0  ;;  %v7075_v39 = vmax.f32 %v5177_v32, 0.0 }
 0x198   :  { %v1417_v61 = vmul.f32 1.442695, %v1260_v44  ;;  %v6735_v44 = vmax.f32 %v5220_v60, 0.0  ;;  %v6734_v37 = vmax.f32 %v5223_v24, 0.0  ;;  %v5246_v38 = vpop.eup %2984 }
 0x199   :  { %v5212_v34 = vpop.xlane.xlu1 %1715  ;;  %v5214_v28 = vpop.xlane.xlu2 %1190  ;;  %v1323_v50 = vsub.f32 %v7071_v4, %v5040_v29  ;;  %v1222_v4 = vmax.f32 %v7075_v39, %v7074_v58  ;;  %v7076_v29 = vld [vmem:[#allocation20_spill] sm:$0xff]  ;;  %v1545_v58 = vmul.f32 1.442695, %v1324_v48  ;;  %v7078_v39 = vld [vmem:[#allocation21_spill] sm:$0xff]  ;;  %7080 = vst [vmem:[#allocation18_spill] sm:$0xff] %v5246_v38  ;;  %v7082_v48 = vmax.f32 %v5207_v16, 0.0 }
 0x19a   :  { %v7077_v1 = vmax.f32 %v7076_v29, 0.0  ;;  %v7079_v43 = vmax.f32 %v7078_v39, 0.0  ;;  %2990 = vpow2.f32 %v1417_v61  ;;  %v5250_v29 = vpop.eup %2986  ;;  %v7084_v61 = vmax.f32 %v4554_v47, 0.0 }
 0x19b   :  { %v1543_v62 = vmul.f32 1.442695, %v1323_v50  ;;  %v317_v50 = vpop.f32.mrf.mxu0  ;;  %7081 = vst [vmem:[#allocation19_spill] sm:$0xff] %v5250_v29  ;;  %2992 = vrcp.f32 %v5128_v19  ;;  %v1225_v19 = vmax.f32 %v6735_v44, %v6734_v37  ;;  %v1264_v16 = vsub.f32 %v7085_v56, %v5080_v52  ;;  %v397_v37 = vpop.f32.mrf.mxu2 }
 0x19c   :  { %1748 = vadd.xlane.f32.xlu0 %v1747_v51  ;;  %v1261_v26 = vsub.f32 %v7077_v1, %v5074_v49  ;;  %v1262_v35 = vsub.f32 %v7079_v43, %v5074_v49  ;;  %v1129_v49 = vmax.f32 %v7083_v22, %v7082_v48  ;;  %v7087_v48 = vmax.f32 %v7086_v23, 0.0 }
 0x19d   :  { %2994 = vpow2.f32 %v1543_v62  ;;  %v5278_v47 = vadd.f32 %v3957_v42, %v317_v50  ;;  %v1750_v22 = vadd.f32 %v5250_v29, %v5246_v38  ;;  %v1425_v23 = vmul.f32 1.442695, %v1264_v16 }
 0x19e   :  { %1223 = vmax.xlane.f32.xlu1 %v1222_v4  ;;  %1655 = vadd.xlane.f32.xlu2 %v1654_v12  ;;  %v1419_v43 = vmul.f32 1.442695, %v1261_v26  ;;  %v1263_v12 = vsub.f32 %v7084_v61, %v5080_v52  ;;  %2996 = vpow2.f32 %v1545_v58  ;;  %v1421_v39 = vmul.f32 1.442695, %v1262_v35  ;;  %v5282_v61 = vpop.eup %2988  ;;  %v7088_v35 = vld [vmem:[#allocation23_spill] sm:$0xff] }
 0x19f   :  { %v5248_v51 = vpop.xlane.xlu0 %1622  ;;  %v1325_v62 = vsub.f32 %v7087_v48, %v5078_v57  ;;  %v5275_v26 = vadd.f32 %v3968_v46, %v694_v40  ;;  %v7089_v58 = vmax.f32 %v7088_v35, 0.0  ;;  %v7091_v50 = vmax.f32 %v4579_v0, 0.0 }
 0x1a0   :  { %v5287_v52 = vpop.eup %2990  ;;  %2998 = vpow2.f32 %v1419_v43  ;;  %v1423_v56 = vmul.f32 1.442695, %v1263_v12  ;;  %v774_v12 = vpop.f32.mrf.mxu3 }
 0x1a1   :  { %v5253_v1 = vpop.xlane.xlu2 %1718  ;;  %v5255_v4 = vpop.xlane.xlu1 %1097  ;;  %v1326_v11 = vsub.f32 %v7089_v58, %v5078_v57  ;;  %7090 = vst [vmem:[#allocation20_spill] sm:$0xff] %v5287_v52  ;;  %3000 = vpow2.f32 %v1421_v39  ;;  %v1327_v48 = vsub.f32 %v7091_v50, %v5115_v41  ;;  %v1547_v29 = vmul.f32 1.442695, %v1325_v62  ;;  %v7092_v57 = vld [vmem:[#allocation24_spill] sm:$0xff]  ;;  %v7095_v62 = vld [vmem:[#allocation26_spill] sm:$0xff] }
 0x1a2   :  { %v2993_v40 = vpop.eup %2992  ;;  %3002 = vrcp.f32 %v5158_v6 }
 0x1a3   :  { %v5292_v44 = vpop.eup %2994  ;;  %v1549_v39 = vmul.f32 1.442695, %v1326_v11  ;;  %3004 = vpow2.f32 %v1423_v56  ;;  %v1871_v50 = vmul.f32 %v2993_v40, %v7095_v62  ;;  %v5316_v11 = vadd.f32 %v3968_v46, %v774_v12 }
 0x1a4   :  { %1130 = vmax.xlane.f32.xlu0 %v1129_v49  ;;  %v7093_v49 = vmax.f32 %v7092_v57, 0.0  ;;  %v5301_v16 = vpop.eup %2996  ;;  %v1657_v57 = vadd.f32 %v5287_v52, %v5282_v61  ;;  %3006 = vpow2.f32 %v1425_v23 }
 0x1a5   :  { %7094 = vst [vmem:[#allocation21_spill] sm:$0xff] %v5301_v16  ;;  %3008 = vpow2.f32 %v1547_v29  ;;  %v1753_v56 = vadd.f32 %v5301_v16, %v5292_v44  ;;  %v7110_v16 = vmax.f32 %v4633_v27, 0.0 }
 0x1a6   :  { %1751 = vadd.xlane.f32.xlu1 %v1750_v22  ;;  %1226 = vmax.xlane.f32.xlu2 %v1225_v19  ;;  %v1328_v35 = vsub.f32 %v7093_v49, %v5115_v41  ;;  %v5310_v41 = vadd.f32 %v3957_v42, %v397_v37  ;;  %v1551_v49 = vmul.f32 1.442695, %v1327_v48  ;;  %v7096_v19 = vld [vmem:[#allocation28_spill] sm:$0xff]  ;;  %v5318_v6 = vpop.eup %2998  ;;  %v7098_v42 = vmax.f32 %v5275_v26, 0.0  ;;  %v7103_v48 = vld [vmem:[#allocation27_spill] sm:$0xff] }
 0x1a7   :  { %v5299_v22 = vpop.xlane.xlu0 %1193  ;;  %v1872_v43 = vmul.f32 %v2993_v40, %v7096_v19  ;;  %7097 = vst [vmem:[#allocation22_spill] sm:$0xff] %v5318_v6  ;;  %v7099_v37 = vmax.f32 %v5278_v47, 0.0  ;;  %v5326_v52 = vpop.eup %3000  ;;  %3010 = vpow2.f32 %v1549_v39  ;;  %v7101_v40 = vld [vmem:[#allocation25_spill] sm:$0xff]  ;;  %v7104_v29 = vmax.f32 %v7103_v48, 0.0 }
 0x1a8   :  { %v1553_v38 = vmul.f32 1.442695, %v1328_v35  ;;  %7100 = vst [vmem:[#allocation23_spill] sm:$0xff] %v5326_v52  ;;  %v7102_v23 = vmax.f32 %v7101_v40, 0.0  ;;  %3012 = vrcp.f32 %v5164_v20  ;;  %v6741_v12 = vmax.f32 %v5310_v41, 0.0 }
 0x1a9   :  { %v5304_v0 = vpop.xlane.xlu1 %1625  ;;  %v5306_v58 = vpop.xlane.xlu2 %1100  ;;  %v1132_v62 = vmax.f32 %v7099_v37, %v7098_v42  ;;  %v1266_v35 = vsub.f32 %v7104_v29, %v5130_v13  ;;  %v1999_v19 = vmul.f32 1.442695, %v1871_v50  ;;  %3014 = vpow2.f32 %v1551_v49 }
 0x1aa   :  { %v1265_v46 = vsub.f32 %v7102_v23, %v5130_v13  ;;  %v3003_v42 = vpop.eup %3002  ;;  %v7105_v39 = vmax.f32 %v4613_v17, 0.0  ;;  %v6740_v40 = vmax.f32 %v5316_v11, 0.0  ;;  %3016 = vpow2.f32 %v1553_v38 }
 0x1ab   :  { %v5340_v23 = vpop.eup %3004  ;;  %v7107_v13 = vmax.f32 %v4618_v31, 0.0  ;;  %3018 = vrcp.f32 %v5212_v34  ;;  %v1935_v38 = vmul.f32 %v3003_v42, %v4615_v14  ;;  %v7109_v31 = vld [vmem:[#allocation29_spill] sm:$0xff] }
 0x1ac   :  { %1658 = vadd.xlane.f32.xlu0 %v1657_v57  ;;  %v1329_v37 = vsub.f32 %v7105_v39, %v5162_v54  ;;  %v2001_v57 = vmul.f32 1.442695, %v1872_v43  ;;  %7106 = vst [vmem:[#allocation24_spill] sm:$0xff] %v5340_v23  ;;  %v1427_v50 = vmul.f32 1.442695, %v1265_v46  ;;  %3020 = vpow2.f32 %v1999_v19 }
 0x1ad   :  { %v1330_v20 = vsub.f32 %v7107_v13, %v5162_v54  ;;  %v1429_v43 = vmul.f32 1.442695, %v1266_v35  ;;  %v1936_v54 = vmul.f32 %v3003_v42, %v7109_v31  ;;  %v1228_v34 = vmax.f32 %v6741_v12, %v6740_v40 }
 0x1ae   :  { %1754 = vadd.xlane.f32.xlu2 %v1753_v56  ;;  %1133 = vmax.xlane.f32.xlu1 %v1132_v62  ;;  %v5347_v56 = vpop.eup %3006  ;;  %v1555_v39 = vmul.f32 1.442695, %v1329_v37  ;;  %3022 = vpow2.f32 %v2001_v57  ;;  %v1267_v35 = vsub.f32 %v7110_v16, %v5202_v21  ;;  %v1660_v19 = vadd.f32 %v5326_v52, %v5318_v6  ;;  %v7112_v37 = vld [vmem:[#allocation32_spill] sm:$0xff] }
 0x1af   :  { %v5345_v48 = vpop.xlane.xlu0 %1721  ;;  %7108 = vst [vmem:[#allocation26_spill] sm:$0xff] %v5347_v56  ;;  %v5354_v62 = vpop.eup %3008  ;;  %v1557_v13 = vmul.f32 1.442695, %v1330_v20  ;;  %v1663_v14 = vadd.f32 %v5347_v56, %v5340_v23  ;;  %3024 = vpow2.f32 %v1427_v50  ;;  %v7113_v31 = vmax.f32 %v7112_v37, 0.0  ;;  %v7115_v20 = vld [vmem:[#allocation30_spill] sm:$0xff]  ;;  %v7116_v50 = vld [vmem:[#allocation31_spill] sm:$0xff] }
 0x1b0   :  { %v5357_v29 = vpop.eup %3010  ;;  %3026 = vpow2.f32 %v1429_v43  ;;  %v2127_v27 = vmul.f32 1.442695, %v1935_v38  ;;  %v2129_v56 = vmul.f32 1.442695, %v1936_v54  ;;  %v1431_v23 = vmul.f32 1.442695, %v1267_v35 }
 0x1b1   :  { %v5350_v49 = vpop.xlane.xlu1 %1196  ;;  %v5352_v17 = vpop.xlane.xlu2 %1628  ;;  %v1268_v40 = vsub.f32 %v7113_v31, %v5202_v21  ;;  %3028 = vpow2.f32 %v1555_v39 }
 0x1b2   :  { %v3013_v46 = vpop.eup %3012  ;;  %3030 = vpow2.f32 %v1557_v13 }
 0x1b3   :  { %v5371_v42 = vpop.eup %3014  ;;  %v1873_v12 = vmul.f32 %v3013_v46, %v7115_v20  ;;  %v1874_v6 = vmul.f32 %v3013_v46, %v7116_v50  ;;  %3032 = vrcp.f32 %v5248_v51  ;;  %v1756_v46 = vadd.f32 %v5357_v29, %v5354_v62 }
 0x1b4   :  { %7111 = vst [vmem:[#allocation28_spill] sm:$0xff] %v5371_v42  ;;  %1229 = vmax.xlane.f32.xlu0 %v1228_v34  ;;  %v5376_v57 = vpop.eup %3016  ;;  %v1433_v34 = vmul.f32 1.442695, %v1268_v40  ;;  %3034 = vpow2.f32 %v2127_v27  ;;  %v7125_v50 = vmax.f32 %v4680_v55, 0.0 }
 0x1b5   :  { %7114 = vst [vmem:[#allocation25_spill] sm:$0xff] %v5376_v57  ;;  %v3019_v16 = vpop.eup %3018  ;;  %3036 = vpow2.f32 %v2129_v56  ;;  %v2003_v35 = vmul.f32 1.442695, %v1873_v12  ;;  %v1759_v40 = vadd.f32 %v5376_v57, %v5371_v42  ;;  %v7123_v12 = vld [vmem:[#allocation34_spill] sm:$0xff] }
 0x1b6   :  { %1664 = vadd.xlane.f32.xlu2 %v1663_v14  ;;  %1661 = vadd.xlane.f32.xlu1 %v1660_v19  ;;  %v5379_v52 = vpop.eup %3020  ;;  %v1937_v39 = vmul.f32 %v3019_v16, %v4659_v33  ;;  %v1938_v13 = vmul.f32 %v3019_v16, %v4662_v30  ;;  %3038 = vpow2.f32 %v1431_v23  ;;  %v2005_v33 = vmul.f32 1.442695, %v1874_v6  ;;  %v7120_v30 = vld [vmem:[#allocation33_spill] sm:$0xff] }
 0x1b7   :  { %v5382_v37 = vpop.xlane.xlu0 %1103  ;;  %v5384_v21 = vpop.eup %3022  ;;  %3040 = vpow2.f32 %v1433_v34  ;;  %v7121_v31 = vmax.f32 %v7120_v30, 0.0  ;;  %v7124_v23 = vmax.f32 %v7123_v12, 0.0  ;;  %v1269_v34 = vsub.f32 %v7125_v50, %v5255_v4 }
 0x1b8   :  { %v5392_v54 = vpop.eup %3024  ;;  %v2255_v51 = vadd.f32 %v5384_v21, %v5379_v52  ;;  %3042 = vrcp.f32 %v5253_v1  ;;  %v2131_v20 = vmul.f32 1.442695, %v1937_v39  ;;  %v2133_v30 = vmul.f32 1.442695, %v1938_v13 }
 0x1b9   :  { %v5387_v43 = vpop.xlane.xlu1 %1724  ;;  %v5389_v38 = vpop.xlane.xlu2 %1199  ;;  %7117 = vst [vmem:[#allocation27_spill] sm:$0xff] %v5392_v54  ;;  %v1331_v27 = vsub.f32 %v7121_v31, %v5214_v28  ;;  %v1332_v16 = vsub.f32 %v7124_v23, %v5214_v28  ;;  %3044 = vpow2.f32 %v2003_v35 }
 0x1ba   :  { %v5397_v14 = vpop.eup %3026  ;;  %3046 = vpow2.f32 %v2005_v33  ;;  %v1435_v33 = vmul.f32 1.442695, %v1269_v34 }
 0x1bb   :  { %7118 = vst [vmem:[#allocation29_spill] sm:$0xff] %v5397_v14  ;;  %v5403_v19 = vpop.eup %3028  ;;  %v1559_v1 = vmul.f32 1.442695, %v1331_v27  ;;  %3048 = vrcp.f32 %v5304_v0  ;;  %v1561_v13 = vmul.f32 1.442695, %v1332_v16  ;;  %v1666_v27 = vadd.f32 %v5397_v14, %v5392_v54  ;;  %v7134_v14 = vld [vmem:[#allocation38_spill] sm:$0xff] }
 0x1bc   :  { %7119 = vst [vmem:[#allocation32_spill] sm:$0xff] %v5403_v19  ;;  %1757 = vadd.xlane.f32.xlu0 %v1756_v46  ;;  %v5408_v56 = vpop.eup %3030  ;;  %v7126_v46 = vmax.f32 %v4677_v59, 0.0  ;;  %3050 = vpow2.f32 %v2131_v20 }
 0x1bd   :  { %7122 = vst [vmem:[#allocation30_spill] sm:$0xff] %v5408_v56  ;;  %v3033_v6 = vpop.eup %3032  ;;  %3052 = vpow2.f32 %v2133_v30  ;;  %v1762_v16 = vadd.f32 %v5408_v56, %v5403_v19 }
 0x1be   :  { %2256 = vadd.xlane.f32.xlu2 %v2255_v51  ;;  %1760 = vadd.xlane.f32.xlu1 %v1759_v40  ;;  %v5417_v31 = vpop.eup %3034  ;;  %v1270_v57 = vsub.f32 %v7126_v46, %v5255_v4  ;;  %v7128_v51 = vld [vmem:[#allocation35_spill] sm:$0xff]  ;;  %v7130_v4 = vld [vmem:[#allocation36_spill] sm:$0xff]  ;;  %v7131_v46 = vmax.f32 %v4709_v5, 0.0  ;;  %3054 = vpow2.f32 %v1559_v1 }
 0x1bf   :  { %v5422_v12 = vpop.xlane.xlu0 %1631  ;;  %v5424_v28 = vpop.eup %3036  ;;  %v1875_v40 = vmul.f32 %v3033_v6, %v7128_v51  ;;  %v1876_v23 = vmul.f32 %v3033_v6, %v7130_v4  ;;  %v7132_v6 = vmax.f32 %v4712_v8, 0.0  ;;  %3056 = vpow2.f32 %v1561_v13  ;;  %v7133_v4 = vld [vmem:[#allocation37_spill] sm:$0xff] }
 0x1c0   :  { %v5431_v35 = vpop.eup %3038  ;;  %v1437_v50 = vmul.f32 1.442695, %v1270_v57  ;;  %v1333_v42 = vsub.f32 %v7131_v46, %v5299_v22  ;;  %v2351_v20 = vadd.f32 %v5424_v28, %v5417_v31  ;;  %3058 = vpow2.f32 %v1435_v33 }
 0x1c1   :  { %v5427_v39 = vpop.xlane.xlu2 %1727  ;;  %v5429_v55 = vpop.xlane.xlu1 %1106  ;;  %7127 = vst [vmem:[#allocation31_spill] sm:$0xff] %v5431_v35  ;;  %v1334_v34 = vsub.f32 %v7132_v6, %v5299_v22  ;;  %v2007_v5 = vmul.f32 1.442695, %v1875_v40  ;;  %v2009_v56 = vmul.f32 1.442695, %v1876_v23 }
 0x1c2   :  { %v5434_v59 = vpop.eup %3040  ;;  %3060 = vpow2.f32 %v1437_v50  ;;  %v1563_v54 = vmul.f32 1.442695, %v1333_v42 }
 0x1c3   :  { %7129 = vst [vmem:[#allocation33_spill] sm:$0xff] %v5434_v59  ;;  %v3043_v0 = vpop.eup %3042  ;;  %3062 = vrcp.f32 %v5345_v48 }
 0x1c4   :  { %v5446_v51 = vpop.eup %3044  ;;  %1667 = vadd.xlane.f32.xlu0 %v1666_v27  ;;  %v1939_v46 = vmul.f32 %v3043_v0, %v7133_v4  ;;  %v1940_v1 = vmul.f32 %v3043_v0, %v7134_v14  ;;  %v1565_v27 = vmul.f32 1.442695, %v1334_v34  ;;  %3064 = vpow2.f32 %v2007_v5  ;;  %v7139_v34 = vld [vmem:[#allocation40_spill] sm:$0xff] }
 0x1c5   :  { %v5451_v30 = vpop.eup %3046  ;;  %3066 = vpow2.f32 %v2009_v56  ;;  %v7140_v5 = vmax.f32 %v7139_v34, 0.0 }
 0x1c6   :  { %1763 = vadd.xlane.f32.xlu2 %v1762_v16  ;;  %2352 = vadd.xlane.f32.xlu1 %v2351_v20  ;;  %v3049_v57 = vpop.eup %3048  ;;  %v7136_v16 = vld [vmem:[#allocation41_spill] sm:$0xff]  ;;  %v2258_v42 = vadd.f32 %v5451_v30, %v5446_v51  ;;  %v2135_v0 = vmul.f32 1.442695, %v1939_v46  ;;  %3068 = vpow2.f32 %v1563_v54  ;;  %v1669_v20 = vadd.f32 %v5434_v59, %v5431_v35  ;;  %v7142_v54 = vld [vmem:[#allocation39_spill] sm:$0xff] }
 0x1c7   :  { %v5454_v19 = vpop.eup %3050  ;;  %v5457_v8 = vpop.xlane.xlu0 %1202  ;;  %v1877_v33 = vmul.f32 %v3049_v57, %v4726_v3  ;;  %v1878_v14 = vmul.f32 %v3049_v57, %v7136_v16  ;;  %v2137_v3 = vmul.f32 1.442695, %v1940_v1  ;;  %3070 = vpow2.f32 %v1565_v27 }
 0x1c8   :  { %v5459_v22 = vpop.eup %3052  ;;  %v1271_v57 = vsub.f32 %v7140_v5, %v5306_v58  ;;  %v7143_v46 = vmax.f32 %v7142_v54, 0.0  ;;  %3072 = vrcp.f32 %v5352_v17  ;;  %v7144_v27 = vmax.f32 %v4733_v25, 0.0 }
 0x1c9   :  { %v5462_v13 = vpop.xlane.xlu1 %1634  ;;  %v5464_v40 = vpop.xlane.xlu2 %1109  ;;  %v2354_v48 = vadd.f32 %v5459_v22, %v5454_v19  ;;  %v2011_v4 = vmul.f32 1.442695, %v1877_v33  ;;  %v2013_v59 = vmul.f32 1.442695, %v1878_v14  ;;  %3074 = vpow2.f32 %v2135_v0 }
 0x1ca   :  { %v5467_v23 = vpop.eup %3054  ;;  %v1272_v16 = vsub.f32 %v7143_v46, %v5306_v58  ;;  %v1335_v35 = vsub.f32 %v7144_v27, %v5350_v49  ;;  %v7145_v33 = vmax.f32 %v4736_v18, 0.0  ;;  %3076 = vpow2.f32 %v2137_v3 }
 0x1cb   :  { %7135 = vst [vmem:[#allocation34_spill] sm:$0xff] %v5467_v23  ;;  %v5472_v50 = vpop.eup %3056  ;;  %v1439_v17 = vmul.f32 1.442695, %v1271_v57  ;;  %3078 = vrcp.f32 %v5387_v43  ;;  %v7149_v46 = vmax.f32 %v4778_v9, 0.0 }
 0x1cc   :  { %7137 = vst [vmem:[#allocation35_spill] sm:$0xff] %v5472_v50  ;;  %v5478_v6 = vpop.eup %3058  ;;  %2259 = vadd.xlane.f32.xlu0 %v2258_v42  ;;  %v1336_v42 = vsub.f32 %v7145_v33, %v5350_v49  ;;  %v1441_v0 = vmul.f32 1.442695, %v1272_v16  ;;  %3080 = vpow2.f32 %v2011_v4  ;;  %v1567_v3 = vmul.f32 1.442695, %v1335_v35 }
 0x1cd   :  { %7138 = vst [vmem:[#allocation36_spill] sm:$0xff] %v5478_v6  ;;  %v5483_v56 = vpop.eup %3060  ;;  %v1765_v57 = vadd.f32 %v5472_v50, %v5467_v23  ;;  %3082 = vpow2.f32 %v2013_v59  ;;  %v1273_v27 = vsub.f32 %v7149_v46, %v5382_v37 }
 0x1ce   :  { %7141 = vst [vmem:[#allocation37_spill] sm:$0xff] %v5483_v56  ;;  %2355 = vadd.xlane.f32.xlu2 %v2354_v48  ;;  %1670 = vadd.xlane.f32.xlu1 %v1669_v20  ;;  %v3063_v1 = vpop.eup %3062  ;;  %v1569_v54 = vmul.f32 1.442695, %v1336_v42  ;;  %v1672_v16 = vadd.f32 %v5483_v56, %v5478_v6  ;;  %3084 = vpow2.f32 %v1439_v17  ;;  %v7153_v42 = vld [vmem:[#allocation42_spill] sm:$0xff] }
 0x1cf   :  { %v5492_v34 = vpop.eup %3064  ;;  %v5497_v5 = vpop.xlane.xlu0 %1730  ;;  %v1941_v20 = vmul.f32 %v3063_v1, %v4750_v63  ;;  %v1942_v49 = vmul.f32 %v3063_v1, %v4754_v45  ;;  %v7151_v45 = vmax.f32 %v4773_v7, 0.0  ;;  %3086 = vpow2.f32 %v1441_v0 }
 0x1d0   :  { %v5499_v58 = vpop.eup %3066  ;;  %3088 = vpow2.f32 %v1567_v3  ;;  %v1443_v17 = vmul.f32 1.442695, %v1273_v27  ;;  %v7159_v27 = vld [vmem:[#allocation47_spill] sm:$0xff] }
 0x1d1   :  { %7146 = vst [vmem:[#allocation38_spill] sm:$0xff] %v5499_v58  ;;  %v5502_v14 = vpop.xlane.xlu1 %1205  ;;  %v5504_v48 = vpop.xlane.xlu2 %1637  ;;  %v2261_v63 = vadd.f32 %v5499_v58, %v5492_v34  ;;  %v1274_v35 = vsub.f32 %v7151_v45, %v5382_v37  ;;  %v2139_v1 = vmul.f32 1.442695, %v1941_v20  ;;  %v2141_v33 = vmul.f32 1.442695, %v1942_v49  ;;  %v7156_v37 = vld [vmem:[#allocation43_spill] sm:$0xff] }
 0x1d2   :  { %v5506_v25 = vpop.eup %3068  ;;  %3090 = vpow2.f32 %v1569_v54  ;;  %v7157_v49 = vld [vmem:[#allocation46_spill] sm:$0xff] }
 0x1d3   :  { %7147 = vst [vmem:[#allocation41_spill] sm:$0xff] %v5506_v25  ;;  %v5509_v18 = vpop.eup %3070  ;;  %v1445_v45 = vmul.f32 1.442695, %v1274_v35  ;;  %3092 = vrcp.f32 %v5422_v12 }
 0x1d4   :  { %7148 = vst [vmem:[#allocation40_spill] sm:$0xff] %v5509_v18  ;;  %v3073_v43 = vpop.eup %3072  ;;  %1766 = vadd.xlane.f32.xlu0 %v1765_v57  ;;  %3094 = vpow2.f32 %v2139_v1  ;;  %v1768_v35 = vadd.f32 %v5509_v18, %v5506_v25 }
 0x1d5   :  { %v5521_v4 = vpop.eup %3074  ;;  %v1879_v46 = vmul.f32 %v3073_v43, %v7153_v42  ;;  %v1880_v57 = vmul.f32 %v3073_v43, %v7156_v37  ;;  %3096 = vpow2.f32 %v2141_v33 }
 0x1d6   :  { %7150 = vst [vmem:[#allocation39_spill] sm:$0xff] %v5521_v4  ;;  %v5526_v59 = vpop.eup %3076  ;;  %1673 = vadd.xlane.f32.xlu2 %v1672_v16  ;;  %2262 = vadd.xlane.f32.xlu1 %v2261_v63  ;;  %3098 = vpow2.f32 %v1443_v17  ;;  %v7165_v17 = vld [vmem:[#allocation45_spill] sm:$0xff] }
 0x1d7   :  { %7152 = vst [vmem:[#allocation97_spill] sm:$0xff] %v5526_v59  ;;  %v3079_v9 = vpop.eup %3078  ;;  %v5531_v6 = vpop.xlane.xlu0 %1112  ;;  %v2015_v54 = vmul.f32 1.442695, %v1879_v46  ;;  %v2357_v42 = vadd.f32 %v5526_v59, %v5521_v4  ;;  %v2017_v1 = vmul.f32 1.442695, %v1880_v57  ;;  %3100 = vpow2.f32 %v1445_v45  ;;  %v7162_v46 = vld [vmem:[#allocation44_spill] sm:$0xff] }
 0x1d8   :  { %v5529_v56 = vpop.eup %3080  ;;  %v1943_v3 = vmul.f32 %v3079_v9, %v7157_v49  ;;  %v1944_v63 = vmul.f32 %v3079_v9, %v7159_v27  ;;  %v7163_v9 = vmax.f32 %v7162_v46, 0.0  ;;  %v7166_v50 = vmax.f32 %v7165_v17, 0.0 }
 0x1d9   :  { %7154 = vst [vmem:[#allocation42_spill] sm:$0xff] %v5529_v56  ;;  %v5533_v7 = vpop.eup %3082  ;;  %v5537_v0 = vpop.xlane.xlu1 %1733  ;;  %3102 = vrcp.f32 %v5427_v39  ;;  %v7167_v57 = vmax.f32 %v4802_v2, 0.0 }
 0x1da   :  { %7155 = vst [vmem:[#allocation98_spill] sm:$0xff] %v5533_v7  ;;  %v5539_v20 = vpop.xlane.xlu2 %1208  ;;  %v5542_v16 = vpop.eup %3084  ;;  %v2264_v12 = vadd.f32 %v5533_v7, %v5529_v56  ;;  %v1337_v49 = vsub.f32 %v7163_v9, %v5389_v38  ;;  %v2143_v33 = vmul.f32 1.442695, %v1943_v3  ;;  %v1338_v23 = vsub.f32 %v7166_v50, %v5389_v38 }
 0x1db   :  { %7158 = vst [vmem:[#allocation43_spill] sm:$0xff] %v5542_v16  ;;  %v5547_v43 = vpop.eup %3086  ;;  %v2145_v25 = vmul.f32 1.442695, %v1944_v63  ;;  %v1275_v45 = vsub.f32 %v7167_v57, %v5429_v55  ;;  %3104 = vpow2.f32 %v2015_v54  ;;  %v7169_v3 = vmax.f32 %v4799_v10, 0.0  ;;  %v7173_v57 = vld [vmem:[#allocation50_spill] sm:$0xff] }
 0x1dc   :  { %7160 = vst [vmem:[#allocation46_spill] sm:$0xff] %v5547_v43  ;;  %v5553_v37 = vpop.eup %3088  ;;  %2358 = vadd.xlane.f32.xlu0 %v2357_v42  ;;  %3106 = vrcp.f32 %v5462_v13  ;;  %v1571_v50 = vmul.f32 1.442695, %v1337_v49  ;;  %v1573_v54 = vmul.f32 1.442695, %v1338_v23  ;;  %v1675_v9 = vadd.f32 %v5547_v43, %v5542_v16 }
 0x1dd   :  { %7161 = vst [vmem:[#allocation47_spill] sm:$0xff] %v5553_v37  ;;  %v5558_v27 = vpop.eup %3090  ;;  %v1276_v42 = vsub.f32 %v7169_v3, %v5429_v55  ;;  %3108 = vpow2.f32 %v2017_v1  ;;  %v1447_v13 = vmul.f32 1.442695, %v1275_v45  ;;  %v7174_v1 = vmax.f32 %v7173_v57, 0.0 }
 0x1de   :  { %7164 = vst [vmem:[#allocation44_spill] sm:$0xff] %v5558_v27  ;;  %2265 = vadd.xlane.f32.xlu2 %v2264_v12  ;;  %1769 = vadd.xlane.f32.xlu1 %v1768_v35  ;;  %v3093_v18 = vpop.eup %3092  ;;  %3110 = vpow2.f32 %v2143_v33  ;;  %v1771_v23 = vadd.f32 %v5558_v27, %v5553_v37  ;;  %v7180_v37 = vld [vmem:[#allocation48_spill] sm:$0xff] }
 0x1df   :  { %v5567_v46 = vpop.eup %3094  ;;  %v5573_v38 = vpop.xlane.xlu0 %1640  ;;  %v1881_v35 = vmul.f32 %v3093_v18, %v4820_v36  ;;  %v1882_v55 = vmul.f32 %v3093_v18, %v4822_v15  ;;  %3112 = vpow2.f32 %v2145_v25  ;;  %v1449_v17 = vmul.f32 1.442695, %v1276_v42  ;;  %v7176_v15 = vld [vmem:[#allocation51_spill] sm:$0xff] }
 0x1e0   :  { %7168 = vst [vmem:[#allocation45_spill] sm:$0xff] %v5567_v46  ;;  %v5575_v39 = vpop.eup %3096  ;;  %v1339_v3 = vsub.f32 %v7174_v1, %v5457_v8  ;;  %3114 = vpow2.f32 %v1571_v50  ;;  %v7177_v18 = vmax.f32 %v7176_v15, 0.0 }
 0x1e1   :  { %7170 = vst [vmem:[#allocation99_spill] sm:$0xff] %v5575_v39  ;;  %v5579_v63 = vpop.xlane.xlu1 %1115  ;;  %v5581_v2 = vpop.eup %3098  ;;  %v2360_v36 = vadd.f32 %v5575_v39, %v5567_v46  ;;  %3116 = vpow2.f32 %v1573_v54  ;;  %v2019_v42 = vmul.f32 1.442695, %v1881_v35  ;;  %v2021_v1 = vmul.f32 1.442695, %v1882_v55  ;;  %v7183_v55 = vld [vmem:[#allocation54_spill] sm:$0xff] }
 0x1e2   :  { %v5577_v12 = vpop.xlane.xlu2 %1736  ;;  %7171 = vst [vmem:[#allocation100_spill] sm:$0xff] %v5581_v2  ;;  %v5584_v10 = vpop.eup %3100  ;;  %v1340_v45 = vsub.f32 %v7177_v18, %v5457_v8  ;;  %3118 = vpow2.f32 %v1447_v13  ;;  %v1575_v50 = vmul.f32 1.442695, %v1339_v3  ;;  %v7182_v8 = vld [vmem:[#allocation49_spill] sm:$0xff]  ;;  %v7205_v46 = vld [vmem:[#allocation62_spill] sm:$0xff] }
 0x1e3   :  { %7172 = vst [vmem:[#allocation101_spill] sm:$0xff] %v5584_v10  ;;  %v3103_v49 = vpop.eup %3102  ;;  %3120 = vpow2.f32 %v1449_v17 }
 0x1e4   :  { %v5596_v33 = vpop.eup %3104  ;;  %1676 = vadd.xlane.f32.xlu0 %v1675_v9  ;;  %v1945_v43 = vmul.f32 %v3103_v49, %v7180_v37  ;;  %v1946_v9 = vmul.f32 %v3103_v49, %v7182_v8  ;;  %v1577_v54 = vmul.f32 1.442695, %v1340_v45  ;;  %3122 = vrcp.f32 %v5497_v5  ;;  %v7185_v37 = vld [vmem:[#allocation55_spill] sm:$0xff] }
 0x1e5   :  { %7175 = vst [vmem:[#allocation50_spill] sm:$0xff] %v5596_v33  ;;  %v3107_v25 = vpop.eup %3106  ;;  %3124 = vpow2.f32 %v2019_v42  ;;  %v1678_v45 = vadd.f32 %v5584_v10, %v5581_v2 }
 0x1e6   :  { %1772 = vadd.xlane.f32.xlu2 %v1771_v23  ;;  %2361 = vadd.xlane.f32.xlu1 %v2360_v36  ;;  %v5601_v57 = vpop.eup %3108  ;;  %v1883_v13 = vmul.f32 %v3107_v25, %v7183_v55  ;;  %v1884_v17 = vmul.f32 %v3107_v25, %v7185_v37  ;;  %3126 = vpow2.f32 %v2021_v1  ;;  %v2147_v49 = vmul.f32 1.442695, %v1945_v43  ;;  %v7188_v25 = vld [vmem:[#allocation53_spill] sm:$0xff]  ;;  %v7191_v43 = vld [vmem:[#allocation52_spill] sm:$0xff] }
 0x1e7   :  { %7178 = vst [vmem:[#allocation51_spill] sm:$0xff] %v5601_v57  ;;  %v5603_v27 = vpop.eup %3110  ;;  %v5606_v16 = vpop.xlane.xlu0 %1211  ;;  %v2267_v3 = vadd.f32 %v5601_v57, %v5596_v33  ;;  %3128 = vpow2.f32 %v1575_v50  ;;  %v2149_v42 = vmul.f32 1.442695, %v1946_v9  ;;  %v7189_v55 = vmax.f32 %v7188_v25, 0.0  ;;  %v7193_v9 = vld [vmem:[#allocation56_spill] sm:$0xff] }
 0x1e8   :  { %7179 = vst [vmem:[#allocation102_spill] sm:$0xff] %v5603_v27  ;;  %v5608_v15 = vpop.eup %3112  ;;  %3130 = vpow2.f32 %v1577_v54  ;;  %v2023_v57 = vmul.f32 1.442695, %v1883_v13  ;;  %v7192_v50 = vmax.f32 %v7191_v43, 0.0  ;;  %v2025_v2 = vmul.f32 1.442695, %v1884_v17 }
 0x1e9   :  { %7181 = vst [vmem:[#allocation48_spill] sm:$0xff] %v5608_v15  ;;  %v5612_v35 = vpop.xlane.xlu1 %1643  ;;  %v5617_v36 = vpop.eup %3114  ;;  %v2363_v5 = vadd.f32 %v5608_v15, %v5603_v27  ;;  %v1277_v37 = vsub.f32 %v7189_v55, %v5464_v40  ;;  %3132 = vrcp.f32 %v5504_v48  ;;  %v7194_v54 = vmax.f32 %v7193_v9, 0.0  ;;  %v7196_v13 = vld [vmem:[#allocation57_spill] sm:$0xff]  ;;  %v7199_v17 = vld [vmem:[#allocation63_spill] sm:$0xff] }
 0x1ea   :  { %v5614_v23 = vpop.xlane.xlu2 %1118  ;;  %7184 = vst [vmem:[#allocation49_spill] sm:$0xff] %v5617_v36  ;;  %v5622_v18 = vpop.eup %3116  ;;  %v1278_v33 = vsub.f32 %v7192_v50, %v5464_v40  ;;  %3134 = vrcp.f32 %v5537_v0  ;;  %v7197_v25 = vmax.f32 %v7196_v13, 0.0  ;;  %v7202_v13 = vld [vmem:[#allocation58_spill] sm:$0xff] }
 0x1eb   :  { %7186 = vst [vmem:[#allocation54_spill] sm:$0xff] %v5622_v18  ;;  %v5628_v8 = vpop.eup %3118  ;;  %v1341_v15 = vsub.f32 %v7194_v54, %v5502_v14  ;;  %3136 = vpow2.f32 %v2147_v49  ;;  %v1451_v48 = vmul.f32 1.442695, %v1277_v37  ;;  %v7204_v49 = vld [vmem:[#allocation59_spill] sm:$0xff] }
 0x1ec   :  { %7187 = vst [vmem:[#allocation55_spill] sm:$0xff] %v5628_v8  ;;  %2268 = vadd.xlane.f32.xlu0 %v2267_v3  ;;  %v5633_v1 = vpop.eup %3120  ;;  %v1342_v55 = vsub.f32 %v7197_v25, %v5502_v14  ;;  %3138 = vpow2.f32 %v2149_v42  ;;  %v1453_v54 = vmul.f32 1.442695, %v1278_v33  ;;  %v7206_v42 = vmax.f32 %v7205_v46, 0.0 }
 0x1ed   :  { %7190 = vst [vmem:[#allocation53_spill] sm:$0xff] %v5633_v1  ;;  %v3123_v10 = vpop.eup %3122  ;;  %3140 = vpow2.f32 %v2023_v57  ;;  %v1579_v37 = vmul.f32 1.442695, %v1341_v15  ;;  %v1681_v33 = vadd.f32 %v5633_v1, %v5628_v8  ;;  %v7207_v15 = vld [vmem:[#allocation64_spill] sm:$0xff] }
 0x1ee   :  { %2364 = vadd.xlane.f32.xlu2 %v2363_v5  ;;  %1679 = vadd.xlane.f32.xlu1 %v1678_v45  ;;  %v5643_v3 = vpop.eup %3124  ;;  %v7200_v5 = vmax.f32 %v7199_v17, 0.0  ;;  %v1947_v14 = vmul.f32 %v3123_v10, %v7202_v13  ;;  %v1948_v27 = vmul.f32 %v3123_v10, %v7204_v49  ;;  %v1774_v17 = vadd.f32 %v5622_v18, %v5617_v36 }
 0x1ef   :  { %7195 = vst [vmem:[#allocation52_spill] sm:$0xff] %v5643_v3  ;;  %v5648_v43 = vpop.xlane.xlu0 %1739  ;;  %v5650_v40 = vpop.eup %3126  ;;  %3142 = vpow2.f32 %v2025_v2  ;;  %v1581_v39 = vmul.f32 1.442695, %v1342_v55  ;;  %v1280_v7 = vsub.f32 %v7206_v42, %v5531_v6  ;;  %v7208_v49 = vmax.f32 %v7207_v15, 0.0 }
 0x1f0   :  { %7198 = vst [vmem:[#allocation56_spill] sm:$0xff] %v5650_v40  ;;  %v1279_v45 = vsub.f32 %v7200_v5, %v5531_v6  ;;  %v5659_v0 = vpop.eup %3128  ;;  %v2270_v57 = vadd.f32 %v5650_v40, %v5643_v3  ;;  %3144 = vpow2.f32 %v1451_v48  ;;  %v2151_v55 = vmul.f32 1.442695, %v1947_v14  ;;  %v7210_v6 = vld [vmem:[#allocation65_spill] sm:$0xff] }
 0x1f1   :  { %v5655_v50 = vpop.xlane.xlu1 %1214  ;;  %7201 = vst [vmem:[#allocation57_spill] sm:$0xff] %v5659_v0  ;;  %v5662_v25 = vpop.eup %3130  ;;  %v1343_v18 = vsub.f32 %v7208_v49, %v5539_v20  ;;  %3146 = vpow2.f32 %v1453_v54  ;;  %v7211_v46 = vmax.f32 %v7210_v6, 0.0  ;;  %v2153_v8 = vmul.f32 1.442695, %v1948_v27  ;;  %v7215_v14 = vld [vmem:[#allocation69_spill] sm:$0xff]  ;;  %v7217_v27 = vld [vmem:[#allocation60_spill] sm:$0xff] }
 0x1f2   :  { %v5657_v9 = vpop.xlane.xlu2 %1646  ;;  %7203 = vst [vmem:[#allocation63_spill] sm:$0xff] %v5662_v25  ;;  %v3133_v5 = vpop.eup %3132  ;;  %v1455_v10 = vmul.f32 1.442695, %v1279_v45  ;;  %3148 = vpow2.f32 %v1579_v37  ;;  %v1457_v45 = vmul.f32 1.442695, %v1280_v7  ;;  %v7216_v49 = vmax.f32 %v7215_v14, 0.0 }
 0x1f3   :  { %v3135_v13 = vpop.eup %3134  ;;  %v1344_v42 = vsub.f32 %v7211_v46, %v5539_v20  ;;  %3150 = vpow2.f32 %v1581_v39  ;;  %v1583_v54 = vmul.f32 1.442695, %v1343_v18  ;;  %v1885_v37 = vmul.f32 %v3133_v5, %v7217_v27  ;;  %v7219_v7 = vld [vmem:[#allocation61_spill] sm:$0xff]  ;;  %v7221_v14 = vld [vmem:[#allocation66_spill] sm:$0xff]  ;;  %v7223_v27 = vld [vmem:[#allocation67_spill] sm:$0xff] }
 0x1f4   :  { %1775 = vadd.xlane.f32.xlu0 %v1774_v17  ;;  %v5677_v2 = vpop.eup %3136  ;;  %3152 = vpow2.f32 %v1455_v10  ;;  %v1281_v20 = vsub.f32 %v7216_v49, %v5579_v63  ;;  %v1886_v46 = vmul.f32 %v3133_v5, %v7219_v7  ;;  %v1949_v49 = vmul.f32 %v3135_v13, %v7221_v14 }
 0x1f5   :  { %7209 = vst [vmem:[#allocation58_spill] sm:$0xff] %v5677_v2  ;;  %v5682_v1 = vpop.eup %3138  ;;  %v1585_v6 = vmul.f32 1.442695, %v1344_v42  ;;  %3154 = vpow2.f32 %v2151_v55  ;;  %v1777_v42 = vadd.f32 %v5662_v25, %v5659_v0  ;;  %v1950_v40 = vmul.f32 %v3135_v13, %v7223_v27 }
 0x1f6   :  { %1682 = vadd.xlane.f32.xlu2 %v1681_v33  ;;  %2271 = vadd.xlane.f32.xlu1 %v2270_v57  ;;  %7212 = vst [vmem:[#allocation59_spill] sm:$0xff] %v5682_v1  ;;  %v5684_v48 = vpop.eup %3140  ;;  %v2366_v10 = vadd.f32 %v5682_v1, %v5677_v2  ;;  %3156 = vpow2.f32 %v2153_v8  ;;  %v1459_v5 = vmul.f32 1.442695, %v1281_v20  ;;  %v2027_v8 = vmul.f32 1.442695, %v1885_v37  ;;  %v7256_v2 = vld [vmem:[#allocation5_spill] sm:$0xff] }
 0x1f7   :  { %7213 = vst [vmem:[#allocation62_spill] sm:$0xff] %v5684_v48  ;;  %v5686_v15 = vpop.xlane.xlu0 %1121  ;;  %v5688_v17 = vpop.eup %3142  ;;  %3158 = vpow2.f32 %v1457_v45  ;;  %v7225_v45 = vld [vmem:[#allocation68_spill] sm:$0xff]  ;;  %v2029_v25 = vmul.f32 1.442695, %v1886_v46  ;;  %v2155_v13 = vmul.f32 1.442695, %v1949_v49 }
 0x1f8   :  { %7214 = vst [vmem:[#allocation64_spill] sm:$0xff] %v5688_v17  ;;  %v5698_v39 = vpop.eup %3144  ;;  %v2273_v36 = vadd.f32 %v5688_v17, %v5684_v48  ;;  %3160 = vpow2.f32 %v1583_v54  ;;  %v7226_v14 = vmax.f32 %v7225_v45, 0.0  ;;  %v7229_v54 = vld [vmem:[#allocation7_spill] sm:$0xff]  ;;  %v7235_v45 = vld [vmem:[#allocation73_spill] sm:$0xff] }
 0x1f9   :  { %v5693_v33 = vpop.xlane.xlu1 %1742  ;;  %7218 = vst [vmem:[#allocation65_spill] sm:$0xff] %v5698_v39  ;;  %v5703_v18 = vpop.eup %3146  ;;  %3162 = vpow2.f32 %v1585_v6  ;;  %v7230_v20 = vmax.f32 %v7229_v54, 0.0 }
 0x1fa   :  { %v5695_v57 = vpop.xlane.xlu2 %1217  ;;  %7220 = vst [vmem:[#allocation69_spill] sm:$0xff] %v5703_v18  ;;  %v5710_v55 = vpop.eup %3148  ;;  %v1282_v1 = vsub.f32 %v7226_v14, %v5579_v63  ;;  %3164 = vrcp.f32 %v5573_v38  ;;  %v2157_v63 = vmul.f32 1.442695, %v1950_v40  ;;  %v7236_v14 = vmax.f32 %v7235_v45, 0.0  ;;  %v7238_v40 = vld [vmem:[#allocation6_spill] sm:$0xff] }
 0x1fb   :  { %7222 = vst [vmem:[#allocation60_spill] sm:$0xff] %v5710_v55  ;;  %v5713_v7 = vpop.eup %3150  ;;  %3166 = vrcp.f32 %v5577_v12  ;;  %v1345_v37 = vsub.f32 %v7230_v20, %v5606_v16 }
 0x1fc   :  { %2367 = vadd.xlane.f32.xlu0 %v2366_v10  ;;  %7224 = vst [vmem:[#allocation61_spill] sm:$0xff] %v5713_v7  ;;  %v5718_v17 = vpop.eup %3152  ;;  %3168 = vpow2.f32 %v1459_v5  ;;  %v1461_v12 = vmul.f32 1.442695, %v1282_v1  ;;  %v1283_v54 = vsub.f32 %v7236_v14, %v5614_v23  ;;  %v7239_v5 = vmax.f32 %v7238_v40, 0.0 }
 0x1fd   :  { %7227 = vst [vmem:[#allocation66_spill] sm:$0xff] %v5718_v17  ;;  %v5721_v0 = vpop.eup %3154  ;;  %3170 = vpow2.f32 %v2027_v8  ;;  %v1780_v1 = vadd.f32 %v5713_v7, %v5710_v55 }
 0x1fe   :  { %2274 = vadd.xlane.f32.xlu2 %v2273_v36  ;;  %1778 = vadd.xlane.f32.xlu1 %v1777_v42  ;;  %7228 = vst [vmem:[#allocation67_spill] sm:$0xff] %v5721_v0  ;;  %v5729_v10 = vpop.eup %3156  ;;  %v7232_v36 = vld [vmem:[#allocation74_spill] sm:$0xff]  ;;  %v1284_v48 = vsub.f32 %v7239_v5, %v5614_v23  ;;  %3172 = vpow2.f32 %v2029_v25  ;;  %v1463_v23 = vmul.f32 1.442695, %v1283_v54  ;;  %v7241_v5 = vld [vmem:[#allocation8_spill] sm:$0xff] }
 0x1ff   :  { %v5727_v6 = vpop.xlane.xlu0 %1649  ;;  %7231 = vst [vmem:[#allocation68_spill] sm:$0xff] %v5729_v10  ;;  %v7233_v46 = vmax.f32 %v7232_v36, 0.0  ;;  %v5738_v49 = vpop.eup %3158  ;;  %v2369_v45 = vadd.f32 %v5729_v10, %v5721_v0  ;;  %3174 = vpow2.f32 %v2155_v13  ;;  %v7242_v25 = vmax.f32 %v7241_v5, 0.0  ;;  %v7244_v13 = vld [vmem:[#allocation77_spill] sm:$0xff]  ;;  %v7248_v54 = vld [vmem:[#allocation70_spill] sm:$0xff] }
 0x200   :  { %7234 = vst [vmem:[#allocation7_spill] sm:$0xff] %v5738_v49  ;;  %v5743_v20 = vpop.eup %3160  ;;  %3176 = vpow2.f32 %v2157_v63  ;;  %v1465_v7 = vmul.f32 1.442695, %v1284_v48  ;;  %v7245_v10 = vmax.f32 %v7244_v13, 0.0  ;;  %v7253_v13 = vld [vmem:[#allocation71_spill] sm:$0xff] }
 0x201   :  { %v1346_v42 = vsub.f32 %v7233_v46, %v5606_v16  ;;  %v5736_v27 = vpop.xlane.xlu1 %1124  ;;  %7237 = vst [vmem:[#allocation74_spill] sm:$0xff] %v5743_v20  ;;  %v1684_v16 = vadd.f32 %v5703_v18, %v5698_v39  ;;  %v5750_v36 = vpop.eup %3162  ;;  %v1587_v46 = vmul.f32 1.442695, %v1345_v37  ;;  %3178 = vpow2.f32 %v1461_v12 }
 0x202   :  { %v5734_v38 = vpop.xlane.xlu2 %1745  ;;  %7240 = vst [vmem:[#allocation73_spill] sm:$0xff] %v5750_v36  ;;  %v3165_v8 = vpop.eup %3164  ;;  %v1347_v18 = vsub.f32 %v7242_v25, %v5655_v50  ;;  %3180 = vrcp.f32 %v5612_v35 }
 0x203   :  { %v1589_v14 = vmul.f32 1.442695, %v1346_v42  ;;  %v3167_v40 = vpop.eup %3166  ;;  %v1348_v42 = vsub.f32 %v7245_v10, %v5655_v50  ;;  %3182 = vpow2.f32 %v1587_v46  ;;  %v1887_v5 = vmul.f32 %v3165_v8, %v7248_v54  ;;  %v7250_v50 = vld [vmem:[#allocation80_spill] sm:$0xff] }
 0x204   :  { %1685 = vadd.xlane.f32.xlu0 %v1684_v16  ;;  %v5759_v37 = vpop.eup %3168  ;;  %v1591_v48 = vmul.f32 1.442695, %v1347_v18  ;;  %v7251_v10 = vmax.f32 %v7250_v50, 0.0  ;;  %v1888_v0 = vmul.f32 %v3165_v8, %v7253_v13  ;;  %v1952_v3 = vmul.f32 %v3167_v40, %v7256_v2  ;;  %v7261_v2 = vld [vmem:[#allocation81_spill] sm:$0xff] }
 0x205   :  { %7243 = vst [vmem:[#allocation6_spill] sm:$0xff] %v5759_v37  ;;  %v5765_v16 = vpop.eup %3170  ;;  %3184 = vpow2.f32 %v1589_v14  ;;  %v1593_v55 = vmul.f32 1.442695, %v1348_v42  ;;  %v7255_v14 = vld [vmem:[#allocation72_spill] sm:$0xff] }
 0x206   :  { %1781 = vadd.xlane.f32.xlu2 %v1780_v1  ;;  %2370 = vadd.xlane.f32.xlu1 %v2369_v45  ;;  %7246 = vst [vmem:[#allocation8_spill] sm:$0xff] %v5765_v16  ;;  %v5769_v12 = vpop.eup %3172  ;;  %3186 = vpow2.f32 %v1463_v23  ;;  %v1285_v25 = vsub.f32 %v7251_v10, %v5686_v15  ;;  %v1951_v39 = vmul.f32 %v3167_v40, %v7255_v14  ;;  %v2031_v10 = vmul.f32 1.442695, %v1887_v5 }
 0x207   :  { %v5767_v63 = vpop.xlane.xlu0 %1220  ;;  %7247 = vst [vmem:[#allocation77_spill] sm:$0xff] %v5769_v12  ;;  %v5776_v35 = vpop.eup %3174  ;;  %3188 = vpow2.f32 %v1465_v7  ;;  %v2276_v23 = vadd.f32 %v5769_v12, %v5765_v16  ;;  %v1687_v7 = vadd.f32 %v5738_v49, %v5718_v17  ;;  %v2033_v5 = vmul.f32 1.442695, %v1888_v0  ;;  %v7285_v16 = vld [vmem:[#allocation12_spill] sm:$0xff] }
 0x208   :  { %7249 = vst [vmem:[#allocation70_spill] sm:$0xff] %v5776_v35  ;;  %v5781_v46 = vpop.eup %3176  ;;  %3190 = vrcp.f32 %v5648_v43  ;;  %v7258_v43 = vld [vmem:[#allocation11_spill] sm:$0xff]  ;;  %v1467_v14 = vmul.f32 1.442695, %v1285_v25  ;;  %v2159_v17 = vmul.f32 1.442695, %v1951_v39 }
 0x209   :  { %v5772_v1 = vpop.xlane.xlu1 %1652  ;;  %7252 = vst [vmem:[#allocation80_spill] sm:$0xff] %v5781_v46  ;;  %v5784_v54 = vpop.eup %3178  ;;  %v2372_v18 = vadd.f32 %v5781_v46, %v5776_v35  ;;  %3192 = vrcp.f32 %v5657_v9  ;;  %v7259_v42 = vmax.f32 %v7258_v43, 0.0  ;;  %v7262_v9 = vmax.f32 %v7261_v2, 0.0  ;;  %v7265_v25 = vld [vmem:[#allocation82_spill] sm:$0xff] }
 0x20a   :  { %v5774_v45 = vpop.xlane.xlu2 %1127  ;;  %7254 = vst [vmem:[#allocation71_spill] sm:$0xff] %v5784_v54  ;;  %v5792_v50 = vpop.eup %3180  ;;  %3194 = vpow2.f32 %v1591_v48 }
 0x20b   :  { %v5798_v8 = vpop.eup %3182  ;;  %v1286_v13 = vsub.f32 %v7259_v42, %v5686_v15  ;;  %3196 = vpow2.f32 %v1593_v55  ;;  %v1349_v40 = vsub.f32 %v7262_v9, %v5695_v57  ;;  %v2161_v15 = vmul.f32 1.442695, %v1952_v3 }
 0x20c   :  { %7257 = vst [vmem:[#allocation72_spill] sm:$0xff] %v5798_v8  ;;  %2277 = vadd.xlane.f32.xlu0 %v2276_v23  ;;  %v5803_v46 = vpop.eup %3184  ;;  %3198 = vrcp.f32 %v5693_v33  ;;  %v7266_v23 = vmax.f32 %v7265_v25, 0.0  ;;  %v1783_v3 = vadd.f32 %v5750_v36, %v5743_v20  ;;  %v1690_v9 = vadd.f32 %v5784_v54, %v5759_v37  ;;  %v7269_v25 = vld [vmem:[#allocation86_spill] sm:$0xff]  ;;  %v7280_v37 = vld [vmem:[#allocation75_spill] sm:$0xff] }
 0x20d   :  { %7260 = vst [vmem:[#allocation5_spill] sm:$0xff] %v5803_v46  ;;  %v5808_v49 = vpop.eup %3186  ;;  %3200 = vpow2.f32 %v2031_v10  ;;  %v1595_v39 = vmul.f32 1.442695, %v1349_v40 }
 0x20e   :  { %2373 = vadd.xlane.f32.xlu2 %v2372_v18  ;;  %1688 = vadd.xlane.f32.xlu1 %v1687_v7  ;;  %7263 = vst [vmem:[#allocation11_spill] sm:$0xff] %v5808_v49  ;;  %v5811_v43 = vpop.eup %3188  ;;  %v1350_v18 = vsub.f32 %v7266_v23, %v5695_v57  ;;  %3202 = vpow2.f32 %v1467_v14  ;;  %v1469_v7 = vmul.f32 1.442695, %v1286_v13  ;;  %v7270_v14 = vmax.f32 %v7269_v25, 0.0 }
 0x20f   :  { %v1749_v48 = vpop.xlane.xlu0 %1748  ;;  %7264 = vst [vmem:[#allocation81_spill] sm:$0xff] %v5811_v43  ;;  %v5816_v42 = vpop.eup %3190  ;;  %3204 = vpow2.f32 %v2033_v5  ;;  %v7271_v5 = vld [vmem:[#allocation85_spill] sm:$0xff] }
 0x210   :  { %v5818_v2 = vpop.eup %3192  ;;  %3206 = vpow2.f32 %v2159_v17  ;;  %v1597_v10 = vmul.f32 1.442695, %v1350_v18  ;;  %v1287_v13 = vsub.f32 %v7270_v14, %v5736_v27  ;;  %v7272_v40 = vmax.f32 %v7271_v5, 0.0  ;;  %v7274_v18 = vld [vmem:[#allocation91_spill] sm:$0xff] }
 0x211   :  { %v1224_v0 = vpop.xlane.xlu1 %1223  ;;  %v5820_v33 = vpop.eup %3194  ;;  %3208 = vpow2.f32 %v2161_v15  ;;  %v7275_v54 = vmax.f32 %v7274_v18, 0.0  ;;  %v1889_v18 = vmul.f32 %v5792_v50, %v7280_v37 }
 0x212   :  { %v1656_v55 = vpop.xlane.xlu2 %1655  ;;  %7267 = vst [vmem:[#allocation82_spill] sm:$0xff] %v5820_v33  ;;  %v5826_v57 = vpop.eup %3196  ;;  %3210 = vpow2.f32 %v1469_v7  ;;  %v1288_v35 = vsub.f32 %v7272_v40, %v5736_v27  ;;  %v1471_v7 = vmul.f32 1.442695, %v1287_v13  ;;  %v7277_v27 = vld [vmem:[#allocation92_spill] sm:$0xff] }
 0x213   :  { %7268 = vst [vmem:[#allocation103_spill] sm:$0xff] %v5826_v57  ;;  %v5831_v23 = vpop.eup %3198  ;;  %3212 = vpow2.f32 %v1595_v39  ;;  %v1351_v25 = vsub.f32 %v7275_v54, %v5767_v63  ;;  %v2035_v12 = vmul.f32 1.442695, %v1889_v18 }
 0x214   :  { %1784 = vadd.xlane.f32.xlu0 %v1783_v3  ;;  %v5836_v36 = vpop.eup %3200  ;;  %3214 = vrcp.f32 %v1749_v48  ;;  %v7278_v3 = vmax.f32 %v7277_v27, 0.0  ;;  %v1473_v54 = vmul.f32 1.442695, %v1288_v35 }
 0x215   :  { %7273 = vst [vmem:[#allocation86_spill] sm:$0xff] %v5836_v36  ;;  %v5838_v17 = vpop.eup %3202  ;;  %3216 = vpow2.f32 %v1597_v10 }
 0x216   :  { %1691 = vadd.xlane.f32.xlu2 %v1690_v9  ;;  %v5845_v14 = vpop.eup %3204  ;;  %v1352_v9 = vsub.f32 %v7278_v3, %v5767_v63  ;;  %3218 = vrcp.f32 %v5727_v6  ;;  %v7282_v63 = vld [vmem:[#allocation76_spill] sm:$0xff]  ;;  %v1599_v3 = vmul.f32 1.442695, %v1351_v25 }
 0x217   :  { %v5843_v15 = vpop.xlane.xlu0 %1130  ;;  %7276 = vst [vmem:[#allocation85_spill] sm:$0xff] %v5845_v14  ;;  %v5852_v39 = vpop.eup %3206  ;;  %v2279_v48 = vadd.f32 %v5845_v14, %v5836_v36  ;;  %3220 = vrcp.f32 %v5734_v38  ;;  %v1890_v27 = vmul.f32 %v5792_v50, %v7282_v63  ;;  %v7283_v14 = vld [vmem:[#allocation13_spill] sm:$0xff]  ;;  %v7286_v50 = vmax.f32 %v7285_v16, 0.0 }
 0x218   :  { %7279 = vst [vmem:[#allocation91_spill] sm:$0xff] %v5852_v39  ;;  %v5859_v10 = vpop.eup %3208  ;;  %3222 = vrcp.f32 %v1656_v55  ;;  %v1601_v35 = vmul.f32 1.442695, %v1352_v9  ;;  %v7284_v36 = vmax.f32 %v7283_v14, 0.0 }
 0x219   :  { %v1752_v5 = vpop.xlane.xlu1 %1751  ;;  %7281 = vst [vmem:[#allocation92_spill] sm:$0xff] %v5859_v10  ;;  %v5862_v13 = vpop.eup %3210  ;;  %2280 = vadd.xlane.f32.xlu1 %v2279_v48  ;;  %v2375_v37 = vadd.f32 %v5859_v10, %v5852_v39  ;;  %3224 = vpow2.f32 %v1471_v7  ;;  %v1290_v25 = vsub.f32 %v7286_v50, %v5774_v45  ;;  %v7287_v48 = vmax.f32 %v5177_v32, 0.0  ;;  %v7290_v10 = vld [vmem:[#allocation15_spill] sm:$0xff] }
 0x21a   :  { %v5850_v40 = vpop.xlane.xlu2 %1226  ;;  %v5868_v6 = vpop.eup %3212  ;;  %v1289_v20 = vsub.f32 %v7284_v36, %v5774_v45  ;;  %3226 = vpow2.f32 %v1473_v54  ;;  %v2037_v63 = vmul.f32 1.442695, %v1890_v27  ;;  %v7288_v36 = vmax.f32 %v5180_v53, 0.0  ;;  %v7289_v45 = vld [vmem:[#allocation14_spill] sm:$0xff] }
 0x21b   :  { %v3215_v38 = vpop.eup %3214  ;;  %3228 = vrcp.f32 %v5772_v1  ;;  %v1353_v7 = vsub.f32 %v7287_v48, %v1224_v0  ;;  %v1477_v48 = vmul.f32 1.442695, %v1290_v25  ;;  %v1786_v53 = vadd.f32 %v5803_v46, %v5798_v8  ;;  %v7293_v25 = vld [vmem:[#allocation16_spill] sm:$0xff] }
 0x21c   :  { %2376 = vadd.xlane.f32.xlu0 %v2375_v37  ;;  %v5876_v55 = vpop.eup %3216  ;;  %3230 = vpow2.f32 %v1599_v3  ;;  %v1354_v14 = vsub.f32 %v7288_v36, %v1224_v0  ;;  %v1475_v16 = vmul.f32 1.442695, %v1289_v20  ;;  %v1959_v37 = vmul.f32 %v3215_v38, %v7289_v45  ;;  %v7291_v3 = vld [vmem:[#allocation9_spill] sm:$0xff]  ;;  %v7292_v45 = vld [vmem:[#allocation78_spill] sm:$0xff] }
 0x21d   :  { %v5881_v9 = vpop.eup %3218  ;;  %3232 = vpow2.f32 %v1601_v35  ;;  %v1960_v27 = vmul.f32 %v3215_v38, %v7290_v10  ;;  %v1953_v35 = vmul.f32 %v5816_v42, %v7291_v3  ;;  %v1603_v20 = vmul.f32 1.442695, %v1353_v7  ;;  %v7294_v7 = vld [vmem:[#allocation17_spill] sm:$0xff] }
 0x21e   :  { %v5887_v54 = vpop.eup %3220  ;;  %3234 = vpow2.f32 %v2035_v12  ;;  %v1954_v39 = vmul.f32 %v5816_v42, %v7292_v45  ;;  %v1605_v56 = vmul.f32 1.442695, %v1354_v14  ;;  %v1693_v12 = vadd.f32 %v5811_v43, %v5808_v49  ;;  %v7296_v14 = vld [vmem:[#allocation96_spill] sm:$0xff] }
 0x21f   :  { %v5885_v18 = vpop.xlane.xlu0 %1658  ;;  %v3223_v32 = vpop.eup %3222  ;;  %3236 = vrcp.f32 %v1752_v5  ;;  %v2175_v38 = vmul.f32 1.442695, %v1959_v37  ;;  %v2177_v5 = vmul.f32 1.442695, %v1960_v27  ;;  %v7299_v37 = vld [vmem:[#allocation95_spill] sm:$0xff] }
 0x220   :  { %v5897_v0 = vpop.eup %3224  ;;  %3238 = vpow2.f32 %v2037_v63  ;;  %v1897_v46 = vmul.f32 %v3223_v32, %v7293_v25  ;;  %v1898_v8 = vmul.f32 %v3223_v32, %v7294_v7  ;;  %v2163_v63 = vmul.f32 1.442695, %v1953_v35 }
 0x221   :  { %v5892_v1 = vpop.xlane.xlu1 %1133  ;;  %v5901_v36 = vpop.eup %3226  ;;  %1787 = vadd.xlane.f32.xlu1 %v1786_v53  ;;  %3240 = vpow2.f32 %v1475_v16  ;;  %v7297_v53 = vmax.f32 %v7296_v14, 0.0  ;;  %v2165_v16 = vmul.f32 1.442695, %v1954_v39  ;;  %v7300_v25 = vmax.f32 %v7299_v37, 0.0 }
 0x222   :  { %v5890_v50 = vpop.xlane.xlu2 %1754  ;;  %v5907_v10 = vpop.eup %3228  ;;  %3242 = vpow2.f32 %v1477_v48  ;;  %v7301_v35 = vmax.f32 %v5220_v60, 0.0 }
 0x223   :  { %v5910_v3 = vpop.eup %3230  ;;  %3244 = vpow2.f32 %v1603_v20  ;;  %v1291_v45 = vsub.f32 %v7297_v53, %v5843_v15  ;;  %v1292_v48 = vsub.f32 %v7300_v25, %v5843_v15  ;;  %v7303_v15 = vmax.f32 %v5223_v24, 0.0  ;;  %v7305_v25 = vld [vmem:[#allocation79_spill] sm:$0xff] }
 0x224   :  { %1694 = vadd.xlane.f32.xlu0 %v1693_v12  ;;  %v5913_v42 = vpop.eup %3232  ;;  %3246 = vpow2.f32 %v1605_v56  ;;  %v2051_v12 = vmul.f32 1.442695, %v1897_v46  ;;  %v1355_v20 = vsub.f32 %v7301_v35, %v5850_v40  ;;  %v2053_v56 = vmul.f32 1.442695, %v1898_v8  ;;  %v7306_v8 = vld [vmem:[#allocation18_spill] sm:$0xff] }
 0x225   :  { %7295 = vst [vmem:[#allocation75_spill] sm:$0xff] %v5913_v42  ;;  %v5918_v43 = vpop.eup %3234  ;;  %3248 = vpow2.f32 %v2175_v38  ;;  %v1356_v39 = vsub.f32 %v7303_v15, %v5850_v40  ;;  %v1479_v38 = vmul.f32 1.442695, %v1291_v45  ;;  %v1891_v35 = vmul.f32 %v5818_v2, %v7305_v25  ;;  %v7308_v45 = vld [vmem:[#allocation10_spill] sm:$0xff] }
 0x226   :  { %7298 = vst [vmem:[#allocation76_spill] sm:$0xff] %v5918_v43  ;;  %v3237_v32 = vpop.eup %3236  ;;  %3250 = vpow2.f32 %v2177_v5  ;;  %v1481_v49 = vmul.f32 1.442695, %v1292_v48  ;;  %v1607_v40 = vmul.f32 1.442695, %v1355_v20 }
 0x227   :  { %v5923_v27 = vpop.xlane.xlu0 %1229  ;;  %v5932_v53 = vpop.eup %3238  ;;  %3252 = vpow2.f32 %v2163_v63  ;;  %v1961_v24 = vmul.f32 %v3237_v32, %v7306_v8  ;;  %v7309_v63 = vld [vmem:[#allocation83_spill] sm:$0xff]  ;;  %v1609_v59 = vmul.f32 1.442695, %v1356_v39  ;;  %v2039_v48 = vmul.f32 1.442695, %v1891_v35 }
 0x228   :  { %7302 = vst [vmem:[#allocation13_spill] sm:$0xff] %v5932_v53  ;;  %v5937_v37 = vpop.eup %3240  ;;  %v2282_v46 = vadd.f32 %v5932_v53, %v5918_v43  ;;  %3254 = vpow2.f32 %v2165_v16  ;;  %v1892_v53 = vmul.f32 %v5818_v2, %v7308_v45  ;;  %v1955_v43 = vmul.f32 %v5831_v23, %v7309_v63  ;;  %v7314_v2 = vld [vmem:[#allocation19_spill] sm:$0xff] }
 0x229   :  { %v5930_v14 = vpop.xlane.xlu1 %1661  ;;  %v5941_v60 = vpop.eup %3242  ;;  %3256 = vpow2.f32 %v2051_v12  ;;  %v7312_v12 = vld [vmem:[#allocation84_spill] sm:$0xff]  ;;  %v1962_v45 = vmul.f32 %v3237_v32, %v7314_v2  ;;  %v2179_v4 = vmul.f32 1.442695, %v1961_v24  ;;  %v1789_v32 = vadd.f32 %v5826_v57, %v5820_v33 }
 0x22a   :  { %v5928_v7 = vpop.xlane.xlu2 %1664  ;;  %7304 = vst [vmem:[#allocation12_spill] sm:$0xff] %v5941_v60  ;;  %v5945_v5 = vpop.eup %3244  ;;  %2283 = vadd.xlane.f32.xlu2 %v2282_v46  ;;  %3258 = vpow2.f32 %v2053_v56  ;;  %v1956_v20 = vmul.f32 %v5831_v23, %v7312_v12  ;;  %v2167_v58 = vmul.f32 1.442695, %v1955_v43  ;;  %v7325_v57 = vld [vmem:[#allocation20_spill] sm:$0xff] }
 0x22b   :  { %v5948_v15 = vpop.eup %3246  ;;  %3260 = vpow2.f32 %v1479_v38  ;;  %v2041_v38 = vmul.f32 1.442695, %v1892_v53 }
 0x22c   :  { %7307 = vst [vmem:[#allocation14_spill] sm:$0xff] %v5948_v15  ;;  %v5954_v25 = vpop.eup %3248  ;;  %3262 = vpow2.f32 %v1481_v49  ;;  %v7316_v49 = vmax.f32 %v5278_v47, 0.0  ;;  %v2169_v12 = vmul.f32 1.442695, %v1956_v20  ;;  %v7318_v20 = vmax.f32 %v5310_v41, 0.0 }
 0x22d   :  { %7310 = vst [vmem:[#allocation15_spill] sm:$0xff] %v5954_v25  ;;  %v5956_v16 = vpop.eup %3250  ;;  %3264 = vpow2.f32 %v1607_v40 }
 0x22e   :  { %7311 = vst [vmem:[#allocation9_spill] sm:$0xff] %v5956_v16  ;;  %v5962_v8 = vpop.eup %3252  ;;  %3266 = vpow2.f32 %v1609_v59  ;;  %v1293_v23 = vsub.f32 %v7316_v49, %v5892_v1  ;;  %v7317_v59 = vmax.f32 %v5275_v26, 0.0 }
 0x22f   :  { %v5960_v46 = vpop.xlane.xlu0 %1757  ;;  %7313 = vst [vmem:[#allocation78_spill] sm:$0xff] %v5962_v8  ;;  %v5967_v63 = vpop.eup %3254  ;;  %3268 = vrcp.f32 %v5885_v18  ;;  %v2181_v18 = vmul.f32 1.442695, %v1962_v45 }
 0x230   :  { %7315 = vst [vmem:[#allocation16_spill] sm:$0xff] %v5967_v63  ;;  %v5969_v35 = vpop.eup %3256  ;;  %v2378_v24 = vadd.f32 %v5967_v63, %v5962_v8  ;;  %v1294_v43 = vsub.f32 %v7317_v59, %v5892_v1  ;;  %3270 = vpow2.f32 %v2039_v48  ;;  %v1483_v49 = vmul.f32 1.442695, %v1293_v23  ;;  %v7319_v1 = vld [vmem:[#allocation87_spill] sm:$0xff] }
 0x231   :  { %v5965_v39 = vpop.xlane.xlu1 %1760  ;;  %v5979_v40 = vpop.eup %3258  ;;  %3272 = vpow2.f32 %v2179_v4  ;;  %v1357_v63 = vsub.f32 %v7318_v20, %v5923_v27  ;;  %v1893_v48 = vmul.f32 %v5881_v9, %v7319_v1  ;;  %v1696_v1 = vadd.f32 %v5862_v13, %v5838_v17 }
 0x232   :  { %v2257_v56 = vpop.xlane.xlu2 %2256  ;;  %v5984_v53 = vpop.eup %3260  ;;  %1790 = vadd.xlane.f32.xlu2 %v1789_v32  ;;  %2379 = vadd.xlane.f32.xlu1 %v2378_v24  ;;  %3274 = vpow2.f32 %v2041_v38  ;;  %v1485_v4 = vmul.f32 1.442695, %v1294_v43  ;;  %v7320_v24 = vld [vmem:[#allocation88_spill] sm:$0xff] }
 0x233   :  { %v5986_v47 = vpop.eup %3262  ;;  %3276 = vpow2.f32 %v2167_v58  ;;  %v1894_v38 = vmul.f32 %v5881_v9, %v7320_v24  ;;  %v7322_v58 = vmax.f32 %v5316_v11, 0.0 }
 0x234   :  { %v5988_v2 = vpop.eup %3264  ;;  %3278 = vpow2.f32 %v2169_v12  ;;  %v1611_v12 = vmul.f32 1.442695, %v1357_v63 }
 0x235   :  { %v5993_v26 = vpop.eup %3266  ;;  %3280 = vpow2.f32 %v2181_v18  ;;  %v1358_v20 = vsub.f32 %v7322_v58, %v5923_v27  ;;  %v2043_v18 = vmul.f32 1.442695, %v1893_v48  ;;  %v7327_v48 = vld [vmem:[#allocation89_spill] sm:$0xff] }
 0x236   :  { %v3269_v32 = vpop.eup %3268  ;;  %3282 = vrcp.f32 %v5890_v50  ;;  %v2045_v50 = vmul.f32 1.442695, %v1894_v38 }
 0x237   :  { %v5997_v45 = vpop.xlane.xlu0 %1667  ;;  %v6003_v41 = vpop.eup %3270  ;;  %3284 = vpow2.f32 %v1483_v49  ;;  %v1899_v24 = vmul.f32 %v3269_v32, %v5282_v61  ;;  %v1900_v33 = vmul.f32 %v3269_v32, %v7325_v57  ;;  %v1613_v63 = vmul.f32 1.442695, %v1358_v20 }
 0x238   :  { %7321 = vst [vmem:[#allocation17_spill] sm:$0xff] %v6003_v41  ;;  %v6009_v43 = vpop.eup %3272  ;;  %3286 = vpow2.f32 %v1485_v4  ;;  %v1957_v61 = vmul.f32 %v5887_v54, %v7327_v48  ;;  %v7331_v48 = vld [vmem:[#allocation93_spill] sm:$0xff] }
 0x239   :  { %v2353_v59 = vpop.xlane.xlu1 %2352  ;;  %v6013_v9 = vpop.eup %3274  ;;  %3288 = vrcp.f32 %v5928_v7  ;;  %v7328_v7 = vld [vmem:[#allocation90_spill] sm:$0xff]  ;;  %v2055_v38 = vmul.f32 1.442695, %v1899_v24 }
 0x23a   :  { %v6001_v23 = vpop.xlane.xlu2 %1763  ;;  %7323 = vst [vmem:[#allocation96_spill] sm:$0xff] %v6013_v9  ;;  %v6016_v8 = vpop.eup %3276  ;;  %v2285_v11 = vadd.f32 %v6013_v9, %v6003_v41  ;;  %1697 = vadd.xlane.f32.xlu1 %v1696_v1  ;;  %3290 = vrcp.f32 %v2257_v56  ;;  %v1958_v32 = vmul.f32 %v5887_v54, %v7328_v7  ;;  %v2057_v56 = vmul.f32 1.442695, %v1900_v33 }
 0x23b   :  { %7324 = vst [vmem:[#allocation95_spill] sm:$0xff] %v6016_v8  ;;  %v6022_v27 = vpop.eup %3278  ;;  %3292 = vpow2.f32 %v1611_v12  ;;  %v2171_v24 = vmul.f32 1.442695, %v1957_v61 }
 0x23c   :  { %7326 = vst [vmem:[#allocation79_spill] sm:$0xff] %v6022_v27  ;;  %v6024_v49 = vpop.eup %3280  ;;  %2286 = vadd.xlane.f32.xlu0 %v2285_v11  ;;  %v2381_v57 = vadd.f32 %v6022_v27, %v6016_v8  ;;  %3294 = vpow2.f32 %v2043_v18  ;;  %v1895_v27 = vmul.f32 %v5907_v10, %v7331_v48  ;;  %v2173_v33 = vmul.f32 1.442695, %v1958_v32  ;;  %v7334_v48 = vld [vmem:[#allocation21_spill] sm:$0xff] }
 0x23d   :  { %v3283_v4 = vpop.eup %3282  ;;  %3296 = vpow2.f32 %v2045_v50  ;;  %v1792_v8 = vadd.f32 %v5876_v55, %v5868_v6 }
 0x23e   :  { %v6034_v20 = vpop.eup %3284  ;;  %2382 = vadd.xlane.f32.xlu2 %v2381_v57  ;;  %3298 = vpow2.f32 %v1613_v63  ;;  %v1963_v18 = vmul.f32 %v3283_v4, %v5292_v44  ;;  %v7332_v57 = vld [vmem:[#allocation94_spill] sm:$0xff]  ;;  %v1964_v63 = vmul.f32 %v3283_v4, %v7334_v48 }
 0x23f   :  { %v6032_v58 = vpop.xlane.xlu0 %2259  ;;  %7329 = vst [vmem:[#allocation18_spill] sm:$0xff] %v6034_v20  ;;  %v6040_v11 = vpop.eup %3286  ;;  %3300 = vrcp.f32 %v5930_v14  ;;  %v1896_v50 = vmul.f32 %v5907_v10, %v7332_v57  ;;  %v2047_v14 = vmul.f32 1.442695, %v1895_v27 }
 0x240   :  { %7330 = vst [vmem:[#allocation10_spill] sm:$0xff] %v6040_v11  ;;  %v3289_v54 = vpop.eup %3288  ;;  %3302 = vpow2.f32 %v2055_v38  ;;  %v2183_v10 = vmul.f32 1.442695, %v1963_v18  ;;  %v7335_v38 = vld [vmem:[#allocation24_spill] sm:$0xff]  ;;  %v2185_v18 = vmul.f32 1.442695, %v1964_v63 }
 0x241   :  { %v6038_v12 = vpop.xlane.xlu1 %1670  ;;  %v3291_v7 = vpop.eup %3290  ;;  %3304 = vpow2.f32 %v2057_v56  ;;  %v1903_v57 = vmul.f32 %v3289_v54, %v7335_v38  ;;  %v1699_v56 = vadd.f32 %v5901_v36, %v5897_v0 }
 0x242   :  { %v6036_v1 = vpop.xlane.xlu2 %2355  ;;  %v6050_v9 = vpop.eup %3292  ;;  %v2511_v61 = vmul.f32 %v3291_v7, %v5379_v52  ;;  %v2512_v44 = vmul.f32 %v3291_v7, %v5384_v21  ;;  %3306 = vrcp.f32 %v2353_v59  ;;  %v2049_v52 = vmul.f32 1.442695, %v1896_v50 }
 0x243   :  { %7333 = vst [vmem:[#allocation83_spill] sm:$0xff] %v6050_v9  ;;  %v6055_v41 = vpop.eup %3294  ;;  %3308 = vpow2.f32 %v2171_v24  ;;  %v2063_v50 = vmul.f32 1.442695, %v1903_v57 }
 0x244   :  { %v6057_v32 = vpop.eup %3296  ;;  %2639 = vst [vmem:[#allocation2] sm:$0xff] %v2511_v61  ;;  %1793 = vadd.xlane.f32.xlu0 %v1792_v8  ;;  %3310 = vpow2.f32 %v2173_v33  ;;  %v7339_v33 = vld [vmem:[#allocation26_spill] sm:$0xff] }
 0x245   :  { %v6062_v4 = vpop.eup %3298  ;;  %2640 = vst [vmem:[#allocation2 + $0x8] sm:$0xff] %v2512_v44  ;;  %v2288_v21 = vadd.f32 %v6057_v32, %v6055_v41  ;;  %3312 = vrcp.f32 %v5960_v46  ;;  %v1904_v44 = vmul.f32 %v3289_v54, %v7339_v33  ;;  %v7344_v33 = vld [vmem:[#allocation23_spill] sm:$0xff] }
 0x246   :  { %7336 = vst [vmem:[#allocation84_spill] sm:$0xff] %v6062_v4  ;;  %v3301_v27 = vpop.eup %3300  ;;  %1700 = vadd.xlane.f32.xlu2 %v1699_v56  ;;  %3314 = vpow2.f32 %v2047_v14 }
 0x247   :  { %v6066_v59 = vpop.xlane.xlu0 %1766  ;;  %v6071_v48 = vpop.eup %3302  ;;  %2289 = vadd.xlane.f32.xlu1 %v2288_v21  ;;  %3316 = vpow2.f32 %v2183_v10  ;;  %v2065_v54 = vmul.f32 1.442695, %v1904_v44  ;;  %v7342_v21 = vld [vmem:[#allocation22_spill] sm:$0xff]  ;;  %v1902_v44 = vmul.f32 %v3301_v27, %v7344_v33  ;;  %v7346_v33 = vld [vmem:[#allocation28_spill] sm:$0xff] }
 0x248   :  { %7337 = vst [vmem:[#allocation19_spill] sm:$0xff] %v6071_v48  ;;  %v6073_v24 = vpop.eup %3304  ;;  %3318 = vpow2.f32 %v2049_v52 }
 0x249   :  { %v2263_v7 = vpop.xlane.xlu1 %2262  ;;  %7338 = vst [vmem:[#allocation87_spill] sm:$0xff] %v6073_v24  ;;  %v3307_v61 = vpop.eup %3306  ;;  %3320 = vpow2.f32 %v2185_v18 }
 0x24a   :  { %v6069_v8 = vpop.xlane.xlu2 %1673  ;;  %v6076_v38 = vpop.eup %3308  ;;  %v2575_v46 = vmul.f32 %v3307_v61, %v5417_v31  ;;  %v2576_v63 = vmul.f32 %v3307_v61, %v5424_v28  ;;  %3322 = vrcp.f32 %v5965_v39  ;;  %v1795_v31 = vadd.f32 %v5913_v42, %v5910_v3 }
 0x24b   :  { %v6080_v56 = vpop.eup %3310  ;;  %3324 = vpow2.f32 %v2063_v50  ;;  %v1901_v39 = vmul.f32 %v3301_v27, %v7342_v21  ;;  %v2061_v27 = vmul.f32 1.442695, %v1902_v44 }
 0x24c   :  { %v3313_v14 = vpop.eup %3312  ;;  %2703 = vst [vmem:[#allocation2 + $0x200] sm:$0xff] %v2575_v46  ;;  %v2384_v10 = vadd.f32 %v6080_v56, %v6076_v38  ;;  %3326 = vrcp.f32 %v5997_v45 }
 0x24d   :  { %v6085_v57 = vpop.eup %3314  ;;  %2704 = vst [vmem:[#allocation2 + $0x208] sm:$0xff] %v2576_v63  ;;  %3328 = vrcp.f32 %v6032_v58  ;;  %v1965_v46 = vmul.f32 %v3313_v14, %v5354_v62  ;;  %v1966_v63 = vmul.f32 %v3313_v14, %v5357_v29  ;;  %v2059_v42 = vmul.f32 1.442695, %v1901_v39  ;;  %v7347_v39 = vld [vmem:[#allocation25_spill] sm:$0xff] }
 0x24e   :  { %7340 = vst [vmem:[#allocation88_spill] sm:$0xff] %v6085_v57  ;;  %v6090_v52 = vpop.eup %3316  ;;  %2385 = vadd.xlane.f32.xlu0 %v2384_v10  ;;  %3330 = vrcp.f32 %v6036_v1  ;;  %v1702_v62 = vadd.f32 %v5941_v60, %v5937_v37  ;;  %v2387_v29 = vadd.f32 %v5956_v16, %v5954_v25  ;;  %v7348_v16 = vld [vmem:[#allocation27_spill] sm:$0xff] }
 0x24f   :  { %v2359_v28 = vpop.xlane.xlu0 %2358  ;;  %7341 = vst [vmem:[#allocation20_spill] sm:$0xff] %v6090_v52  ;;  %v6096_v61 = vpop.eup %3318  ;;  %1796 = vadd.xlane.f32.xlu1 %v1795_v31  ;;  %3332 = vrcp.f32 %v6001_v23  ;;  %v2187_v14 = vmul.f32 1.442695, %v1965_v46  ;;  %v2189_v31 = vmul.f32 1.442695, %v1966_v63 }
 0x250   :  { %7343 = vst [vmem:[#allocation89_spill] sm:$0xff] %v6096_v61  ;;  %v6100_v45 = vpop.eup %3320  ;;  %v2291_v58 = vadd.f32 %v6096_v61, %v6085_v57  ;;  %3334 = vpow2.f32 %v2065_v54 }
 0x251   :  { %v6094_v50 = vpop.xlane.xlu1 %1769  ;;  %7345 = vst [vmem:[#allocation90_spill] sm:$0xff] %v6100_v45  ;;  %v3323_v10 = vpop.eup %3322  ;;  %3336 = vrcp.f32 %v6038_v12 }
 0x252   :  { %v2266_v18 = vpop.xlane.xlu2 %2265  ;;  %v6107_v21 = vpop.eup %3324  ;;  %2292 = vadd.xlane.f32.xlu2 %v2291_v58  ;;  %3338 = vrcp.f32 %v2263_v7  ;;  %v1967_v54 = vmul.f32 %v3323_v10, %v7346_v33  ;;  %v1968_v58 = vmul.f32 %v3323_v10, %v7347_v39 }
 0x253   :  { %v3327_v1 = vpop.eup %3326  ;;  %3340 = vrcp.f32 %v2359_v28 }
 0x254   :  { %v3329_v23 = vpop.eup %3328  ;;  %3342 = vrcp.f32 %v2266_v18  ;;  %v1905_v7 = vmul.f32 %v3327_v1, %v7348_v16  ;;  %v2193_v16 = vmul.f32 1.442695, %v1968_v58 }
 0x255   :  { %v3331_v61 = vpop.eup %3330  ;;  %v2513_v12 = vmul.f32 %v3329_v23, %v5446_v51  ;;  %v2514_v44 = vmul.f32 %v3329_v23, %v5451_v30  ;;  %3344 = vpow2.f32 %v2059_v42  ;;  %v7349_v51 = vld [vmem:[#allocation29_spill] sm:$0xff]  ;;  %v2191_v42 = vmul.f32 1.442695, %v1967_v54 }
 0x256   :  { %v3333_v60 = vpop.eup %3332  ;;  %v2577_v46 = vmul.f32 %v3331_v61, %v5454_v19  ;;  %v2578_v63 = vmul.f32 %v3331_v61, %v5459_v22  ;;  %1703 = vadd.xlane.f32.xlu0 %v1702_v62  ;;  %3346 = vpow2.f32 %v2061_v27  ;;  %v1906_v30 = vmul.f32 %v3327_v1, %v7349_v51  ;;  %v7350_v61 = vld [vmem:[#allocation32_spill] sm:$0xff]  ;;  %v7351_v27 = vld [vmem:[#allocation30_spill] sm:$0xff] }
 0x257   :  { %v6118_v57 = vpop.xlane.xlu0 %1676  ;;  %v6127_v10 = vpop.eup %3334  ;;  %2641 = vst [vmem:[#allocation2 + $0x10] sm:$0xff] %v2513_v12  ;;  %2388 = vadd.xlane.f32.xlu1 %v2387_v29  ;;  %3348 = vpow2.f32 %v2187_v14  ;;  %v1798_v19 = vadd.f32 %v5948_v15, %v5945_v5  ;;  %v1969_v62 = vmul.f32 %v3333_v60, %v7350_v61  ;;  %v2067_v39 = vmul.f32 1.442695, %v1905_v7  ;;  %v7352_v29 = vld [vmem:[#allocation38_spill] sm:$0xff] }
 0x258   :  { %v3337_v18 = vpop.eup %3336  ;;  %2642 = vst [vmem:[#allocation2 + $0x18] sm:$0xff] %v2514_v44  ;;  %3350 = vpow2.f32 %v2189_v31  ;;  %v1970_v25 = vmul.f32 %v3333_v60, %v7351_v27  ;;  %v2069_v12 = vmul.f32 1.442695, %v1906_v30  ;;  %v7353_v44 = vld [vmem:[#allocation39_spill] sm:$0xff]  ;;  %v2294_v7 = vadd.f32 %v5979_v40, %v5969_v35  ;;  %v7354_v60 = vld [vmem:[#allocation97_spill] sm:$0xff]  ;;  %v7357_v30 = vld [vmem:[#allocation98_spill] sm:$0xff] }
 0x259   :  { %v6125_v33 = vpop.xlane.xlu1 %2361  ;;  %v3339_v22 = vpop.eup %3338  ;;  %2705 = vst [vmem:[#allocation2 + $0x210] sm:$0xff] %v2577_v46  ;;  %3352 = vrcp.f32 %v6066_v59  ;;  %v1705_v59 = vadd.f32 %v5986_v47, %v5984_v53 }
 0x25a   :  { %v6123_v28 = vpop.xlane.xlu2 %1772  ;;  %v3341_v23 = vpop.eup %3340  ;;  %2706 = vst [vmem:[#allocation2 + $0x218] sm:$0xff] %v2578_v63  ;;  %1799 = vadd.xlane.f32.xlu2 %v1798_v19  ;;  %v2515_v1 = vmul.f32 %v3339_v22, %v5492_v34  ;;  %v2516_v14 = vmul.f32 %v3339_v22, %v7352_v29  ;;  %3354 = vpow2.f32 %v2191_v42  ;;  %v7355_v63 = vld [vmem:[#allocation42_spill] sm:$0xff]  ;;  %v2195_v19 = vmul.f32 1.442695, %v1969_v62 }
 0x25b   :  { %v3343_v54 = vpop.eup %3342  ;;  %v2579_v31 = vmul.f32 %v3341_v23, %v7353_v44  ;;  %v2580_v46 = vmul.f32 %v3341_v23, %v7354_v60  ;;  %3356 = vpow2.f32 %v2193_v16  ;;  %v2197_v27 = vmul.f32 1.442695, %v1970_v25 }
 0x25c   :  { %v6138_v58 = vpop.eup %3344  ;;  %2643 = vst [vmem:[#allocation2 + $0x20] sm:$0xff] %v2515_v1  ;;  %v2517_v51 = vmul.f32 %v3343_v54, %v7355_v63  ;;  %v2518_v22 = vmul.f32 %v3343_v54, %v7357_v30  ;;  %3358 = vpow2.f32 %v2067_v39  ;;  %v7358_v1 = vld [vmem:[#allocation31_spill] sm:$0xff]  ;;  %v2390_v16 = vadd.f32 %v6024_v49, %v6009_v43  ;;  %v7359_v39 = vld [vmem:[#allocation33_spill] sm:$0xff] }
 0x25d   :  { %v6144_v34 = vpop.eup %3346  ;;  %2644 = vst [vmem:[#allocation2 + $0x28] sm:$0xff] %v2516_v14  ;;  %v1907_v29 = vmul.f32 %v3337_v18, %v7358_v1  ;;  %3360 = vpow2.f32 %v2069_v12  ;;  %v1908_v14 = vmul.f32 %v3337_v18, %v7359_v39  ;;  %v2297_v18 = vadd.f32 %v6073_v24, %v6071_v48  ;;  %v7365_v39 = vld [vmem:[#allocation36_spill] sm:$0xff]  ;;  %v7374_v48 = vld [vmem:[#allocation51_spill] sm:$0xff] }
 0x25e   :  { %7356 = vst [vmem:[#allocation93_spill] sm:$0xff] %v6144_v34  ;;  %v6149_v42 = vpop.eup %3348  ;;  %2295 = vadd.xlane.f32.xlu0 %v2294_v7  ;;  %3362 = vrcp.f32 %v6069_v8  ;;  %v7361_v8 = vld [vmem:[#allocation34_spill] sm:$0xff] }
 0x25f   :  { %v2269_v61 = vpop.xlane.xlu0 %2268  ;;  %2707 = vst [vmem:[#allocation2 + $0x220] sm:$0xff] %v2579_v31  ;;  %v6152_v60 = vpop.eup %3350  ;;  %1706 = vadd.xlane.f32.xlu1 %v1705_v59  ;;  %3364 = vpow2.f32 %v2195_v19  ;;  %v2071_v54 = vmul.f32 1.442695, %v1907_v29 }
 0x260   :  { %2708 = vst [vmem:[#allocation2 + $0x228] sm:$0xff] %v2580_v46  ;;  %v3353_v62 = vpop.eup %3352  ;;  %3366 = vpow2.f32 %v2197_v27  ;;  %v1801_v46 = vadd.f32 %v5993_v26, %v5988_v2  ;;  %v7364_v27 = vld [vmem:[#allocation35_spill] sm:$0xff] }
 0x261   :  { %v1680_v44 = vpop.xlane.xlu1 %1679  ;;  %2645 = vst [vmem:[#allocation2 + $0x30] sm:$0xff] %v2517_v51  ;;  %v6157_v25 = vpop.eup %3354  ;;  %3368 = vrcp.f32 %v6094_v50  ;;  %v1971_v7 = vmul.f32 %v3353_v62, %v7361_v8  ;;  %v2073_v50 = vmul.f32 1.442695, %v1908_v14  ;;  %v1972_v1 = vmul.f32 %v3353_v62, %v7364_v27  ;;  %v7366_v8 = vld [vmem:[#allocation37_spill] sm:$0xff] }
 0x262   :  { %v2365_v23 = vpop.xlane.xlu2 %2364  ;;  %2646 = vst [vmem:[#allocation2 + $0x38] sm:$0xff] %v2518_v22  ;;  %2391 = vadd.xlane.f32.xlu2 %v2390_v16  ;;  %v6160_v31 = vpop.eup %3356  ;;  %3370 = vrcp.f32 %v6118_v57 }
 0x263   :  { %v6163_v12 = vpop.eup %3358  ;;  %3372 = vrcp.f32 %v6123_v28  ;;  %v2199_v29 = vmul.f32 1.442695, %v1971_v7  ;;  %v1708_v28 = vadd.f32 %v6040_v11, %v6034_v20  ;;  %v2201_v62 = vmul.f32 1.442695, %v1972_v1  ;;  %v7368_v7 = vld [vmem:[#allocation41_spill] sm:$0xff] }
 0x264   :  { %7360 = vst [vmem:[#allocation94_spill] sm:$0xff] %v6163_v12  ;;  %v6169_v63 = vpop.eup %3360  ;;  %3374 = vpow2.f32 %v2071_v54 }
 0x265   :  { %7362 = vst [vmem:[#allocation21_spill] sm:$0xff] %v6169_v63  ;;  %v3363_v19 = vpop.eup %3362  ;;  %3376 = vrcp.f32 %v6125_v33 }
 0x266   :  { %1802 = vadd.xlane.f32.xlu0 %v1801_v46  ;;  %v6178_v22 = vpop.eup %3364  ;;  %3378 = vrcp.f32 %v2269_v61  ;;  %v1909_v14 = vmul.f32 %v3363_v19, %v7365_v39  ;;  %v1910_v46 = vmul.f32 %v3363_v19, %v7366_v8  ;;  %v2393_v61 = vadd.f32 %v6100_v45, %v6090_v52  ;;  %v7369_v39 = vld [vmem:[#allocation40_spill] sm:$0xff]  ;;  %v7370_v8 = vld [vmem:[#allocation45_spill] sm:$0xff]  ;;  %v7372_v52 = vld [vmem:[#allocation43_spill] sm:$0xff] }
 0x267   :  { %v6174_v51 = vpop.xlane.xlu0 %1775  ;;  %2298 = vadd.xlane.f32.xlu1 %v2297_v18  ;;  %v6181_v57 = vpop.eup %3366  ;;  %3380 = vrcp.f32 %v2365_v23 }
 0x268   :  { %7363 = vst [vmem:[#allocation24_spill] sm:$0xff] %v6181_v57  ;;  %v3369_v16 = vpop.eup %3368  ;;  %3382 = vpow2.f32 %v2073_v50  ;;  %v2075_v11 = vmul.f32 1.442695, %v1909_v14  ;;  %v1804_v50 = vadd.f32 %v6062_v4, %v6050_v9 }
 0x269   :  { %v2272_v30 = vpop.xlane.xlu1 %2271  ;;  %v3371_v54 = vpop.eup %3370  ;;  %3384 = vrcp.f32 %v1680_v44  ;;  %v1973_v27 = vmul.f32 %v3369_v16, %v7368_v7  ;;  %v1974_v23 = vmul.f32 %v3369_v16, %v7369_v39  ;;  %v2077_v44 = vmul.f32 1.442695, %v1910_v46  ;;  %v7373_v16 = vld [vmem:[#allocation50_spill] sm:$0xff] }
 0x26a   :  { %v6176_v59 = vpop.xlane.xlu2 %1682  ;;  %1709 = vadd.xlane.f32.xlu2 %v1708_v28  ;;  %v3373_v18 = vpop.eup %3372  ;;  %3386 = vpow2.f32 %v2199_v29  ;;  %v7371_v29 = vld [vmem:[#allocation99_spill] sm:$0xff]  ;;  %v1911_v14 = vmul.f32 %v3371_v54, %v7372_v52  ;;  %v7377_v52 = vld [vmem:[#allocation46_spill] sm:$0xff] }
 0x26b   :  { %v6188_v33 = vpop.eup %3374  ;;  %3388 = vrcp.f32 %v2272_v30  ;;  %v2203_v46 = vmul.f32 1.442695, %v1973_v27 }
 0x26c   :  { %7367 = vst [vmem:[#allocation26_spill] sm:$0xff] %v6188_v33  ;;  %v3377_v15 = vpop.eup %3376  ;;  %v2079_v27 = vmul.f32 1.442695, %v1911_v14 }
 0x26d   :  { %v3379_v28 = vpop.eup %3378  ;;  %v2581_v20 = vmul.f32 %v3377_v15, %v7370_v8  ;;  %v2582_v1 = vmul.f32 %v3377_v15, %v7371_v29  ;;  %v2300_v15 = vadd.f32 %v6144_v34, %v6138_v58  ;;  %v2205_v29 = vmul.f32 1.442695, %v1974_v23 }
 0x26e   :  { %2394 = vadd.xlane.f32.xlu0 %v2393_v61  ;;  %v3381_v45 = vpop.eup %3380  ;;  %v2519_v39 = vmul.f32 %v3379_v28, %v7373_v16  ;;  %v2520_v4 = vmul.f32 %v3379_v28, %v7374_v48  ;;  %v7376_v61 = vld [vmem:[#allocation102_spill] sm:$0xff]  ;;  %v7378_v16 = vld [vmem:[#allocation48_spill] sm:$0xff]  ;;  %v7380_v28 = vld [vmem:[#allocation47_spill] sm:$0xff] }
 0x26f   :  { %v2368_v19 = vpop.xlane.xlu0 %2367  ;;  %1805 = vadd.xlane.f32.xlu1 %v1804_v50  ;;  %v6201_v30 = vpop.eup %3382  ;;  %2709 = vst [vmem:[#allocation2 + $0x230] sm:$0xff] %v2581_v20  ;;  %v1912_v50 = vmul.f32 %v3371_v54, %v7377_v52  ;;  %v2584_v9 = vmul.f32 %v3381_v45, %v7378_v16 }
 0x270   :  { %3390 = vrcp.f32 %v2368_v19  ;;  %7375 = vst [vmem:[#allocation22_spill] sm:$0xff] %v6201_v30  ;;  %v2583_v19 = vmul.f32 %v3381_v45, %v7376_v61  ;;  %v3385_v8 = vpop.eup %3384  ;;  %v7382_v45 = vld [vmem:[#allocation100_spill] sm:$0xff] }
 0x271   :  { %v1779_v24 = vpop.xlane.xlu1 %1778  ;;  %2710 = vst [vmem:[#allocation2 + $0x238] sm:$0xff] %v2582_v1  ;;  %v6208_v48 = vpop.eup %3386  ;;  %v1913_v23 = vmul.f32 %v3385_v8, %v7382_v45  ;;  %v7384_v61 = vld [vmem:[#allocation56_spill] sm:$0xff]  ;;  %v2081_v14 = vmul.f32 1.442695, %v1912_v50 }
 0x272   :  { %v2275_v7 = vpop.xlane.xlu2 %2274  ;;  %7379 = vst [vmem:[#allocation23_spill] sm:$0xff] %v6208_v48  ;;  %2301 = vadd.xlane.f32.xlu2 %v2300_v15  ;;  %v3389_v20 = vpop.eup %3388 }
 0x273   :  { %3392 = vrcp.f32 %v2275_v7  ;;  %2647 = vst [vmem:[#allocation2 + $0x40] sm:$0xff] %v2519_v39  ;;  %v7381_v7 = vld [vmem:[#allocation44_spill] sm:$0xff]  ;;  %v2522_v15 = vmul.f32 %v3389_v20, %v7384_v61 }
 0x274   :  { %3394 = vpow2.f32 %v2201_v62  ;;  %v1975_v62 = vmul.f32 %v3373_v18, %v7380_v28  ;;  %v1976_v34 = vmul.f32 %v3373_v18, %v7381_v7  ;;  %2648 = vst [vmem:[#allocation2 + $0x48] sm:$0xff] %v2520_v4  ;;  %v2396_v4 = vadd.f32 %v6152_v60, %v6149_v42  ;;  %v7385_v18 = vld [vmem:[#allocation58_spill] sm:$0xff] }
 0x275   :  { %3396 = vpow2.f32 %v2075_v11  ;;  %v2303_v11 = vadd.f32 %v6127_v10, %v6107_v21  ;;  %2711 = vst [vmem:[#allocation2 + $0x240] sm:$0xff] %v2583_v19  ;;  %v7387_v19 = vld [vmem:[#allocation59_spill] sm:$0xff] }
 0x276   :  { %3398 = vpow2.f32 %v2077_v44  ;;  %v3391_v54 = vpop.eup %3390  ;;  %v7383_v44 = vld [vmem:[#allocation52_spill] sm:$0xff]  ;;  %2712 = vst [vmem:[#allocation2 + $0x248] sm:$0xff] %v2584_v9  ;;  %v2209_v45 = vmul.f32 1.442695, %v1976_v34 }
 0x277   :  { %3400 = vrcp.f32 %v6174_v51  ;;  %v2521_v1 = vmul.f32 %v3389_v20, %v7383_v44  ;;  %v2585_v52 = vmul.f32 %v3391_v54, %v7385_v18  ;;  %v1686_v16 = vpop.xlane.xlu0 %1685  ;;  %2304 = vadd.xlane.f32.xlu0 %v2303_v11  ;;  %v2586_v28 = vmul.f32 %v3391_v54, %v7387_v19  ;;  %v7388_v20 = vld [vmem:[#allocation62_spill] sm:$0xff]  ;;  %2397 = vadd.xlane.f32.xlu1 %v2396_v4  ;;  %v7390_v44 = vld [vmem:[#allocation64_spill] sm:$0xff] }
 0x278   :  { %3402 = vpow2.f32 %v2203_v46  ;;  %v2207_v46 = vmul.f32 1.442695, %v1975_v62  ;;  %2650 = vst [vmem:[#allocation2 + $0x58] sm:$0xff] %v2522_v15  ;;  %v2083_v62 = vmul.f32 1.442695, %v1913_v23  ;;  %v7393_v15 = vld [vmem:[#allocation49_spill] sm:$0xff] }
 0x279   :  { %v3393_v39 = vpop.eup %3392  ;;  %3404 = vpow2.f32 %v2205_v29  ;;  %2649 = vst [vmem:[#allocation2 + $0x50] sm:$0xff] %v2521_v1  ;;  %v2371_v50 = vpop.xlane.xlu1 %2370  ;;  %v7394_v4 = vld [vmem:[#allocation54_spill] sm:$0xff] }
 0x27a   :  { %v6221_v51 = vpop.eup %3394  ;;  %3406 = vrcp.f32 %v6176_v59  ;;  %v2523_v7 = vmul.f32 %v3393_v39, %v7388_v20  ;;  %v1782_v29 = vpop.xlane.xlu2 %1781  ;;  %v2524_v61 = vmul.f32 %v3393_v39, %v7390_v44  ;;  %v2399_v59 = vadd.f32 %v6160_v31, %v6157_v25  ;;  %2713 = vst [vmem:[#allocation2 + $0x250] sm:$0xff] %v2585_v52 }
 0x27b   :  { %7386 = vst [vmem:[#allocation28_spill] sm:$0xff] %v6221_v51  ;;  %v6226_v9 = vpop.eup %3396  ;;  %3408 = vpow2.f32 %v2079_v27  ;;  %v7392_v27 = vld [vmem:[#allocation101_spill] sm:$0xff] }
 0x27c   :  { %7389 = vst [vmem:[#allocation25_spill] sm:$0xff] %v6226_v9  ;;  %v6229_v18 = vpop.eup %3398  ;;  %3410 = vrcp.f32 %v1779_v24  ;;  %2400 = vadd.xlane.f32.xlu2 %v2399_v59  ;;  %v1914_v1 = vmul.f32 %v3385_v8, %v7392_v27  ;;  %v2402_v24 = vadd.f32 %v6181_v57, %v6178_v22  ;;  %v7405_v57 = vld [vmem:[#allocation77_spill] sm:$0xff] }
 0x27d   :  { %7391 = vst [vmem:[#allocation27_spill] sm:$0xff] %v6229_v18  ;;  %v3401_v11 = vpop.eup %3400  ;;  %3412 = vpow2.f32 %v2081_v14 }
 0x27e   :  { %2714 = vst [vmem:[#allocation2 + $0x258] sm:$0xff] %v2586_v28  ;;  %v6233_v54 = vpop.eup %3402  ;;  %3414 = vpow2.f32 %v2207_v46  ;;  %v1977_v39 = vmul.f32 %v3401_v11, %v7393_v15  ;;  %v1978_v52 = vmul.f32 %v3401_v11, %v7394_v4  ;;  %v2306_v46 = vadd.f32 %v6169_v63, %v6163_v12  ;;  %v7396_v11 = vld [vmem:[#allocation53_spill] sm:$0xff]  ;;  %v7403_v63 = vld [vmem:[#allocation68_spill] sm:$0xff] }
 0x27f   :  { %2651 = vst [vmem:[#allocation2 + $0x60] sm:$0xff] %v2523_v7  ;;  %v6235_v34 = vpop.eup %3404  ;;  %3416 = vpow2.f32 %v2209_v45  ;;  %2403 = vadd.xlane.f32.xlu0 %v2402_v24  ;;  %v2278_v8 = vpop.xlane.xlu0 %2277  ;;  %v2085_v7 = vmul.f32 1.442695, %v1914_v1  ;;  %v7395_v45 = vld [vmem:[#allocation55_spill] sm:$0xff]  ;;  %v7397_v24 = vld [vmem:[#allocation57_spill] sm:$0xff] }
 0x280   :  { %2652 = vst [vmem:[#allocation2 + $0x68] sm:$0xff] %v2524_v61  ;;  %v3407_v23 = vpop.eup %3406  ;;  %3418 = vpow2.f32 %v2083_v62  ;;  %2307 = vadd.xlane.f32.xlu1 %v2306_v46  ;;  %v2211_v59 = vmul.f32 1.442695, %v1977_v39  ;;  %v2213_v15 = vmul.f32 1.442695, %v1978_v52 }
 0x281   :  { %v6241_v14 = vpop.eup %3408  ;;  %3420 = vrcp.f32 %v1686_v16  ;;  %v1915_v44 = vmul.f32 %v3407_v23, %v7395_v45  ;;  %v1689_v61 = vpop.xlane.xlu1 %1688  ;;  %v1916_v27 = vmul.f32 %v3407_v23, %v7396_v11  ;;  %v2309_v16 = vadd.f32 %v6201_v30, %v6188_v33  ;;  %v7399_v30 = vld [vmem:[#allocation65_spill] sm:$0xff] }
 0x282   :  { %v3411_v19 = vpop.eup %3410  ;;  %3422 = vrcp.f32 %v1782_v29  ;;  %v2374_v28 = vpop.xlane.xlu2 %2373 }
 0x283   :  { %v6246_v20 = vpop.eup %3412  ;;  %3424 = vrcp.f32 %v2371_v50  ;;  %v1979_v4 = vmul.f32 %v3411_v19, %v7397_v24  ;;  %v7398_v50 = vld [vmem:[#allocation63_spill] sm:$0xff]  ;;  %v2087_v39 = vmul.f32 1.442695, %v1915_v44  ;;  %v2089_v11 = vmul.f32 1.442695, %v1916_v27  ;;  %v7400_v24 = vld [vmem:[#allocation60_spill] sm:$0xff] }
 0x284   :  { %v6249_v62 = vpop.eup %3414  ;;  %3426 = vrcp.f32 %v2278_v8  ;;  %2310 = vadd.xlane.f32.xlu2 %v2309_v16  ;;  %v1980_v46 = vmul.f32 %v3411_v19, %v7398_v50  ;;  %v2312_v8 = vadd.f32 %v6229_v18, %v6226_v9  ;;  %v2405_v16 = vadd.f32 %v6221_v51, %v6208_v48 }
 0x285   :  { %v6254_v29 = vpop.eup %3416  ;;  %3428 = vrcp.f32 %v2374_v28  ;;  %v2215_v28 = vmul.f32 1.442695, %v1979_v4 }
 0x286   :  { %v6257_v1 = vpop.eup %3418  ;;  %3430 = vrcp.f32 %v1689_v61  ;;  %v2217_v50 = vmul.f32 1.442695, %v1980_v46  ;;  %v2408_v46 = vadd.f32 %v6235_v34, %v6233_v54 }
 0x287   :  { %v3421_v45 = vpop.eup %3420  ;;  %3432 = vpow2.f32 %v2085_v7  ;;  %2313 = vadd.xlane.f32.xlu0 %v2312_v8  ;;  %v7401_v7 = vld [vmem:[#allocation61_spill] sm:$0xff]  ;;  %v1785_v18 = vpop.xlane.xlu0 %1784 }
 0x288   :  { %v3423_v23 = vpop.eup %3422  ;;  %3434 = vpow2.f32 %v2211_v59  ;;  %v1917_v52 = vmul.f32 %v3421_v45, %v7399_v30  ;;  %v7402_v59 = vld [vmem:[#allocation67_spill] sm:$0xff]  ;;  %2406 = vadd.xlane.f32.xlu1 %v2405_v16 }
 0x289   :  { %v3425_v33 = vpop.eup %3424  ;;  %3436 = vpow2.f32 %v2213_v15  ;;  %v1981_v19 = vmul.f32 %v3423_v23, %v7400_v24  ;;  %v1982_v44 = vmul.f32 %v3423_v23, %v7401_v7  ;;  %v7404_v15 = vld [vmem:[#allocation8_spill] sm:$0xff]  ;;  %v7406_v23 = vld [vmem:[#allocation70_spill] sm:$0xff] }
 0x28a   :  { %v3427_v61 = vpop.eup %3426  ;;  %v2587_v27 = vmul.f32 %v3425_v33, %v7402_v59  ;;  %v2588_v12 = vmul.f32 %v3425_v33, %v7403_v63  ;;  %3438 = vpow2.f32 %v2087_v39  ;;  %v2091_v30 = vmul.f32 1.442695, %v1917_v52  ;;  %v7407_v33 = vld [vmem:[#allocation80_spill] sm:$0xff]  ;;  %v7411_v7 = vld [vmem:[#allocation66_spill] sm:$0xff] }
 0x28b   :  { %v3429_v9 = vpop.eup %3428  ;;  %v2525_v4 = vmul.f32 %v3427_v61, %v7404_v15  ;;  %v2526_v51 = vmul.f32 %v3427_v61, %v7405_v57  ;;  %3440 = vpow2.f32 %v2089_v11  ;;  %v2219_v63 = vmul.f32 1.442695, %v1981_v19  ;;  %v7409_v57 = vld [vmem:[#allocation69_spill] sm:$0xff]  ;;  %v1692_v19 = vpop.xlane.xlu2 %1691 }
 0x28c   :  { %v3431_v48 = vpop.eup %3430  ;;  %2715 = vst [vmem:[#allocation2 + $0x260] sm:$0xff] %v2587_v27  ;;  %v2589_v8 = vmul.f32 %v3429_v9, %v7406_v23  ;;  %3442 = vpow2.f32 %v2215_v28  ;;  %v2590_v39 = vmul.f32 %v3429_v9, %v7407_v33  ;;  %2409 = vadd.xlane.f32.xlu2 %v2408_v46  ;;  %v1918_v16 = vmul.f32 %v3421_v45, %v7409_v57  ;;  %v7415_v33 = vld [vmem:[#allocation74_spill] sm:$0xff]  ;;  %v7416_v57 = vld [vmem:[#allocation73_spill] sm:$0xff] }
 0x28d   :  { %v6274_v24 = vpop.eup %3432  ;;  %2716 = vst [vmem:[#allocation2 + $0x268] sm:$0xff] %v2588_v12  ;;  %3444 = vpow2.f32 %v2217_v50  ;;  %v2221_v11 = vmul.f32 1.442695, %v1982_v44  ;;  %v1919_v59 = vmul.f32 %v3431_v48, %v7411_v7  ;;  %v2411_v28 = vadd.f32 %v6254_v29, %v6249_v62  ;;  %v7412_v12 = vld [vmem:[#allocation7_spill] sm:$0xff]  ;;  %v2281_v50 = vpop.xlane.xlu1 %2280 }
 0x28e   :  { %v6277_v52 = vpop.eup %3434  ;;  %2653 = vst [vmem:[#allocation2 + $0x70] sm:$0xff] %v2525_v4  ;;  %3446 = vpow2.f32 %v2091_v30  ;;  %v1920_v9 = vmul.f32 %v3431_v48, %v7412_v12  ;;  %v2315_v45 = vadd.f32 %v6246_v20, %v6241_v14  ;;  %v2318_v4 = vadd.f32 %v6274_v24, %v6257_v1 }
 0x28f   :  { %7408 = vst [vmem:[#allocation29_spill] sm:$0xff] %v6277_v52  ;;  %v6280_v61 = vpop.eup %3436  ;;  %3448 = vrcp.f32 %v1785_v18  ;;  %2412 = vadd.xlane.f32.xlu0 %v2411_v28  ;;  %v2377_v30 = vpop.xlane.xlu0 %2376  ;;  %v2095_v48 = vmul.f32 1.442695, %v1919_v59 }
 0x290   :  { %7410 = vst [vmem:[#allocation32_spill] sm:$0xff] %v6280_v61  ;;  %v6286_v27 = vpop.eup %3438  ;;  %3450 = vpow2.f32 %v2219_v63  ;;  %2316 = vadd.xlane.f32.xlu1 %v2315_v45  ;;  %v2097_v46 = vmul.f32 1.442695, %v1920_v9  ;;  %v2414_v12 = vadd.f32 %v6280_v61, %v6277_v52 }
 0x291   :  { %2654 = vst [vmem:[#allocation2 + $0x78] sm:$0xff] %v2526_v51  ;;  %v6290_v44 = vpop.eup %3440  ;;  %v2093_v51 = vmul.f32 1.442695, %v1918_v16  ;;  %3452 = vpow2.f32 %v2221_v11 }
 0x292   :  { %2717 = vst [vmem:[#allocation2 + $0x270] sm:$0xff] %v2589_v8  ;;  %v6292_v15 = vpop.eup %3442  ;;  %3454 = vrcp.f32 %v1692_v19  ;;  %v2321_v7 = vadd.f32 %v6290_v44, %v6286_v27 }
 0x293   :  { %2718 = vst [vmem:[#allocation2 + $0x278] sm:$0xff] %v2590_v39  ;;  %v6294_v18 = vpop.eup %3444  ;;  %3456 = vrcp.f32 %v2281_v50 }
 0x294   :  { %7413 = vst [vmem:[#allocation30_spill] sm:$0xff] %v6290_v44  ;;  %v6298_v23 = vpop.eup %3446  ;;  %3458 = vrcp.f32 %v2377_v30  ;;  %2319 = vadd.xlane.f32.xlu2 %v2318_v4  ;;  %v2417_v45 = vadd.f32 %v6294_v18, %v6292_v15  ;;  %v7420_v44 = vld [vmem:[#allocation85_spill] sm:$0xff] }
 0x295   :  { %7414 = vst [vmem:[#allocation38_spill] sm:$0xff] %v6294_v18  ;;  %v3449_v8 = vpop.eup %3448  ;;  %3460 = vpow2.f32 %v2093_v51  ;;  %v1788_v59 = vpop.xlane.xlu1 %1787  ;;  %v7417_v51 = vld [vmem:[#allocation6_spill] sm:$0xff] }
 0x296   :  { %v6300_v63 = vpop.eup %3450  ;;  %3462 = vpow2.f32 %v2095_v48  ;;  %v1983_v39 = vmul.f32 %v3449_v8, %v7415_v33  ;;  %v1984_v16 = vmul.f32 %v3449_v8, %v7416_v57  ;;  %v7418_v48 = vld [vmem:[#allocation71_spill] sm:$0xff]  ;;  %v7419_v33 = vld [vmem:[#allocation86_spill] sm:$0xff] }
 0x297   :  { %v6304_v11 = vpop.eup %3452  ;;  %3464 = vpow2.f32 %v2097_v46  ;;  %2322 = vadd.xlane.f32.xlu0 %v2321_v7  ;;  %v1695_v46 = vpop.xlane.xlu0 %1694 }
 0x298   :  { %v3455_v28 = vpop.eup %3454  ;;  %v2223_v9 = vmul.f32 1.442695, %v1983_v39  ;;  %v2225_v19 = vmul.f32 1.442695, %v1984_v16  ;;  %3466 = vrcp.f32 %v1788_v59  ;;  %2415 = vadd.xlane.f32.xlu1 %v2414_v12  ;;  %v7421_v59 = vld [vmem:[#allocation91_spill] sm:$0xff] }
 0x299   :  { %v3457_v50 = vpop.eup %3456  ;;  %v1921_v30 = vmul.f32 %v3455_v28, %v7417_v51  ;;  %v1922_v4 = vmul.f32 %v3455_v28, %v7418_v48  ;;  %v7422_v51 = vld [vmem:[#allocation92_spill] sm:$0xff] }
 0x29a   :  { %v3459_v8 = vpop.eup %3458  ;;  %3468 = vpow2.f32 %v2223_v9  ;;  %v2527_v57 = vmul.f32 %v3457_v50, %v7419_v33  ;;  %v2528_v61 = vmul.f32 %v3457_v50, %v7420_v44  ;;  %v2420_v44 = vadd.f32 %v6304_v11, %v6300_v63  ;;  %v7424_v9 = vld [vmem:[#allocation72_spill] sm:$0xff]  ;;  %v7425_v50 = vld [vmem:[#allocation5_spill] sm:$0xff] }
 0x29b   :  { %v6316_v39 = vpop.eup %3460  ;;  %3470 = vpow2.f32 %v2225_v19  ;;  %v2099_v16 = vmul.f32 1.442695, %v1921_v30  ;;  %v2101_v7 = vmul.f32 1.442695, %v1922_v4  ;;  %v2591_v52 = vmul.f32 %v3459_v8, %v7421_v59 }
 0x29c   :  { %v6319_v18 = vpop.eup %3462  ;;  %2655 = vst [vmem:[#allocation2 + $0x80] sm:$0xff] %v2527_v57  ;;  %v2592_v28 = vmul.f32 %v3459_v8, %v7422_v51  ;;  %3472 = vrcp.f32 %v1695_v46  ;;  %2418 = vadd.xlane.f32.xlu2 %v2417_v45  ;;  %v2324_v46 = vadd.f32 %v6316_v39, %v6298_v23  ;;  %v7427_v51 = vld [vmem:[#allocation81_spill] sm:$0xff] }
 0x29d   :  { %v6322_v48 = vpop.eup %3464  ;;  %3474 = vpow2.f32 %v2099_v16  ;;  %2656 = vst [vmem:[#allocation2 + $0x88] sm:$0xff] %v2528_v61  ;;  %v2284_v8 = vpop.xlane.xlu2 %2283 }
 0x29e   :  { %7423 = vst [vmem:[#allocation39_spill] sm:$0xff] %v6322_v48  ;;  %v3467_v12 = vpop.eup %3466  ;;  %3476 = vpow2.f32 %v2101_v7  ;;  %v7426_v7 = vld [vmem:[#allocation11_spill] sm:$0xff] }
 0x29f   :  { %2719 = vst [vmem:[#allocation2 + $0x280] sm:$0xff] %v2591_v52  ;;  %v1985_v19 = vmul.f32 %v3467_v12, %v7424_v9  ;;  %v1986_v30 = vmul.f32 %v3467_v12, %v7425_v50  ;;  %2421 = vadd.xlane.f32.xlu0 %v2420_v44  ;;  %3478 = vrcp.f32 %v2284_v8  ;;  %v2327_v52 = vadd.f32 %v6322_v48, %v6319_v18 }
 0x2a0   :  { %2720 = vst [vmem:[#allocation2 + $0x288] sm:$0xff] %v2592_v28  ;;  %v6328_v4 = vpop.eup %3468  ;;  %2325 = vadd.xlane.f32.xlu1 %v2324_v46  ;;  %v7429_v46 = vld [vmem:[#allocation76_spill] sm:$0xff] }
 0x2a1   :  { %v6332_v45 = vpop.eup %3470  ;;  %v2227_v61 = vmul.f32 1.442695, %v1985_v19  ;;  %v2229_v33 = vmul.f32 1.442695, %v1986_v30 }
 0x2a2   :  { %v3473_v57 = vpop.eup %3472  ;;  %v2423_v50 = vadd.f32 %v6332_v45, %v6328_v4 }
 0x2a3   :  { %v6336_v16 = vpop.eup %3474  ;;  %3480 = vpow2.f32 %v2227_v61  ;;  %v1923_v59 = vmul.f32 %v3473_v57, %v7426_v7  ;;  %v1924_v28 = vmul.f32 %v3473_v57, %v7427_v51  ;;  %v7430_v61 = vld [vmem:[#allocation13_spill] sm:$0xff] }
 0x2a4   :  { %v6340_v12 = vpop.eup %3476  ;;  %3482 = vpow2.f32 %v2229_v33  ;;  %2328 = vadd.xlane.f32.xlu2 %v2327_v52 }
 0x2a5   :  { %7428 = vst [vmem:[#allocation97_spill] sm:$0xff] %v6340_v12  ;;  %v2103_v44 = vmul.f32 1.442695, %v1923_v59  ;;  %v2105_v9 = vmul.f32 1.442695, %v1924_v28  ;;  %v2330_v19 = vadd.f32 %v6340_v12, %v6336_v16  ;;  %v3479_v30 = vpop.eup %3478  ;;  %v1791_v57 = vpop.xlane.xlu2 %1790 }
 0x2a6   :  { %v2529_v8 = vmul.f32 %v3479_v30, %v7429_v46  ;;  %v2530_v7 = vmul.f32 %v3479_v30, %v7430_v61  ;;  %v2380_v51 = vpop.xlane.xlu1 %2379  ;;  %v7436_v61 = vld [vmem:[#allocation103_spill] sm:$0xff] }
 0x2a7   :  { %3484 = vpow2.f32 %v2103_v44  ;;  %2331 = vadd.xlane.f32.xlu0 %v2330_v19  ;;  %v7435_v19 = vld [vmem:[#allocation82_spill] sm:$0xff] }
 0x2a8   :  { %3486 = vpow2.f32 %v2105_v9  ;;  %2657 = vst [vmem:[#allocation2 + $0x90] sm:$0xff] %v2529_v8  ;;  %2424 = vadd.xlane.f32.xlu1 %v2423_v50  ;;  %v7437_v50 = vld [vmem:[#allocation78_spill] sm:$0xff] }
 0x2a9   :  { %v6348_v48 = vpop.eup %3480  ;;  %3488 = vrcp.f32 %v1791_v57  ;;  %2658 = vst [vmem:[#allocation2 + $0x98] sm:$0xff] %v2530_v7 }
 0x2aa   :  { %7431 = vst [vmem:[#allocation42_spill] sm:$0xff] %v6348_v48  ;;  %v6350_v33 = vpop.eup %3482  ;;  %3490 = vrcp.f32 %v2380_v51  ;;  %v7438_v51 = vld [vmem:[#allocation16_spill] sm:$0xff] }
 0x2ab   :  { %7432 = vst [vmem:[#allocation98_spill] sm:$0xff] %v6350_v33  ;;  %v2426_v52 = vadd.f32 %v6350_v33, %v6348_v48 }
 0x2ad   :  { %v6354_v59 = vpop.eup %3484  ;;  %2427 = vadd.xlane.f32.xlu2 %v2426_v52 }
 0x2ae   :  { %7433 = vst [vmem:[#allocation31_spill] sm:$0xff] %v6354_v59  ;;  %v6356_v28 = vpop.eup %3486  ;;  %v1698_v57 = vpop.xlane.xlu1 %1697 }
 0x2af   :  { %7434 = vst [vmem:[#allocation33_spill] sm:$0xff] %v6356_v28  ;;  %v3489_v44 = vpop.eup %3488  ;;  %v2333_v9 = vadd.f32 %v6356_v28, %v6354_v59  ;;  %3492 = vrcp.f32 %v1698_v57  ;;  %v2287_v52 = vpop.xlane.xlu0 %2286 }
 0x2b0   :  { %v3491_v30 = vpop.eup %3490  ;;  %v1987_v46 = vmul.f32 %v3489_v44, %v7435_v19  ;;  %v1988_v8 = vmul.f32 %v3489_v44, %v7436_v61  ;;  %3494 = vrcp.f32 %v2287_v52  ;;  %v7442_v52 = vld [vmem:[#allocation79_spill] sm:$0xff] }
 0x2b1   :  { %v2593_v7 = vmul.f32 %v3491_v30, %v7437_v50  ;;  %v2594_v12 = vmul.f32 %v3491_v30, %v7438_v51  ;;  %2334 = vadd.xlane.f32.xlu1 %v2333_v9  ;;  %v2383_v28 = vpop.xlane.xlu2 %2382  ;;  %v7439_v30 = vld [vmem:[#allocation17_spill] sm:$0xff] }
 0x2b2   :  { %v2231_v33 = vmul.f32 1.442695, %v1987_v46  ;;  %v2233_v48 = vmul.f32 1.442695, %v1988_v8  ;;  %v7440_v8 = vld [vmem:[#allocation96_spill] sm:$0xff] }
 0x2b3   :  { %2721 = vst [vmem:[#allocation2 + $0x290] sm:$0xff] %v2593_v7 }
 0x2b4   :  { %3496 = vpow2.f32 %v2231_v33  ;;  %2722 = vst [vmem:[#allocation2 + $0x298] sm:$0xff] %v2594_v12 }
 0x2b5   :  { %3498 = vpow2.f32 %v2233_v48  ;;  %v3493_v19 = vpop.eup %3492 }
 0x2b6   :  { %3500 = vrcp.f32 %v2383_v28  ;;  %v1925_v44 = vmul.f32 %v3493_v19, %v5838_v17  ;;  %v1926_v61 = vmul.f32 %v3493_v19, %v5862_v13  ;;  %v3495_v50 = vpop.eup %3494  ;;  %v7441_v13 = vld [vmem:[#allocation95_spill] sm:$0xff] }
 0x2b7   :  { %v2531_v46 = vmul.f32 %v3495_v50, %v7439_v30  ;;  %v2532_v57 = vmul.f32 %v3495_v50, %v7440_v8  ;;  %v1794_v51 = vpop.xlane.xlu0 %1793 }
 0x2b8   :  { %v2107_v9 = vmul.f32 1.442695, %v1925_v44  ;;  %v2109_v7 = vmul.f32 1.442695, %v1926_v61  ;;  %3502 = vrcp.f32 %v1794_v51 }
 0x2b9   :  { %2659 = vst [vmem:[#allocation2 + $0xa0] sm:$0xff] %v2531_v46  ;;  %v1701_v12 = vpop.xlane.xlu2 %1700 }
 0x2ba   :  { %v6366_v59 = vpop.eup %3496  ;;  %3504 = vpow2.f32 %v2107_v9  ;;  %2660 = vst [vmem:[#allocation2 + $0xa8] sm:$0xff] %v2532_v57  ;;  %v2290_v50 = vpop.xlane.xlu1 %2289 }
 0x2bb   :  { %v6370_v33 = vpop.eup %3498  ;;  %3506 = vpow2.f32 %v2109_v7 }
 0x2bc   :  { %v3501_v48 = vpop.eup %3500  ;;  %v2429_v17 = vadd.f32 %v6370_v33, %v6366_v59  ;;  %3508 = vrcp.f32 %v1701_v12 }
 0x2bd   :  { %v2595_v28 = vmul.f32 %v3501_v48, %v7441_v13  ;;  %v2596_v19 = vmul.f32 %v3501_v48, %v7442_v52  ;;  %3510 = vrcp.f32 %v2290_v50 }
 0x2be   :  { %2430 = vadd.xlane.f32.xlu0 %v2429_v17  ;;  %v3503_v44 = vpop.eup %3502 }
 0x2bf   :  { %2723 = vst [vmem:[#allocation2 + $0x2a0] sm:$0xff] %v2595_v28  ;;  %v1989_v30 = vmul.f32 %v3503_v44, %v5868_v6  ;;  %v1990_v46 = vmul.f32 %v3503_v44, %v5876_v55 }
 0x2c0   :  { %2724 = vst [vmem:[#allocation2 + $0x2a8] sm:$0xff] %v2596_v19  ;;  %v6376_v61 = vpop.eup %3504 }
 0x2c1   :  { %v6380_v8 = vpop.eup %3506  ;;  %v2235_v9 = vmul.f32 1.442695, %v1989_v30  ;;  %v2237_v51 = vmul.f32 1.442695, %v1990_v46  ;;  %v2386_v48 = vpop.xlane.xlu0 %2385 }
 0x2c2   :  { %v3509_v57 = vpop.eup %3508  ;;  %v2336_v7 = vadd.f32 %v6380_v8, %v6376_v61  ;;  %3512 = vrcp.f32 %v2386_v48  ;;  %v1797_v28 = vpop.xlane.xlu1 %1796 }
 0x2c3   :  { %v3511_v12 = vpop.eup %3510  ;;  %v1927_v17 = vmul.f32 %v3509_v57, %v5897_v0  ;;  %v1928_v13 = vmul.f32 %v3509_v57, %v5901_v36  ;;  %3514 = vpow2.f32 %v2235_v9 }
 0x2c4   :  { %v2533_v6 = vmul.f32 %v3511_v12, %v6055_v41  ;;  %v2534_v55 = vmul.f32 %v3511_v12, %v6057_v32  ;;  %2337 = vadd.xlane.f32.xlu2 %v2336_v7  ;;  %3516 = vpow2.f32 %v2237_v51  ;;  %v7443_v7 = vld [vmem:[#allocation75_spill] sm:$0xff] }
 0x2c5   :  { %v2111_v52 = vmul.f32 1.442695, %v1927_v17  ;;  %v2113_v19 = vmul.f32 1.442695, %v1928_v13  ;;  %v2293_v50 = vpop.xlane.xlu2 %2292  ;;  %3518 = vrcp.f32 %v1797_v28 }
 0x2c6   :  { %2661 = vst [vmem:[#allocation2 + $0xb0] sm:$0xff] %v2533_v6 }
 0x2c7   :  { %3520 = vpow2.f32 %v2111_v52  ;;  %2662 = vst [vmem:[#allocation2 + $0xb8] sm:$0xff] %v2534_v55  ;;  %v7444_v55 = vld [vmem:[#allocation88_spill] sm:$0xff] }
 0x2c8   :  { %3522 = vpow2.f32 %v2113_v19  ;;  %v3513_v0 = vpop.eup %3512  ;;  %v7445_v19 = vld [vmem:[#allocation89_spill] sm:$0xff] }
 0x2c9   :  { %3524 = vrcp.f32 %v2293_v50  ;;  %v6388_v36 = vpop.eup %3514  ;;  %v2597_v44 = vmul.f32 %v3513_v0, %v6076_v38  ;;  %v2598_v41 = vmul.f32 %v3513_v0, %v6080_v56  ;;  %v1704_v30 = vpop.xlane.xlu0 %1703 }
 0x2ca   :  { %v6392_v32 = vpop.eup %3516  ;;  %3526 = vrcp.f32 %v1704_v30  ;;  %v2389_v46 = vpop.xlane.xlu1 %2388 }
 0x2cb   :  { %v3519_v57 = vpop.eup %3518  ;;  %2725 = vst [vmem:[#allocation2 + $0x2b0] sm:$0xff] %v2597_v44  ;;  %3528 = vrcp.f32 %v2389_v46  ;;  %v2432_v9 = vadd.f32 %v6392_v32, %v6388_v36 }
 0x2cc   :  { %2726 = vst [vmem:[#allocation2 + $0x2b8] sm:$0xff] %v2598_v41  ;;  %v1991_v48 = vmul.f32 %v3519_v57, %v5910_v3  ;;  %v1992_v38 = vmul.f32 %v3519_v57, %v7443_v7  ;;  %v7446_v41 = vld [vmem:[#allocation12_spill] sm:$0xff]  ;;  %v7447_v57 = vld [vmem:[#allocation15_spill] sm:$0xff] }
 0x2cd   :  { %v6396_v51 = vpop.eup %3520  ;;  %v1800_v56 = vpop.xlane.xlu2 %1799  ;;  %2433 = vadd.xlane.f32.xlu1 %v2432_v9 }
 0x2ce   :  { %v6400_v12 = vpop.eup %3522  ;;  %v2239_v13 = vmul.f32 1.442695, %v1991_v48  ;;  %v2241_v28 = vmul.f32 1.442695, %v1992_v38  ;;  %v7448_v48 = vld [vmem:[#allocation9_spill] sm:$0xff] }
 0x2cf   :  { %v3525_v17 = vpop.eup %3524  ;;  %v2339_v6 = vadd.f32 %v6400_v12, %v6396_v51 }
 0x2d0   :  { %v2535_v52 = vmul.f32 %v3525_v17, %v7444_v55  ;;  %v2536_v50 = vmul.f32 %v3525_v17, %v7445_v19  ;;  %v3527_v0 = vpop.eup %3526  ;;  %3530 = vpow2.f32 %v2239_v13 }
 0x2d1   :  { %2340 = vadd.xlane.f32.xlu0 %v2339_v6  ;;  %v3529_v3 = vpop.eup %3528  ;;  %3532 = vpow2.f32 %v2241_v28  ;;  %v1929_v44 = vmul.f32 %v3527_v0, %v5937_v37  ;;  %v1930_v30 = vmul.f32 %v3527_v0, %v7446_v41  ;;  %v2296_v46 = vpop.xlane.xlu0 %2295 }
 0x2d2   :  { %2663 = vst [vmem:[#allocation2 + $0xc0] sm:$0xff] %v2535_v52  ;;  %v2599_v9 = vmul.f32 %v3529_v3, %v7447_v57  ;;  %v2600_v7 = vmul.f32 %v3529_v3, %v7448_v48  ;;  %3534 = vrcp.f32 %v2296_v46  ;;  %v1707_v38 = vpop.xlane.xlu1 %1706 }
 0x2d3   :  { %2664 = vst [vmem:[#allocation2 + $0xc8] sm:$0xff] %v2536_v50  ;;  %v2115_v55 = vmul.f32 1.442695, %v1929_v44  ;;  %v2117_v17 = vmul.f32 1.442695, %v1930_v30  ;;  %3536 = vrcp.f32 %v1707_v38 }
 0x2d4   :  { %3538 = vrcp.f32 %v1800_v56  ;;  %2727 = vst [vmem:[#allocation2 + $0x2c0] sm:$0xff] %v2599_v9 }
 0x2d5   :  { %3540 = vpow2.f32 %v2115_v55  ;;  %2728 = vst [vmem:[#allocation2 + $0x2c8] sm:$0xff] %v2600_v7  ;;  %v2392_v13 = vpop.xlane.xlu2 %2391 }
 0x2d6   :  { %v6410_v28 = vpop.eup %3530  ;;  %3542 = vpow2.f32 %v2117_v17 }
 0x2d7   :  { %v6412_v37 = vpop.eup %3532  ;;  %3544 = vrcp.f32 %v2392_v13 }
 0x2d8   :  { %v3535_v6 = vpop.eup %3534  ;;  %v2435_v52 = vadd.f32 %v6412_v37, %v6410_v28 }
 0x2d9   :  { %v3537_v19 = vpop.eup %3536  ;;  %v2537_v50 = vmul.f32 %v3535_v6, %v5969_v35  ;;  %v2538_v0 = vmul.f32 %v3535_v6, %v5979_v40  ;;  %v1803_v56 = vpop.xlane.xlu0 %1802 }
 0x2da   :  { %v3539_v3 = vpop.eup %3538  ;;  %v1931_v44 = vmul.f32 %v3537_v19, %v5984_v53  ;;  %v1932_v41 = vmul.f32 %v3537_v19, %v5986_v47  ;;  %2436 = vadd.xlane.f32.xlu2 %v2435_v52  ;;  %v2299_v30 = vpop.xlane.xlu1 %2298  ;;  %3546 = vrcp.f32 %v1803_v56 }
 0x2db   :  { %v6420_v46 = vpop.eup %3540  ;;  %2665 = vst [vmem:[#allocation2 + $0xd0] sm:$0xff] %v2537_v50  ;;  %3548 = vrcp.f32 %v2299_v30  ;;  %v1993_v40 = vmul.f32 %v3539_v3, %v5945_v5  ;;  %v7449_v50 = vld [vmem:[#allocation19_spill] sm:$0xff] }
 0x2dc   :  { %v6422_v57 = vpop.eup %3542  ;;  %2666 = vst [vmem:[#allocation2 + $0xd8] sm:$0xff] %v2538_v0  ;;  %v2119_v9 = vmul.f32 1.442695, %v1931_v44  ;;  %v2121_v48 = vmul.f32 1.442695, %v1932_v41  ;;  %v7450_v0 = vld [vmem:[#allocation87_spill] sm:$0xff] }
 0x2dd   :  { %v3545_v35 = vpop.eup %3544  ;;  %v1710_v7 = vpop.xlane.xlu2 %1709  ;;  %v2342_v53 = vadd.f32 %v6422_v57, %v6420_v46  ;;  %v2243_v17 = vmul.f32 1.442695, %v1993_v40  ;;  %v7452_v40 = vld [vmem:[#allocation10_spill] sm:$0xff] }
 0x2de   :  { %v2601_v47 = vmul.f32 %v3545_v35, %v6009_v43  ;;  %v2602_v38 = vmul.f32 %v3545_v35, %v6024_v49  ;;  %3550 = vpow2.f32 %v2119_v9 }
 0x2df   :  { %3552 = vpow2.f32 %v2121_v48  ;;  %2343 = vadd.xlane.f32.xlu1 %v2342_v53 }
 0x2e0   :  { %2729 = vst [vmem:[#allocation2 + $0x2d0] sm:$0xff] %v2601_v47  ;;  %3554 = vrcp.f32 %v1710_v7  ;;  %v3547_v55 = vpop.eup %3546  ;;  %v7453_v47 = vld [vmem:[#allocation14_spill] sm:$0xff] }
 0x2e1   :  { %2730 = vst [vmem:[#allocation2 + $0x2d8] sm:$0xff] %v2602_v38  ;;  %v2395_v13 = vpop.xlane.xlu0 %2394  ;;  %v3549_v6 = vpop.eup %3548  ;;  %v1995_v5 = vmul.f32 %v3547_v55, %v5988_v2  ;;  %v1996_v52 = vmul.f32 %v3547_v55, %v5993_v26  ;;  %v7451_v26 = vld [vmem:[#allocation18_spill] sm:$0xff]  ;;  %v1994_v38 = vmul.f32 %v3539_v3, %v7453_v47 }
 0x2e2   :  { %3556 = vrcp.f32 %v2395_v13  ;;  %v1806_v19 = vpop.xlane.xlu1 %1805  ;;  %v2539_v43 = vmul.f32 %v3549_v6, %v7449_v50  ;;  %v2540_v49 = vmul.f32 %v3549_v6, %v7450_v0  ;;  %v7454_v6 = vld [vmem:[#allocation20_spill] sm:$0xff] }
 0x2e3   :  { %3558 = vrcp.f32 %v1806_v19  ;;  %v2247_v44 = vmul.f32 1.442695, %v1995_v5  ;;  %v2249_v41 = vmul.f32 1.442695, %v1996_v52  ;;  %v7455_v52 = vld [vmem:[#allocation90_spill] sm:$0xff] }
 0x2e4   :  { %v6433_v56 = vpop.eup %3550  ;;  %3560 = vpow2.f32 %v2243_v17  ;;  %2667 = vst [vmem:[#allocation2 + $0xe0] sm:$0xff] %v2539_v43  ;;  %v7456_v43 = vld [vmem:[#allocation83_spill] sm:$0xff] }
 0x2e5   :  { %v6435_v30 = vpop.eup %3552  ;;  %v2302_v9 = vpop.xlane.xlu2 %2301  ;;  %3562 = vpow2.f32 %v2247_v44  ;;  %2668 = vst [vmem:[#allocation2 + $0xe8] sm:$0xff] %v2540_v49  ;;  %v7457_v49 = vld [vmem:[#allocation84_spill] sm:$0xff] }
 0x2e6   :  { %v3555_v48 = vpop.eup %3554  ;;  %v2345_v2 = vadd.f32 %v6435_v30, %v6433_v56  ;;  %3564 = vpow2.f32 %v2249_v41 }
 0x2e7   :  { %v1933_v35 = vmul.f32 %v3555_v48, %v7451_v26  ;;  %v1934_v7 = vmul.f32 %v3555_v48, %v7452_v40  ;;  %3566 = vrcp.f32 %v2302_v9 }
 0x2e8   :  { %v3557_v53 = vpop.eup %3556  ;;  %2346 = vadd.xlane.f32.xlu2 %v2345_v2 }
 0x2e9   :  { %v3559_v55 = vpop.eup %3558  ;;  %v2123_v17 = vmul.f32 1.442695, %v1933_v35  ;;  %v2125_v13 = vmul.f32 1.442695, %v1934_v7  ;;  %v2603_v5 = vmul.f32 %v3557_v53, %v7454_v6  ;;  %v2604_v19 = vmul.f32 %v3557_v53, %v7455_v52 }
 0x2ea   :  { %v2305_v50 = vpop.xlane.xlu0 %2304  ;;  %v1997_v0 = vmul.f32 %v3559_v55, %v7456_v43  ;;  %v1998_v44 = vmul.f32 %v3559_v55, %v7457_v49  ;;  %v2398_v41 = vpop.xlane.xlu1 %2397  ;;  %v2245_v35 = vmul.f32 1.442695, %v1994_v38  ;;  %v7458_v55 = vld [vmem:[#allocation93_spill] sm:$0xff] }
 0x2eb   :  { %3568 = vrcp.f32 %v2305_v50  ;;  %v6446_v48 = vpop.eup %3560  ;;  %2731 = vst [vmem:[#allocation2 + $0x2e0] sm:$0xff] %v2603_v5 }
 0x2ec   :  { %3570 = vpow2.f32 %v2123_v17  ;;  %v6448_v3 = vpop.eup %3562  ;;  %2732 = vst [vmem:[#allocation2 + $0x2e8] sm:$0xff] %v2604_v19  ;;  %v2251_v9 = vmul.f32 1.442695, %v1997_v0  ;;  %v2253_v2 = vmul.f32 1.442695, %v1998_v44 }
 0x2ed   :  { %3572 = vpow2.f32 %v2125_v13  ;;  %v6450_v26 = vpop.eup %3564 }
 0x2ee   :  { %3574 = vrcp.f32 %v2398_v41  ;;  %v3567_v7 = vpop.eup %3566  ;;  %v2441_v53 = vadd.f32 %v6450_v26, %v6448_v3 }
 0x2ef   :  { %v2401_v40 = vpop.xlane.xlu2 %2400  ;;  %3576 = vpow2.f32 %v2251_v9  ;;  %v2541_v47 = vmul.f32 %v3567_v7, %v6138_v58  ;;  %v2542_v17 = vmul.f32 %v3567_v7, %v7458_v55 }
 0x2f0   :  { %3578 = vpow2.f32 %v2253_v2  ;;  %2442 = vadd.xlane.f32.xlu1 %v2441_v53  ;;  %v7459_v53 = vld [vmem:[#allocation24_spill] sm:$0xff] }
 0x2f1   :  { %v3569_v6 = vpop.eup %3568  ;;  %3580 = vrcp.f32 %v2401_v40  ;;  %2669 = vst [vmem:[#allocation2 + $0xf0] sm:$0xff] %v2541_v47 }
 0x2f2   :  { %v6456_v13 = vpop.eup %3570  ;;  %3582 = vpow2.f32 %v2245_v35  ;;  %v2543_v38 = vmul.f32 %v3569_v6, %v6107_v21  ;;  %v2544_v5 = vmul.f32 %v3569_v6, %v6127_v10  ;;  %v2404_v52 = vpop.xlane.xlu0 %2403  ;;  %2670 = vst [vmem:[#allocation2 + $0xf8] sm:$0xff] %v2542_v17  ;;  %v7460_v17 = vld [vmem:[#allocation94_spill] sm:$0xff] }
 0x2f3   :  { %v6460_v19 = vpop.eup %3572  ;;  %3584 = vrcp.f32 %v2404_v52  ;;  %v2308_v58 = vpop.xlane.xlu1 %2307 }
 0x2f4   :  { %v3575_v50 = vpop.eup %3574  ;;  %2671 = vst [vmem:[#allocation2 + $0x100] sm:$0xff] %v2543_v38  ;;  %v2348_v43 = vadd.f32 %v6460_v19, %v6456_v13  ;;  %3586 = vrcp.f32 %v2308_v58  ;;  %v7461_v38 = vld [vmem:[#allocation21_spill] sm:$0xff]  ;;  %v7462_v58 = vld [vmem:[#allocation26_spill] sm:$0xff] }
 0x2f5   :  { %v6464_v0 = vpop.eup %3576  ;;  %2672 = vst [vmem:[#allocation2 + $0x108] sm:$0xff] %v2544_v5  ;;  %v2605_v49 = vmul.f32 %v3575_v50, %v6149_v42  ;;  %v2606_v21 = vmul.f32 %v3575_v50, %v6152_v60 }
 0x2f6   :  { %v6468_v10 = vpop.eup %3578  ;;  %2349 = vadd.xlane.f32.xlu0 %v2348_v43 }
 0x2f7   :  { %v2311_v44 = vpop.xlane.xlu2 %2310  ;;  %v3581_v41 = vpop.eup %3580  ;;  %2733 = vst [vmem:[#allocation2 + $0x2f0] sm:$0xff] %v2605_v49  ;;  %v2444_v9 = vadd.f32 %v6468_v10, %v6464_v0 }
 0x2f8   :  { %3588 = vrcp.f32 %v2311_v44  ;;  %v6472_v2 = vpop.eup %3582  ;;  %v2607_v35 = vmul.f32 %v3581_v41, %v6157_v25  ;;  %v2608_v40 = vmul.f32 %v3581_v41, %v6160_v31  ;;  %2734 = vst [vmem:[#allocation2 + $0x2f8] sm:$0xff] %v2606_v21  ;;  %v7464_v41 = vld [vmem:[#allocation25_spill] sm:$0xff] }
 0x2f9   :  { %v3585_v42 = vpop.eup %3584  ;;  %2445 = vadd.xlane.f32.xlu2 %v2444_v9  ;;  %v2438_v25 = vadd.f32 %v6472_v2, %v6446_v48 }
 0x2fa   :  { %v3587_v60 = vpop.eup %3586  ;;  %2735 = vst [vmem:[#allocation2 + $0x300] sm:$0xff] %v2607_v35  ;;  %v2609_v7 = vmul.f32 %v3585_v42, %v6178_v22  ;;  %v2610_v47 = vmul.f32 %v3585_v42, %v7459_v53  ;;  %v2314_v55 = vpop.xlane.xlu0 %2313  ;;  %v7463_v22 = vld [vmem:[#allocation22_spill] sm:$0xff]  ;;  %v7465_v35 = vld [vmem:[#allocation27_spill] sm:$0xff]  ;;  %v7467_v53 = vld [vmem:[#allocation28_spill] sm:$0xff] }
 0x2fb   :  { %2736 = vst [vmem:[#allocation2 + $0x308] sm:$0xff] %v2608_v40  ;;  %v2545_v6 = vmul.f32 %v3587_v60, %v7460_v17  ;;  %v2546_v5 = vmul.f32 %v3587_v60, %v7461_v38  ;;  %3590 = vrcp.f32 %v2314_v55  ;;  %v2407_v52 = vpop.xlane.xlu1 %2406  ;;  %v7466_v60 = vld [vmem:[#allocation23_spill] sm:$0xff] }
 0x2fc   :  { %2737 = vst [vmem:[#allocation2 + $0x310] sm:$0xff] %v2609_v7  ;;  %3592 = vrcp.f32 %v2407_v52 }
 0x2fd   :  { %2738 = vst [vmem:[#allocation2 + $0x318] sm:$0xff] %v2610_v47 }
 0x2fe   :  { %v3589_v31 = vpop.eup %3588  ;;  %2673 = vst [vmem:[#allocation2 + $0x110] sm:$0xff] %v2545_v6  ;;  %2439 = vadd.xlane.f32.xlu0 %v2438_v25 }
 0x2ff   :  { %v2547_v50 = vmul.f32 %v3589_v31, %v7462_v58  ;;  %v2548_v43 = vmul.f32 %v3589_v31, %v7463_v22  ;;  %v2410_v49 = vpop.xlane.xlu2 %2409  ;;  %2674 = vst [vmem:[#allocation2 + $0x118] sm:$0xff] %v2546_v5 }
 0x300   :  { %3594 = vrcp.f32 %v2410_v49 }
 0x301   :  { %2675 = vst [vmem:[#allocation2 + $0x120] sm:$0xff] %v2547_v50  ;;  %v3591_v21 = vpop.eup %3590 }
 0x302   :  { %2676 = vst [vmem:[#allocation2 + $0x128] sm:$0xff] %v2548_v43  ;;  %v3593_v44 = vpop.eup %3592  ;;  %v2549_v9 = vmul.f32 %v3591_v21, %v7464_v41  ;;  %v2550_v40 = vmul.f32 %v3591_v21, %v7465_v35  ;;  %v2413_v42 = vpop.xlane.xlu0 %2412  ;;  %v7469_v35 = vld [vmem:[#allocation29_spill] sm:$0xff] }
 0x303   :  { %v2611_v7 = vmul.f32 %v3593_v44, %v7466_v60  ;;  %v2612_v47 = vmul.f32 %v3593_v44, %v7467_v53  ;;  %3596 = vrcp.f32 %v2413_v42  ;;  %v2317_v55 = vpop.xlane.xlu1 %2316  ;;  %v7470_v42 = vld [vmem:[#allocation32_spill] sm:$0xff]  ;;  %v7471_v53 = vld [vmem:[#allocation38_spill] sm:$0xff] }
 0x304   :  { %2677 = vst [vmem:[#allocation2 + $0x130] sm:$0xff] %v2549_v9  ;;  %3598 = vrcp.f32 %v2317_v55 }
 0x305   :  { %2678 = vst [vmem:[#allocation2 + $0x138] sm:$0xff] %v2550_v40 }
 0x306   :  { %v3595_v17 = vpop.eup %3594  ;;  %2739 = vst [vmem:[#allocation2 + $0x320] sm:$0xff] %v2611_v7 }
 0x307   :  { %v2613_v6 = vmul.f32 %v3595_v17, %v6233_v54  ;;  %v2614_v38 = vmul.f32 %v3595_v17, %v6235_v34  ;;  %v2320_v5 = vpop.xlane.xlu2 %2319  ;;  %2740 = vst [vmem:[#allocation2 + $0x328] sm:$0xff] %v2612_v47 }
 0x308   :  { %3600 = vrcp.f32 %v2320_v5 }
 0x309   :  { %2741 = vst [vmem:[#allocation2 + $0x330] sm:$0xff] %v2613_v6  ;;  %v3597_v52 = vpop.eup %3596 }
 0x30a   :  { %2742 = vst [vmem:[#allocation2 + $0x338] sm:$0xff] %v2614_v38  ;;  %v3599_v25 = vpop.eup %3598  ;;  %v2615_v31 = vmul.f32 %v3597_v52, %v6249_v62  ;;  %v2616_v58 = vmul.f32 %v3597_v52, %v6254_v29  ;;  %v2323_v50 = vpop.xlane.xlu0 %2322  ;;  %v7468_v29 = vld [vmem:[#allocation30_spill] sm:$0xff] }
 0x30b   :  { %v2551_v22 = vmul.f32 %v3599_v25, %v6241_v14  ;;  %v2552_v43 = vmul.f32 %v3599_v25, %v6246_v20  ;;  %3602 = vrcp.f32 %v2323_v50  ;;  %v2416_v54 = vpop.xlane.xlu1 %2415  ;;  %v7472_v50 = vld [vmem:[#allocation39_spill] sm:$0xff] }
 0x30c   :  { %2743 = vst [vmem:[#allocation2 + $0x340] sm:$0xff] %v2615_v31  ;;  %3604 = vrcp.f32 %v2416_v54 }
 0x30d   :  { %2744 = vst [vmem:[#allocation2 + $0x348] sm:$0xff] %v2616_v58 }
 0x30e   :  { %v3601_v34 = vpop.eup %3600  ;;  %2679 = vst [vmem:[#allocation2 + $0x140] sm:$0xff] %v2551_v22 }
 0x30f   :  { %v2553_v49 = vmul.f32 %v3601_v34, %v6257_v1  ;;  %v2554_v21 = vmul.f32 %v3601_v34, %v6274_v24  ;;  %v2419_v44 = vpop.xlane.xlu2 %2418  ;;  %2680 = vst [vmem:[#allocation2 + $0x148] sm:$0xff] %v2552_v43  ;;  %v7473_v34 = vld [vmem:[#allocation97_spill] sm:$0xff] }
 0x310   :  { %3606 = vrcp.f32 %v2419_v44  ;;  %v7474_v44 = vld [vmem:[#allocation42_spill] sm:$0xff] }
 0x311   :  { %2681 = vst [vmem:[#allocation2 + $0x150] sm:$0xff] %v2553_v49  ;;  %v3603_v62 = vpop.eup %3602 }
 0x312   :  { %2682 = vst [vmem:[#allocation2 + $0x158] sm:$0xff] %v2554_v21  ;;  %v3605_v14 = vpop.eup %3604  ;;  %v2555_v20 = vmul.f32 %v3603_v62, %v6286_v27  ;;  %v2556_v41 = vmul.f32 %v3603_v62, %v7468_v29  ;;  %v2422_v9 = vpop.xlane.xlu0 %2421  ;;  %v7476_v29 = vld [vmem:[#allocation31_spill] sm:$0xff] }
 0x313   :  { %v2617_v40 = vmul.f32 %v3605_v14, %v7469_v35  ;;  %v2618_v60 = vmul.f32 %v3605_v14, %v7470_v42  ;;  %3608 = vrcp.f32 %v2422_v9  ;;  %v2326_v1 = vpop.xlane.xlu1 %2325  ;;  %v7475_v14 = vld [vmem:[#allocation98_spill] sm:$0xff] }
 0x314   :  { %2683 = vst [vmem:[#allocation2 + $0x160] sm:$0xff] %v2555_v20  ;;  %3610 = vrcp.f32 %v2326_v1 }
 0x315   :  { %2684 = vst [vmem:[#allocation2 + $0x168] sm:$0xff] %v2556_v41  ;;  %v7477_v41 = vld [vmem:[#allocation33_spill] sm:$0xff] }
 0x316   :  { %v3607_v24 = vpop.eup %3606  ;;  %2745 = vst [vmem:[#allocation2 + $0x350] sm:$0xff] %v2617_v40 }
 0x317   :  { %v2619_v7 = vmul.f32 %v3607_v24, %v6292_v15  ;;  %v2620_v47 = vmul.f32 %v3607_v24, %v7471_v53  ;;  %v2329_v55 = vpop.xlane.xlu2 %2328  ;;  %2746 = vst [vmem:[#allocation2 + $0x358] sm:$0xff] %v2618_v60 }
 0x318   :  { %3612 = vrcp.f32 %v2329_v55 }
 0x319   :  { %2747 = vst [vmem:[#allocation2 + $0x360] sm:$0xff] %v2619_v7  ;;  %v3609_v27 = vpop.eup %3608 }
 0x31a   :  { %2748 = vst [vmem:[#allocation2 + $0x368] sm:$0xff] %v2620_v47  ;;  %v3611_v17 = vpop.eup %3610  ;;  %v2621_v6 = vmul.f32 %v3609_v27, %v6300_v63  ;;  %v2622_v38 = vmul.f32 %v3609_v27, %v6304_v11  ;;  %v2332_v5 = vpop.xlane.xlu0 %2331 }
 0x31b   :  { %v2557_v52 = vmul.f32 %v3611_v17, %v6298_v23  ;;  %v2558_v25 = vmul.f32 %v3611_v17, %v6316_v39  ;;  %v2425_v15 = vpop.xlane.xlu1 %2424  ;;  %3614 = vrcp.f32 %v2332_v5 }
 0x31c   :  { %2749 = vst [vmem:[#allocation2 + $0x370] sm:$0xff] %v2621_v6  ;;  %3616 = vrcp.f32 %v2425_v15 }
 0x31d   :  { %2750 = vst [vmem:[#allocation2 + $0x378] sm:$0xff] %v2622_v38 }
 0x31e   :  { %v3613_v31 = vpop.eup %3612  ;;  %2685 = vst [vmem:[#allocation2 + $0x170] sm:$0xff] %v2557_v52 }
 0x31f   :  { %v2559_v58 = vmul.f32 %v3613_v31, %v6319_v18  ;;  %v2560_v22 = vmul.f32 %v3613_v31, %v7472_v50  ;;  %2686 = vst [vmem:[#allocation2 + $0x178] sm:$0xff] %v2558_v25 }
 0x320   :  { %v2428_v43 = vpop.xlane.xlu2 %2427 }
 0x321   :  { %3618 = vrcp.f32 %v2428_v43  ;;  %2687 = vst [vmem:[#allocation2 + $0x180] sm:$0xff] %v2559_v58  ;;  %v3615_v63 = vpop.eup %3614 }
 0x322   :  { %2688 = vst [vmem:[#allocation2 + $0x188] sm:$0xff] %v2560_v22  ;;  %v3617_v23 = vpop.eup %3616  ;;  %v2561_v11 = vmul.f32 %v3615_v63, %v6336_v16  ;;  %v2562_v49 = vmul.f32 %v3615_v63, %v7473_v34 }
 0x323   :  { %v2623_v39 = vmul.f32 %v3617_v23, %v6328_v4  ;;  %v2624_v54 = vmul.f32 %v3617_v23, %v6332_v45 }
 0x324   :  { %v2335_v21 = vpop.xlane.xlu1 %2334  ;;  %2689 = vst [vmem:[#allocation2 + $0x190] sm:$0xff] %v2561_v11 }
 0x325   :  { %3620 = vrcp.f32 %v2335_v21  ;;  %2751 = vst [vmem:[#allocation2 + $0x380] sm:$0xff] %v2623_v39 }
 0x326   :  { %2752 = vst [vmem:[#allocation2 + $0x388] sm:$0xff] %v2624_v54 }
 0x327   :  { %v3619_v18 = vpop.eup %3618  ;;  %2690 = vst [vmem:[#allocation2 + $0x198] sm:$0xff] %v2562_v49 }
 0x328   :  { %v2625_v62 = vmul.f32 %v3619_v18, %v7474_v44  ;;  %v2626_v20 = vmul.f32 %v3619_v18, %v7475_v14 }
 0x32a   :  { %2753 = vst [vmem:[#allocation2 + $0x390] sm:$0xff] %v2625_v62 }
 0x32b   :  { %2754 = vst [vmem:[#allocation2 + $0x398] sm:$0xff] %v2626_v20  ;;  %v3621_v16 = vpop.eup %3620 }
 0x32c   :  { %v2563_v4 = vmul.f32 %v3621_v16, %v7476_v29  ;;  %v2564_v45 = vmul.f32 %v3621_v16, %v7477_v41 }
 0x32e   :  { %2691 = vst [vmem:[#allocation2 + $0x1a0] sm:$0xff] %v2563_v4 }
 0x32f   :  { %2692 = vst [vmem:[#allocation2 + $0x1a8] sm:$0xff] %v2564_v45 }
 0x331   :  { %v2431_v9 = vpop.xlane.xlu0 %2430 }
 0x332   :  { %3622 = vrcp.f32 %v2431_v9 }
 0x337   :  { %v2338_v60 = vpop.xlane.xlu2 %2337 }
 0x338   :  { %v3623_v35 = vpop.eup %3622  ;;  %3624 = vrcp.f32 %v2338_v60 }
 0x339   :  { %v2627_v40 = vmul.f32 %v3623_v35, %v6366_v59  ;;  %v2628_v42 = vmul.f32 %v3623_v35, %v6370_v33 }
 0x33b   :  { %2755 = vst [vmem:[#allocation2 + $0x3a0] sm:$0xff] %v2627_v40 }
 0x33c   :  { %2756 = vst [vmem:[#allocation2 + $0x3a8] sm:$0xff] %v2628_v42 }
 0x33e   :  { %v3625_v1 = vpop.eup %3624 }
 0x33f   :  { %v2565_v24 = vmul.f32 %v3625_v1, %v6376_v61  ;;  %v2566_v7 = vmul.f32 %v3625_v1, %v6380_v8 }
 0x340   :  { %v2434_v53 = vpop.xlane.xlu1 %2433 }
 0x341   :  { %2693 = vst [vmem:[#allocation2 + $0x1b0] sm:$0xff] %v2565_v24  ;;  %3626 = vrcp.f32 %v2434_v53 }
 0x342   :  { %2694 = vst [vmem:[#allocation2 + $0x1b8] sm:$0xff] %v2566_v7 }
 0x344   :  { %v2341_v47 = vpop.xlane.xlu0 %2340 }
 0x345   :  { %3628 = vrcp.f32 %v2341_v47 }
 0x347   :  { %v3627_v55 = vpop.eup %3626 }
 0x348   :  { %v2629_v59 = vmul.f32 %v3627_v55, %v6388_v36  ;;  %v2630_v33 = vmul.f32 %v3627_v55, %v6392_v32 }
 0x34a   :  { %2757 = vst [vmem:[#allocation2 + $0x3b0] sm:$0xff] %v2629_v59 }
 0x34b   :  { %v3629_v27 = vpop.eup %3628  ;;  %2758 = vst [vmem:[#allocation2 + $0x3b8] sm:$0xff] %v2630_v33 }
 0x34c   :  { %v2567_v17 = vmul.f32 %v3629_v27, %v6396_v51  ;;  %v2568_v61 = vmul.f32 %v3629_v27, %v6400_v12 }
 0x34d   :  { %v2437_v8 = vpop.xlane.xlu2 %2436 }
 0x34e   :  { %2695 = vst [vmem:[#allocation2 + $0x1c0] sm:$0xff] %v2567_v17  ;;  %3630 = vrcp.f32 %v2437_v8 }
 0x34f   :  { %2696 = vst [vmem:[#allocation2 + $0x1c8] sm:$0xff] %v2568_v61 }
 0x352   :  { %v2344_v6 = vpop.xlane.xlu1 %2343 }
 0x353   :  { %3632 = vrcp.f32 %v2344_v6 }
 0x354   :  { %v3631_v38 = vpop.eup %3630 }
 0x355   :  { %v2631_v5 = vmul.f32 %v3631_v38, %v6410_v28  ;;  %v2632_v36 = vmul.f32 %v3631_v38, %v6412_v37 }
 0x357   :  { %2759 = vst [vmem:[#allocation2 + $0x3c0] sm:$0xff] %v2631_v5 }
 0x358   :  { %2760 = vst [vmem:[#allocation2 + $0x3c8] sm:$0xff] %v2632_v36 }
 0x359   :  { %v3633_v32 = vpop.eup %3632 }
 0x35a   :  { %v2569_v52 = vmul.f32 %v3633_v32, %v6420_v46  ;;  %v2570_v51 = vmul.f32 %v3633_v32, %v6422_v57 }
 0x35b   :  { %v2347_v25 = vpop.xlane.xlu2 %2346 }
 0x35c   :  { %2697 = vst [vmem:[#allocation2 + $0x1d0] sm:$0xff] %v2569_v52  ;;  %3634 = vrcp.f32 %v2347_v25 }
 0x35d   :  { %2698 = vst [vmem:[#allocation2 + $0x1d8] sm:$0xff] %v2570_v51 }
 0x362   :  { %v3635_v12 = vpop.eup %3634 }
 0x363   :  { %v2571_v15 = vmul.f32 %v3635_v12, %v6433_v56  ;;  %v2572_v31 = vmul.f32 %v3635_v12, %v6435_v30  ;;  %v2443_v58 = vpop.xlane.xlu1 %2442 }
 0x364   :  { %3636 = vrcp.f32 %v2443_v58 }
 0x365   :  { %2699 = vst [vmem:[#allocation2 + $0x1e0] sm:$0xff] %v2571_v15 }
 0x366   :  { %2700 = vst [vmem:[#allocation2 + $0x1e8] sm:$0xff] %v2572_v31 }
 0x369   :  { %v2350_v28 = vpop.xlane.xlu0 %2349 }
 0x36a   :  { %3638 = vrcp.f32 %v2350_v28  ;;  %v3637_v37 = vpop.eup %3636 }
 0x36b   :  { %v2635_v46 = vmul.f32 %v3637_v37, %v6448_v3  ;;  %v2636_v57 = vmul.f32 %v3637_v37, %v6450_v26 }
 0x36c   :  { %v2446_v50 = vpop.xlane.xlu2 %2445 }
 0x36d   :  { %3640 = vrcp.f32 %v2446_v50  ;;  %2763 = vst [vmem:[#allocation2 + $0x3e0] sm:$0xff] %v2635_v46 }
 0x36e   :  { %2764 = vst [vmem:[#allocation2 + $0x3e8] sm:$0xff] %v2636_v57 }
 0x370   :  { %v3639_v22 = vpop.eup %3638 }
 0x371   :  { %v2573_v56 = vmul.f32 %v3639_v22, %v6456_v13  ;;  %v2574_v30 = vmul.f32 %v3639_v22, %v6460_v19  ;;  %v2440_v43 = vpop.xlane.xlu0 %2439 }
 0x372   :  { %3642 = vrcp.f32 %v2440_v43 }
 0x373   :  { %v3641_v63 = vpop.eup %3640  ;;  %2701 = vst [vmem:[#allocation2 + $0x1f0] sm:$0xff] %v2573_v56 }
 0x374   :  { %2702 = vst [vmem:[#allocation2 + $0x1f8] sm:$0xff] %v2574_v30  ;;  %v2637_v23 = vmul.f32 %v3641_v63, %v6464_v0  ;;  %v2638_v3 = vmul.f32 %v3641_v63, %v6468_v10 }
 0x376   :  { %2765 = vst [vmem:[#allocation2 + $0x3f0] sm:$0xff] %v2637_v23 }
 0x377   :  { %2766 = vst [vmem:[#allocation2 + $0x3f8] sm:$0xff] %v2638_v3 }
 0x378   :  { %v3643_v26 = vpop.eup %3642 }
 0x379   :  { %v2633_v13 = vmul.f32 %v3643_v26, %v6446_v48  ;;  %v2634_v19 = vmul.f32 %v3643_v26, %v6472_v2 }
 0x37b   :  { %2761 = vst [vmem:[#allocation2 + $0x3d0] sm:$0xff] %v2633_v13 }
 0x37c   :  { %2762 = vst [vmem:[#allocation2 + $0x3d8] sm:$0xff] %v2634_v19 }
 0x37d   :  { %2779 = dma.vmem_to_hbm [thread:$0]  %s2772_s1, 16384, %s2774_s11, [#allocation3], %s3671_s12, %s3671_s12, %s3672_s13  }
 0x37e   :  { %3668 = dma.done.wait [#allocation3], 16384  }
 0x37f   :  { %3669 = vsyncadd [#allocation3], 4294950912 }
 0x380   :  { %2784 = vsyncpa [#allocation3], 1 }

</bundles_post_ra>
